<compile_context>
chip_gen: v6e
topology: v6e:2x2x1
jax: 0.10.0
libtpu: 0.0.40
codegen_flags: <defaults>
</compile_context>

<pallas_src>
import jax
import jax.numpy as jnp
from jax import lax
from jax.experimental import pallas as pl
from jax.experimental.pallas import tpu as pltpu

SINKHORN_EPS = 0.01            # epsilon of sinkhorn_img_loss (torch default)
INV_EPS = 1.0 / SINKHORN_EPS   # trace-time constant: multiply instead of divide
CHARB_EPS = 1e-6               # self.eps of L2_Charbonnier_W_loss


# ----------------------------------------------------------------------------
# In-kernel helpers
# ----------------------------------------------------------------------------
def _transport_cost(a, b, asq, bsq, *, diag_mask=None):
    """Single-iteration entropic-OT transport cost sum(pi * cm), per channel.

    a, b     : [C, H, W] f32 (resident VMEM values)
    asq, bsq : [C, H]    f32 row squared norms
    diag_mask: [H, H] bool (self-transport) or None (cross-transport)
    Returns  : [C, 1] f32

    Builds the Gram/cost matrix and consumes it immediately so at most ~one
    [C, H, H] f32 chain is live per call.
    """
    c, h, _ = a.shape
    symmetric = diag_mask is not None

    # Gram matrix on the MXU, batched over channels.  HIGHEST keeps the cost
    # matrix f32-accurate; exp(-cm/eps) with eps=0.01 is very sensitive.
    g = jnp.einsum('chw,cgw->chg', a, b,
                   precision=lax.Precision.HIGHEST,
                   preferred_element_type=jnp.float32)

    # cm[i,j] = ||a_i||^2 + ||b_j||^2 - 2 <a_i, b_j>, clamped at 0 (cancellation
    # can leave tiny negatives the subtract-square form cannot produce).
    cm = jnp.maximum(asq[:, :, None] + bsq[:, None, :] - 2.0 * g, 0.0)

    if symmetric:
        # Self cost matrix: force the diagonal to exactly 0 (as in the reference's
        # elementwise form).  Every row of m0 = -cm/eps then has max exactly 0, so
        # the XLU row-max reduction below can be skipped safely.
        cm = jnp.where(diag_mask[None, :, :], 0.0, cm)

    log_mu = jnp.log(1.0 / h + 1e-8)   # mu = nu = uniform 1/H (torch: log(mu + 1e-8))
    mu = 1.0 / h + 1e-8                # == exp(log_mu)

    # ---- u-update (u = v = 0 initially) -------------------------------------
    m0 = cm * (-INV_EPS)                                                 # [C,H,H]
    if symmetric:
        lse0 = jnp.log(jnp.sum(jnp.exp(m0), axis=-1, keepdims=True))     # row max == 0
    else:
        mx0 = jnp.max(m0, axis=-1, keepdims=True)                        # [C,H,1]
        lse0 = jnp.log(jnp.sum(jnp.exp(m0 - mx0), axis=-1, keepdims=True)) + mx0
    u_over_eps = log_mu - lse0                  # == u / eps               [C,H,1]

    # ---- v-update + transport cost with lse1 / v / pi eliminated ------------
    #   m1  = (-cm + u)/eps
    #   pi  = exp(m1 + v/eps) = e1 * exp(mx1 + v/eps) = e1 * mu / col_sum
    #   sum(pi*cm) = mu * sum_j (sum_i e1*cm)_j / col_sum_j
    m1 = m0 + u_over_eps                                                 # [C,H,H]
    mx1 = jnp.max(m1, axis=-2, keepdims=True)                            # [C,1,H]
    e1 = jnp.exp(m1 - mx1)                                               # [C,H,H]
    col_sum = jnp.sum(e1, axis=-2)                                       # [C,H]
    wsum = jnp.sum(e1 * cm, axis=-2)                                     # [C,H]
    # Exact divide: 2*Wxy - Wxx - Wyy cancels downstream, so no approx reciprocal.
    return mu * jnp.sum(wsum / col_sum, axis=-1, keepdims=True)          # [C,1]


def _fused_w_charbonnier_kernel(x_ref, y_ref, err_ref):
    """x_ref, y_ref: [1, C_BLK, H, W] tiles; err_ref: [1, C_BLK, 1] Charbonnier errors."""
    _, cb, h, w = x_ref.shape
    # Inputs may be streamed as bf16; all Sinkhorn math runs in f32.
    x = x_ref[...].reshape(cb, h, w).astype(jnp.float32)
    y = y_ref[...].reshape(cb, h, w).astype(jnp.float32)

    # Row squared norms (VPU).
    xsq = jnp.sum(x * x, axis=-1)              # [C_BLK, H]
    ysq = jnp.sum(y * y, axis=-1)              # [C_BLK, H]

    # Diagonal mask, built once and reused by both self-transports.
    eye = (lax.broadcasted_iota(jnp.int32, (h, h), 0) ==
           lax.broadcasted_iota(jnp.int32, (h, h), 1))

    # Per-pair ordering: each Gram/cost matrix is consumed before the next starts.
    wxy = _transport_cost(x, y, xsq, ysq)                      # [C_BLK, 1]
    wxx = _transport_cost(x, x, xsq, xsq, diag_mask=eye)
    wyy = _transport_cost(y, y, ysq, ysq, diag_mask=eye)

    diff = 2.0 * wxy - wxx - wyy               # sinkhorn_img_normalized
    err = jnp.sqrt(diff * diff + CHARB_EPS)    # Charbonnier penalty, [C_BLK, 1]
    err_ref[...] = err.reshape(1, cb, 1)


# ----------------------------------------------------------------------------
# Wrapper
# ----------------------------------------------------------------------------
def _vmem_limit_bytes():
    """Explicit scoped-VMEM limit (defaults of 16/32 MiB are too small for
    image-sized planes); leave headroom below the chip's physical capacity."""
    try:
        cap = int(pltpu.get_tpu_info().vmem_capacity_bytes)
    except Exception:
        cap = 64 * 1024 * 1024          # v7x per-core physical VMEM (smallest case)
    return int(min(cap * 3 // 4, 100 * 1024 * 1024))


def _pick_c_block(c, h, w, in_itemsize, budget_bytes):
    """Largest channel block whose per-step working set fits the VMEM budget.
    Candidates: full C, or divisors of C that are multiples of 8 (keeps the
    output block's sublane dimension aligned)."""
    def need(cb):
        inputs = 2 * 2 * cb * h * w * in_itemsize        # 2 arrays x double buffer
        f32_copies = 2 * cb * h * w * 4                  # in-kernel f32 casts
        temps = 3 * cb * h * h * 4                       # ~live [cb,H,H] f32 chain
        return inputs + f32_copies + temps + 4 * cb * 4

    if need(c) <= budget_bytes:
        return c
    candidates = [cb for cb in range(8, c, 8) if c % cb == 0]
    for cb in sorted(candidates, reverse=True):
        if need(cb) <= budget_bytes:
            return cb
    # Nothing fits the soft budget: take the smallest aligned block (correctness
    # preserved; the compiler still has the full vmem limit to work with).
    return candidates[0] if candidates else c


def l2_charbonnier_w_loss(x, y):
    """Forward pass of L2_Charbonnier_W_loss. Returns a scalar."""
    # Keep bf16 inputs in bf16 through HBM->VMEM (half the DMA traffic and half
    # the double-buffered input footprint); everything else is upcast to f32.
    if x.dtype not in (jnp.bfloat16, jnp.float32):
        x = x.astype(jnp.float32)
    y = y.astype(x.dtype)
    n, c, h, w = x.shape

    vmem_limit = _vmem_limit_bytes()
    c_blk = _pick_c_block(c, h, w, x.dtype.itemsize, (vmem_limit * 3) // 5)
    num_cb = c // c_blk

    err = pl.pallas_call(
        _fused_w_charbonnier_kernel,
        out_shape=jax.ShapeDtypeStruct((n, c, 1), jnp.float32),
        grid=(n, num_cb),
        in_specs=[
            pl.BlockSpec((1, c_blk, h, w), lambda i, j: (i, j, 0, 0)),
            pl.BlockSpec((1, c_blk, h, w), lambda i, j: (i, j, 0, 0)),
        ],
        out_specs=pl.BlockSpec((1, c_blk, 1), lambda i, j: (i, j, 0)),
        compiler_params=pltpu.CompilerParams(
            dimension_semantics=("parallel", "parallel"),
            vmem_limit_bytes=vmem_limit,
        ),
    )(x, y)

    # Final sum over the tiny [N, C, 1] per-(image, channel) errors in plain JAX
    # (a dedicated kernel launch for a few-element reduction is pure overhead).
    return jnp.sum(err)


# ----------------------------------------------------------------------------
# Pure-JAX reference (subtract-square cost matrix, same single-iteration semantics)
# ----------------------------------------------------------------------------
def _lse(m, axis):
    mx = jnp.max(m, axis=axis, keepdims=True)
    return jnp.log(jnp.sum(jnp.exp(m - mx), axis=axis)) + jnp.squeeze(mx, axis=axis)


def _ref_sinkhorn(a, b, epsilon=SINKHORN_EPS):
    h = a.shape[2]
    d = a[:, :, :, None, :] - b[:, :, None, :, :]        # [N, C, H, H, W]
    cm = jnp.sum(d * d, axis=-1)                         # [N, C, H, H]
    log_mu = jnp.log(1.0 / h + 1e-8)
    m0 = -cm / epsilon
    u = epsilon * (log_mu - _lse(m0, axis=-1))           # [N, C, H]
    m1 = (-cm + u[..., :, None]) / epsilon
    v = epsilon * (log_mu - _lse(m1, axis=-2))           # [N, C, H]
    pi = jnp.exp((-cm + u[..., :, None] + v[..., None, :]) / epsilon)
    return jnp.sum(pi * cm, axis=(-2, -1))               # [N, C]


def _ref_loss(x, y):
    wxy = _ref_sinkhorn(x, y)
    wxx = _ref_sinkhorn(x, x)
    wyy = _ref_sinkhorn(y, y)
    diff = 2.0 * wxy - wxx - wyy
    return jnp.sum(jnp.sqrt(diff * diff + CHARB_EPS))


if __name__ == "__main__":
    key = jax.random.PRNGKey(0)
    kx, ky = jax.random.split(key)
    n, c, h, w = 2, 4, 16, 16
    x = jax.random.normal(kx, (n, c, h, w), dtype=jnp.float32)
    y = jax.random.normal(ky, (n, c, h, w), dtype=jnp.float32)

    loss = jax.block_until_ready(l2_charbonnier_w_loss(x, y))
    ref = jax.block_until_ready(_ref_loss(x, y))

    assert jnp.isfinite(loss), f"non-finite loss: {loss}"
    rel = abs(float(loss) - float(ref)) / max(abs(float(ref)), 1.0)
    assert rel < 3e-2, f"mismatch: pallas={float(loss)} ref={float(ref)}"
    print("KERNEL_OK")
</pallas_src>

<mosaic_0001>
module attributes {stable_mosaic.version = 11 : i64} {
  func.func @_fused_w_charbonnier_kernel(%arg0: i32, %arg1: i32, %arg2: memref<1x4x16x16xf32, #tpu.memory_space<vmem>>, %arg3: memref<1x4x16x16xf32, #tpu.memory_space<vmem>>, %arg4: memref<1x4x1xf32, #tpu.memory_space<vmem>>) attributes {dimension_semantics = [#tpu.dimension_semantics<parallel>, #tpu.dimension_semantics<parallel>], iteration_bounds = array<i64: 2, 1>, scalar_prefetch = 0 : i64, scratch_operands = 0 : i64, tpu.core_type = #tpu.core_type<tc>, window_params = [{transform_indices = @transform_0, window_bounds = array<i64: 1, 4, 16, 16>}, {transform_indices = @transform_1, window_bounds = array<i64: 1, 4, 16, 16>}, {transform_indices = @transform_2, window_bounds = array<i64: 1, 4, 1>}]} {
    %c0 = arith.constant 0 : index
    %c0_0 = arith.constant 0 : index
    %c0_1 = arith.constant 0 : index
    %c0_2 = arith.constant 0 : index
    %0 = vector.load %arg2[%c0, %c0_0, %c0_1, %c0_2] : memref<1x4x16x16xf32, #tpu.memory_space<vmem>>, vector<1x4x16x16xf32>
    %1 = vector.shape_cast %0 : vector<1x4x16x16xf32> to vector<4x16x16xf32>
    %c0_3 = arith.constant 0 : index
    %c0_4 = arith.constant 0 : index
    %c0_5 = arith.constant 0 : index
    %c0_6 = arith.constant 0 : index
    %2 = vector.load %arg3[%c0_3, %c0_4, %c0_5, %c0_6] : memref<1x4x16x16xf32, #tpu.memory_space<vmem>>, vector<1x4x16x16xf32>
    %3 = vector.shape_cast %2 : vector<1x4x16x16xf32> to vector<4x16x16xf32>
    %4 = arith.mulf %1, %1 : vector<4x16x16xf32>
    %cst = arith.constant dense<0.000000e+00> : vector<4x16xf32>
    %5 = vector.multi_reduction <add>, %4, %cst [2] : vector<4x16x16xf32> to vector<4x16xf32>
    %6 = arith.mulf %3, %3 : vector<4x16x16xf32>
    %cst_7 = arith.constant dense<0.000000e+00> : vector<4x16xf32>
    %7 = vector.multi_reduction <add>, %6, %cst_7 [2] : vector<4x16x16xf32> to vector<4x16xf32>
    %8 = tpu.iota {dimensions = array<i32: 0>} : vector<16x16xi32>
    %9 = tpu.iota {dimensions = array<i32: 1>} : vector<16x16xi32>
    %10 = arith.cmpi eq, %8, %9 : vector<16x16xi32>
    "tpu.trace_start"() <{level = 10 : i32, message = "chw,cgw->chg"}> : () -> ()
    %cst_8 = arith.constant dense<0.000000e+00> : vector<4x16x16xf32>
    %11 = tpu.matmul %1, %3, %cst_8 {dimension_numbers = #tpu.dot_dimension_numbers<[2], [2], [1], [1], [0, 0, 0, 1, 1, 1], [0], [0]>, precision = #tpu.contract_precision<fp32>} : vector<4x16x16xf32>, vector<4x16x16xf32>, vector<4x16x16xf32> -> vector<4x16x16xf32>
    "tpu.trace_stop"() : () -> ()
    %12 = vector.shape_cast %5 : vector<4x16xf32> to vector<4x16x1xf32>
    %13 = vector.shape_cast %7 : vector<4x16xf32> to vector<4x1x16xf32>
    %14 = vector.broadcast %12 : vector<4x16x1xf32> to vector<4x16x16xf32>
    %15 = vector.broadcast %13 : vector<4x1x16xf32> to vector<4x16x16xf32>
    %16 = arith.addf %14, %15 : vector<4x16x16xf32>
    %cst_9 = arith.constant 2.000000e+00 : f32
    %17 = vector.broadcast %cst_9 : f32 to vector<4x16x16xf32>
    %18 = arith.mulf %17, %11 : vector<4x16x16xf32>
    %19 = arith.subf %16, %18 : vector<4x16x16xf32>
    %cst_10 = arith.constant 0.000000e+00 : f32
    %20 = vector.broadcast %cst_10 : f32 to vector<4x16x16xf32>
    %21 = arith.maximumf %19, %20 : vector<4x16x16xf32>
    %cst_11 = arith.constant 0.0625000075 : f32
    %22 = math.log %cst_11 : f32
    %cst_12 = arith.constant -1.000000e+02 : f32
    %23 = vector.broadcast %cst_12 : f32 to vector<4x16x16xf32>
    %24 = arith.mulf %21, %23 : vector<4x16x16xf32>
    %cst_13 = arith.constant dense<0xFF800000> : vector<4x16xf32>
    %25 = vector.multi_reduction <maximumf>, %24, %cst_13 [2] : vector<4x16x16xf32> to vector<4x16xf32>
    %26 = vector.shape_cast %25 : vector<4x16xf32> to vector<4x16x1xf32>
    %27 = vector.broadcast %26 : vector<4x16x1xf32> to vector<4x16x16xf32>
    %28 = arith.subf %24, %27 : vector<4x16x16xf32>
    %29 = math.exp %28 : vector<4x16x16xf32>
    %cst_14 = arith.constant dense<0.000000e+00> : vector<4x16xf32>
    %30 = vector.multi_reduction <add>, %29, %cst_14 [2] : vector<4x16x16xf32> to vector<4x16xf32>
    %31 = vector.shape_cast %30 : vector<4x16xf32> to vector<4x16x1xf32>
    %32 = math.log %31 : vector<4x16x1xf32>
    %33 = arith.addf %32, %26 : vector<4x16x1xf32>
    %34 = vector.broadcast %22 : f32 to vector<4x16x1xf32>
    %35 = arith.subf %34, %33 : vector<4x16x1xf32>
    %36 = vector.broadcast %35 : vector<4x16x1xf32> to vector<4x16x16xf32>
    %37 = arith.addf %24, %36 : vector<4x16x16xf32>
    %cst_15 = arith.constant dense<0xFF800000> : vector<4x16xf32>
    %38 = vector.multi_reduction <maximumf>, %37, %cst_15 [1] : vector<4x16x16xf32> to vector<4x16xf32>
    %39 = vector.shape_cast %38 : vector<4x16xf32> to vector<4x1x16xf32>
    %40 = vector.broadcast %39 : vector<4x1x16xf32> to vector<4x16x16xf32>
    %41 = arith.subf %37, %40 : vector<4x16x16xf32>
    %42 = math.exp %41 : vector<4x16x16xf32>
    %cst_16 = arith.constant dense<0.000000e+00> : vector<4x16xf32>
    %43 = vector.multi_reduction <add>, %42, %cst_16 [1] : vector<4x16x16xf32> to vector<4x16xf32>
    %44 = arith.mulf %42, %21 : vector<4x16x16xf32>
    %cst_17 = arith.constant dense<0.000000e+00> : vector<4x16xf32>
    %45 = vector.multi_reduction <add>, %44, %cst_17 [1] : vector<4x16x16xf32> to vector<4x16xf32>
    %46 = arith.divf %45, %43 : vector<4x16xf32>
    %cst_18 = arith.constant dense<0.000000e+00> : vector<4xf32>
    %47 = vector.multi_reduction <add>, %46, %cst_18 [1] : vector<4x16xf32> to vector<4xf32>
    %48 = vector.shape_cast %47 : vector<4xf32> to vector<4x1xf32>
    %cst_19 = arith.constant 0.0625000075 : f32
    %49 = vector.broadcast %cst_19 : f32 to vector<4x1xf32>
    %50 = arith.mulf %49, %48 : vector<4x1xf32>
    "tpu.trace_start"() <{level = 10 : i32, message = "chw,cgw->chg"}> : () -> ()
    %cst_20 = arith.constant dense<0.000000e+00> : vector<4x16x16xf32>
    %51 = tpu.matmul %1, %1, %cst_20 {dimension_numbers = #tpu.dot_dimension_numbers<[2], [2], [1], [1], [0, 0, 0, 1, 1, 1], [0], [0]>, precision = #tpu.contract_precision<fp32>} : vector<4x16x16xf32>, vector<4x16x16xf32>, vector<4x16x16xf32> -> vector<4x16x16xf32>
    "tpu.trace_stop"() : () -> ()
    %52 = vector.shape_cast %5 : vector<4x16xf32> to vector<4x16x1xf32>
    %53 = vector.shape_cast %5 : vector<4x16xf32> to vector<4x1x16xf32>
    %54 = vector.broadcast %52 : vector<4x16x1xf32> to vector<4x16x16xf32>
    %55 = vector.broadcast %53 : vector<4x1x16xf32> to vector<4x16x16xf32>
    %56 = arith.addf %54, %55 : vector<4x16x16xf32>
    %cst_21 = arith.constant 2.000000e+00 : f32
    %57 = vector.broadcast %cst_21 : f32 to vector<4x16x16xf32>
    %58 = arith.mulf %57, %51 : vector<4x16x16xf32>
    %59 = arith.subf %56, %58 : vector<4x16x16xf32>
    %cst_22 = arith.constant 0.000000e+00 : f32
    %60 = vector.broadcast %cst_22 : f32 to vector<4x16x16xf32>
    %61 = arith.maximumf %59, %60 : vector<4x16x16xf32>
    %62 = vector.shape_cast %10 : vector<16x16xi1> to vector<1x16x16xi1>
    %cst_23 = arith.constant 0.000000e+00 : f32
    %63 = vector.shape_cast %62 : vector<1x16x16xi1> to vector<1x16x16xi1>
    %64 = vector.broadcast %63 : vector<1x16x16xi1> to vector<4x16x16xi1>
    %65 = vector.broadcast %cst_23 : f32 to vector<4x16x16xf32>
    %66 = arith.select %64, %65, %61 : vector<4x16x16xi1>, vector<4x16x16xf32>
    %cst_24 = arith.constant 0.0625000075 : f32
    %67 = math.log %cst_24 : f32
    %cst_25 = arith.constant -1.000000e+02 : f32
    %68 = vector.broadcast %cst_25 : f32 to vector<4x16x16xf32>
    %69 = arith.mulf %66, %68 : vector<4x16x16xf32>
    %70 = math.exp %69 : vector<4x16x16xf32>
    %cst_26 = arith.constant dense<0.000000e+00> : vector<4x16xf32>
    %71 = vector.multi_reduction <add>, %70, %cst_26 [2] : vector<4x16x16xf32> to vector<4x16xf32>
    %72 = vector.shape_cast %71 : vector<4x16xf32> to vector<4x16x1xf32>
    %73 = math.log %72 : vector<4x16x1xf32>
    %74 = vector.broadcast %67 : f32 to vector<4x16x1xf32>
    %75 = arith.subf %74, %73 : vector<4x16x1xf32>
    %76 = vector.broadcast %75 : vector<4x16x1xf32> to vector<4x16x16xf32>
    %77 = arith.addf %69, %76 : vector<4x16x16xf32>
    %cst_27 = arith.constant dense<0xFF800000> : vector<4x16xf32>
    %78 = vector.multi_reduction <maximumf>, %77, %cst_27 [1] : vector<4x16x16xf32> to vector<4x16xf32>
    %79 = vector.shape_cast %78 : vector<4x16xf32> to vector<4x1x16xf32>
    %80 = vector.broadcast %79 : vector<4x1x16xf32> to vector<4x16x16xf32>
    %81 = arith.subf %77, %80 : vector<4x16x16xf32>
    %82 = math.exp %81 : vector<4x16x16xf32>
    %cst_28 = arith.constant dense<0.000000e+00> : vector<4x16xf32>
    %83 = vector.multi_reduction <add>, %82, %cst_28 [1] : vector<4x16x16xf32> to vector<4x16xf32>
    %84 = arith.mulf %82, %66 : vector<4x16x16xf32>
    %cst_29 = arith.constant dense<0.000000e+00> : vector<4x16xf32>
    %85 = vector.multi_reduction <add>, %84, %cst_29 [1] : vector<4x16x16xf32> to vector<4x16xf32>
    %86 = arith.divf %85, %83 : vector<4x16xf32>
    %cst_30 = arith.constant dense<0.000000e+00> : vector<4xf32>
    %87 = vector.multi_reduction <add>, %86, %cst_30 [1] : vector<4x16xf32> to vector<4xf32>
    %88 = vector.shape_cast %87 : vector<4xf32> to vector<4x1xf32>
    %cst_31 = arith.constant 0.0625000075 : f32
    %89 = vector.broadcast %cst_31 : f32 to vector<4x1xf32>
    %90 = arith.mulf %89, %88 : vector<4x1xf32>
    "tpu.trace_start"() <{level = 10 : i32, message = "chw,cgw->chg"}> : () -> ()
    %cst_32 = arith.constant dense<0.000000e+00> : vector<4x16x16xf32>
    %91 = tpu.matmul %3, %3, %cst_32 {dimension_numbers = #tpu.dot_dimension_numbers<[2], [2], [1], [1], [0, 0, 0, 1, 1, 1], [0], [0]>, precision = #tpu.contract_precision<fp32>} : vector<4x16x16xf32>, vector<4x16x16xf32>, vector<4x16x16xf32> -> vector<4x16x16xf32>
    "tpu.trace_stop"() : () -> ()
    %92 = vector.shape_cast %7 : vector<4x16xf32> to vector<4x16x1xf32>
    %93 = vector.shape_cast %7 : vector<4x16xf32> to vector<4x1x16xf32>
    %94 = vector.broadcast %92 : vector<4x16x1xf32> to vector<4x16x16xf32>
    %95 = vector.broadcast %93 : vector<4x1x16xf32> to vector<4x16x16xf32>
    %96 = arith.addf %94, %95 : vector<4x16x16xf32>
    %cst_33 = arith.constant 2.000000e+00 : f32
    %97 = vector.broadcast %cst_33 : f32 to vector<4x16x16xf32>
    %98 = arith.mulf %97, %91 : vector<4x16x16xf32>
    %99 = arith.subf %96, %98 : vector<4x16x16xf32>
    %cst_34 = arith.constant 0.000000e+00 : f32
    %100 = vector.broadcast %cst_34 : f32 to vector<4x16x16xf32>
    %101 = arith.maximumf %99, %100 : vector<4x16x16xf32>
    %102 = vector.shape_cast %10 : vector<16x16xi1> to vector<1x16x16xi1>
    %cst_35 = arith.constant 0.000000e+00 : f32
    %103 = vector.shape_cast %102 : vector<1x16x16xi1> to vector<1x16x16xi1>
    %104 = vector.broadcast %103 : vector<1x16x16xi1> to vector<4x16x16xi1>
    %105 = vector.broadcast %cst_35 : f32 to vector<4x16x16xf32>
    %106 = arith.select %104, %105, %101 : vector<4x16x16xi1>, vector<4x16x16xf32>
    %cst_36 = arith.constant 0.0625000075 : f32
    %107 = math.log %cst_36 : f32
    %cst_37 = arith.constant -1.000000e+02 : f32
    %108 = vector.broadcast %cst_37 : f32 to vector<4x16x16xf32>
    %109 = arith.mulf %106, %108 : vector<4x16x16xf32>
    %110 = math.exp %109 : vector<4x16x16xf32>
    %cst_38 = arith.constant dense<0.000000e+00> : vector<4x16xf32>
    %111 = vector.multi_reduction <add>, %110, %cst_38 [2] : vector<4x16x16xf32> to vector<4x16xf32>
    %112 = vector.shape_cast %111 : vector<4x16xf32> to vector<4x16x1xf32>
    %113 = math.log %112 : vector<4x16x1xf32>
    %114 = vector.broadcast %107 : f32 to vector<4x16x1xf32>
    %115 = arith.subf %114, %113 : vector<4x16x1xf32>
    %116 = vector.broadcast %115 : vector<4x16x1xf32> to vector<4x16x16xf32>
    %117 = arith.addf %109, %116 : vector<4x16x16xf32>
    %cst_39 = arith.constant dense<0xFF800000> : vector<4x16xf32>
    %118 = vector.multi_reduction <maximumf>, %117, %cst_39 [1] : vector<4x16x16xf32> to vector<4x16xf32>
    %119 = vector.shape_cast %118 : vector<4x16xf32> to vector<4x1x16xf32>
    %120 = vector.broadcast %119 : vector<4x1x16xf32> to vector<4x16x16xf32>
    %121 = arith.subf %117, %120 : vector<4x16x16xf32>
    %122 = math.exp %121 : vector<4x16x16xf32>
    %cst_40 = arith.constant dense<0.000000e+00> : vector<4x16xf32>
    %123 = vector.multi_reduction <add>, %122, %cst_40 [1] : vector<4x16x16xf32> to vector<4x16xf32>
    %124 = arith.mulf %122, %106 : vector<4x16x16xf32>
    %cst_41 = arith.constant dense<0.000000e+00> : vector<4x16xf32>
    %125 = vector.multi_reduction <add>, %124, %cst_41 [1] : vector<4x16x16xf32> to vector<4x16xf32>
    %126 = arith.divf %125, %123 : vector<4x16xf32>
    %cst_42 = arith.constant dense<0.000000e+00> : vector<4xf32>
    %127 = vector.multi_reduction <add>, %126, %cst_42 [1] : vector<4x16xf32> to vector<4xf32>
    %128 = vector.shape_cast %127 : vector<4xf32> to vector<4x1xf32>
    %cst_43 = arith.constant 0.0625000075 : f32
    %129 = vector.broadcast %cst_43 : f32 to vector<4x1xf32>
    %130 = arith.mulf %129, %128 : vector<4x1xf32>
    %cst_44 = arith.constant 2.000000e+00 : f32
    %131 = vector.broadcast %cst_44 : f32 to vector<4x1xf32>
    %132 = arith.mulf %131, %50 : vector<4x1xf32>
    %133 = arith.subf %132, %90 : vector<4x1xf32>
    %134 = arith.subf %133, %130 : vector<4x1xf32>
    %135 = arith.mulf %134, %134 : vector<4x1xf32>
    %cst_45 = arith.constant 9.99999997E-7 : f32
    %136 = vector.broadcast %cst_45 : f32 to vector<4x1xf32>
    %137 = arith.addf %135, %136 : vector<4x1xf32>
    %138 = math.sqrt %137 : vector<4x1xf32>
    %139 = vector.shape_cast %138 : vector<4x1xf32> to vector<1x4x1xf32>
    %c0_46 = arith.constant 0 : index
    %c0_47 = arith.constant 0 : index
    %c0_48 = arith.constant 0 : index
    %140 = vector.load %arg4[%c0_46, %c0_47, %c0_48] : memref<1x4x1xf32, #tpu.memory_space<vmem>>, vector<1x4x1xf32>
    tpu.vector_store %arg4[%c0_46, %c0_47, %c0_48], %139 {strides = array<i32>} : memref<1x4x1xf32, #tpu.memory_space<vmem>>, vector<1x4x1xf32>,
    return
  }
  func.func @transform_0(%arg0: i32, %arg1: i32) -> (i32, i32, i32, i32) {
    %c0_i32 = arith.constant 0 : i32
    %c0_i32_0 = arith.constant 0 : i32
    %c0_i32_1 = arith.constant 0 : i32
    return %arg0, %arg1, %c0_i32, %c0_i32_0 : i32, i32, i32, i32
  }
  func.func @transform_1(%arg0: i32, %arg1: i32) -> (i32, i32, i32, i32) {
    %c0_i32 = arith.constant 0 : i32
    %c0_i32_0 = arith.constant 0 : i32
    %c0_i32_1 = arith.constant 0 : i32
    return %arg0, %arg1, %c0_i32, %c0_i32_0 : i32, i32, i32, i32
  }
  func.func @transform_2(%arg0: i32, %arg1: i32) -> (i32, i32, i32) {
    %c0_i32 = arith.constant 0 : i32
    %c0_i32_0 = arith.constant 0 : i32
    return %arg0, %arg1, %c0_i32 : i32, i32, i32
  }
}

</mosaic_0001>

<bundles_post_ra>
// kernel: tpu_custom_call.1
= control target key start
LH: loop header
LB: loop body
LE: loop exit
PB: predicated region body
PF: predicated region fallthrough
CT: control target
= control target key end

     0   :  { %7 = vsyncpa [#allocation3], 0  ;;  %s10218_s0 = inlined_call_operand.hbm [shape: f32[2,4,16,16], index: 0, kind: input, shape index: {}]   ;;  %s10219_s1 = inlined_call_operand.hbm [shape: f32[2,4,16,16], index: 1, kind: input, shape index: {}]   ;;  %s10220_s2 = inlined_call_operand.vmem [shape: f32[2,4,1], index: 2, kind: output, shape index: {}]  }
   0x1   :  { %9 = vsyncpa [#allocation3 + $0x1], 0 }
   0x2   :  { %10 = vsyncpa [#allocation5], 0 }
   0x3   :  { %12 = vsyncpa [#allocation5 + $0x1], 0  ;;  %s8723_s9 = smov 0   ;;  %s8725_s10 = smov 0  }
   0x4   :  { %s8727_s11 = smov 0   ;;  %s8729_s12 = smov 0  }
   0x5   :  { %s8731_s13 = smov 0   ;;  %s8733_s14 = smov 0  }
   0x6 LB: > { %s7550_s15 = sadd.s32 4294967295, %s8702_s14   ;;  %s30_s16 = sadd.s32 1, %s8698_s13  ;;  %s8702_s14 = sphi %s8733_s14, %s18_s14   ;;  %s8698_s13 = sphi %s8731_s13, %s10299_s13   ;;  %s8694_s12 = sphi %s8729_s12, %s10298_s12   ;;  %s8690_s11 = sphi %s8727_s11, %s10297_s11   ;;  %s8686_s10 = sphi %s8725_s10, %s10296_s10   ;;  %s8682_s9 = sphi %s8723_s9, %s10295_s9  }
   0x7   : > { %p32_p0 = scmp.ge.s32.totalorder %s30_s16, 2  ;;  %s39_s17 = sadd.s32 1, %s8690_s11 }
   0x8   : > { %p46_p1 = scmp.ne.s32.totalorder %s8690_s11, %s8686_s10  ;;  %p47_p2 = scmp.eq.s32.totalorder %s8702_s14, 0 }
   0x9   : > { %s10301_s16 = smov (%p32_p0, %s30_s16), 0  ;;  %p52_p4 = scmp.ne.s32.totalorder %s8686_s10, %s8682_s9 }
   0xa   : > { %p8759_p3 = por %p47_p2, %p46_p1  ;;  %s34_s19 = ssub.s32 %s8698_s13, %s10301_s16 }
   0xb   : > { %p53_p5 = scmp.eq.s32.totalorder %s7550_s15, 0  ;;  %p37_p6 = scmp.eq.s32.totalorder %s34_s19, 0 }
   0xc   : > { %p8371_p8 = scmp.lt.s32.totalorder %s8702_s14, 2  ;;  %s8775_s22 = sand.u32 1, %s8690_s11  }
   0xd   : > { %p8766_p7 = por %p53_p5, %p52_p4  ;;  %s7566_s23 = sshll.u32 %s8698_s13, 10 }
   0xe   : > { %s8772_s21 = scalar_select %p37_p6, %s8690_s11, %s39_s17  }
   0xf   : > { %s7554_s24 = sshll.u32 %s8775_s22, 6  ;;  %s145_s27 = scalar_lea.hbm %s10218_s0, %s7566_s23 }
  0x10   : > { %s136_s28 = scalar_lea.vmem [#allocation2], %s7554_s24  ;;  %p8786_p9 = pnand %p8371_p8, %p8759_p3 }
  0x11   : > { %s146_s29 = sshll.u32 %s136_s28, 4  ;;  %s133_s3 = scalar_lea.sflag [#allocation3], %s8775_s22  ;;  %s147_s29 = int_to_ptr.vmem [resolvable:$true] %s146_s29 }
  0x12   : > { %p8594_p10 = pneg %p8786_p9  ;;  %s8605_s4 = scalar_lea.vmem %s147_s29, 1024 }
  0x13   : > { %p8606_p11 = scmp.ne.s32.totalorder %s147_s29, %s8605_s4  ;;  %s8704_s5 = smov [#allocation2]  }
  0x14   : > { %s8610_s6 = sshll.u32 %s8704_s5, 4  ;;  %s8611_s6 = int_to_ptr.vmem [resolvable:$false] %s8610_s6 }
  0x15   : > { %p8608_p12 = pnand %p8606_p11, %p8594_p10  ;;  %s8612_s7 = scalar_lea.vmem %s8611_s6, 2048 }
  0x16   : > { %p8613_p0 = scmp.lt.s32.totalorder %s147_s29, %s8611_s6  ;;  %p8614_p1 = scmp.lt.s32.totalorder %s8612_s7, %s8605_s4 }
  0x17   : > { %p8609_p13 = pneg %p8608_p12 }
  0x18   : > { %p8615_p2 = por %p8614_p1, %p8613_p0 }
  0x1a   : > { %p8616_p3 = pnand %p8615_p2, %p8609_p13 }
  0x1c   : > { %8619 = shalt.err (!%p8616_p3)
}
  0x1d   : > { %s8705_s8 = smov 128   ;;  %s8706_s9 = smov 8  }
  0x1e   : > { %8367 = dma.hbm_to_vmem [thread:$0]  (!%p8786_p9), %s145_s27, 1024, %s147_s29, %s133_s3, %s8705_s8, %s8705_s8, %s8706_s9  }
  0x1f   : > { %p7560_p4 = scmp.ge.s32.totalorder %s8702_s14, 1  ;;  %p178_p5 = scmp.lt.s32.totalorder %s8702_s14, 3 }
  0x20   : > { %s169_s19 = scalar_lea.hbm %s10219_s1, %s7566_s23  ;;  %s160_s25 = scalar_lea.vmem [#allocation4], %s7554_s24 }
  0x21   : > { %p8800_p6 = pnand %p7560_p4, %p178_p5  ;;  %s170_s26 = sshll.u32 %s160_s25, 4  ;;  %s171_s26 = int_to_ptr.vmem [resolvable:$true] %s170_s26 }
  0x22   : > { %s157_s28 = scalar_lea.sflag [#allocation5], %s8775_s22  ;;  %s8633_s4 = scalar_lea.vmem %s171_s26, 1024 }
  0x23   : > { %p8634_p8 = scmp.ne.s32.totalorder %s171_s26, %s8633_s4  ;;  %s8707_s27 = smov [#allocation4]  }
  0x24   : > { %s8638_s29 = sshll.u32 %s8707_s27, 4  ;;  %s8639_s29 = int_to_ptr.vmem [resolvable:$false] %s8638_s29 }
  0x25   : > { %p8636_p11 = pnand %p8634_p8, %p8594_p10  ;;  %s8640_s3 = scalar_lea.vmem %s8639_s29, 2048 }
  0x26   : > { %p8641_p13 = scmp.lt.s32.totalorder %s171_s26, %s8639_s29  ;;  %p8642_p0 = scmp.lt.s32.totalorder %s8640_s3, %s8633_s4 }
  0x27   : > { %p8637_p12 = pneg %p8636_p11 }
  0x28   : > { %p8643_p1 = por %p8642_p0, %p8641_p13 }
  0x2a   : > { %p8644_p2 = pnand %p8643_p1, %p8637_p12 }
  0x2c   : > { %8647 = shalt.err (!%p8644_p2)
}
  0x2d   : > { %8370 = dma.hbm_to_vmem [thread:$0]  (!%p8786_p9), %s169_s19, 1024, %s171_s26, %s157_s28, %s8705_s8, %s8705_s8, %s8706_s9  }
  0x2e   : > { %182 = sbr.rel (%p8800_p6) target bundleno = 970 (0x3ca), region = 28 }
  0x33   : > { %s184_s22 = sand.u32 1, %s8686_s10  }
  0x34   : > { %s7561_s23 = sshll.u32 %s184_s22, 6  ;;  %s185_s24 = scalar_lea.sflag [#allocation3], %s184_s22 }
  0x35   : > { %s8818_s5 = scalar_lea.vmem [#allocation2], %s7561_s23 }
  0x36   : > { %8673 = dma.done.wait (%p8766_p7), %s185_s24, 1024  }
  0x37   : > { %8675 = vsyncadd (%p8766_p7), %s185_s24, 4294966272  ;;  %s194_s6 = scalar_lea.sflag [#allocation5], %s184_s22  ;;  %s8824_s7 = scalar_lea.vmem [#allocation4], %s7561_s23 }
  0x38   : > { %8677 = dma.done.wait (%p8766_p7), %s194_s6, 1024  }
  0x39   : > { %8679 = vsyncadd (%p8766_p7), %s194_s6, 4294966272  ;;  %vm258_vm0 = vcmask 130048   ;;  %v8831_v0 = vld [vmem:[%s8824_s7 + $0x8] sm:$0xff]  ;;  %v242_v1 = vld [vmem:[%s8824_s7] sm:$0xff]  ;;  %vm2395_vm1 = vcmask 130112   ;;  %vm2424_vm4 = vcmask 1041409  }
  0x3a   : > { %v8835_v2 = vld [vmem:[%s8818_s5] sm:$0xff]  ;;  %v332_v3 = vsel %vm258_vm0, %v8831_v0, 0  ;;  %v329_v4 = vsel %vm258_vm0, %v242_v1, 0  ;;  %v8843_v6 = vld [vmem:[%s8818_s5 + $0x8] sm:$0xff]  ;;  %v8881_v19 = vld [vmem:[%s8818_s5 + $0x10] sm:$0xff]  ;;  %v283_v35 = vmul.f32 %v242_v1, %v242_v1  ;;  %v284_v47 = vmul.f32 %v8831_v0, %v8831_v0  ;;  %p227_p7 = scmp.lt.s32.totalorder %s8694_s12, 1 }
  0x3b   : > { %v323_v5 = vsel %vm258_vm0, %v8835_v2, 0  ;;  %v8845_v7 = vand.u32 4294901760, %v332_v3  ;;  %v8847_v8 = vand.u32 4294901760, %v329_v4  ;;  %v326_v10 = vsel %vm258_vm0, %v8843_v6, 0  ;;  %v245_v24 = vld [vmem:[%s8824_s7 + $0x18] sm:$0xff]  ;;  %v244_v33 = vld [vmem:[%s8824_s7 + $0x10] sm:$0xff] }
  0x3c   : > { %v8849_v9 = vand.u32 4294901760, %v323_v5  ;;  %v8853_v11 = vand.u32 4294901760, %v326_v10  ;;  %v837_v26 = vsel %vm258_vm0, %v8881_v19, 0  ;;  %v846_v31 = vsel %vm258_vm0, %v245_v24, 0  ;;  %v8909_v32 = vld [vmem:[%s8818_s5 + $0x18] sm:$0xff]  ;;  %v247_v49 = vld [vmem:[%s8824_s7 + $0x28] sm:$0xff] }
  0x3d   : > { %7856 = vmatprep.subr.mxu0 %v8845_v7  ;;  %v8857_v12 = vsub.f32 %v332_v3, %v8845_v7  ;;  %v8863_v14 = vsub.f32 %v329_v4, %v8847_v8  ;;  %v8914_v34 = vand.u32 4294901760, %v837_v26  ;;  %v8920_v36 = vand.u32 4294901760, %v846_v31  ;;  %v246_v57 = vld [vmem:[%s8824_s7 + $0x20] sm:$0xff]  ;;  %v8976_v59 = vld [vmem:[%s8824_s7 + $0x38] sm:$0xff]  ;;  %v8993_v3 = vld [vmem:[%s8824_s7 + $0x30] sm:$0xff]  ;;  %s10303_s12 = smov (!%p227_p7, %s8694_s12), 1 }
  0x3e   : > { %v8860_v13 = vsub.f32 %v323_v5, %v8849_v9  ;;  %7867 = vmatprep.mubr.f32.mxu1 %v8849_v9  ;;  %7857 = vmatpush3.xpose.msra.mxu0 %v8845_v7  ;;  %v8868_v15 = vsub.f32 %v326_v10, %v8853_v11  ;;  %v840_v37 = vsel %vm258_vm0, %v8909_v32, 0  ;;  %v285_v38 = vmul.f32 %v244_v33, %v244_v33  ;;  %s7563_s20 = sshll.u32 %s10303_s12, 2 }
  0x3f   : > { %7858 = vmatprep.subr.mxu0 %v8847_v8  ;;  %v8872_v16 = vand.u32 4294901760, %v8857_v12  ;;  %v8878_v18 = vand.u32 4294901760, %v8863_v14  ;;  %v843_v39 = vsel %vm258_vm0, %v244_v33, 0  ;;  %v8928_v40 = vsub.f32 %v837_v26, %v8914_v34  ;;  %s233_s9 = scalar_lea.vmem %s10220_s2, %s7563_s20 }
  0x40   : > { %v8875_v17 = vand.u32 4294901760, %v8860_v13  ;;  %v8884_v20 = vand.u32 4294901760, %v8868_v15  ;;  %v297_v41 = vsel %vm258_vm0, %v285_v38, 0.0  ;;  %v8932_v42 = vand.u32 4294901760, %v840_v37 }
  0x41   : > { %v453_v21 = vsub.f32 %v8857_v12, %v8872_v16  ;;  %v460_v23 = vsub.f32 %v8863_v14, %v8878_v18  ;;  %298 = vadd.xlane.f32.xlu1 %v297_v41  ;;  %v291_v43 = vsel %vm258_vm0, %v283_v35, 0.0  ;;  %v286_v44 = vmul.f32 %v245_v24, %v245_v24 }
  0x42   : > { %v404_v22 = vsub.f32 %v8860_v13, %v8875_v17  ;;  %7859 = vmatpush3.xpose.msra.mxu0 %v8847_v8  ;;  %v414_v25 = vsub.f32 %v8868_v15, %v8884_v20  ;;  %v8937_v45 = vand.u32 4294901760, %v843_v39  ;;  %v8940_v46 = vsub.f32 %v846_v31, %v8920_v36  ;;  %292 = vadd.xlane.f32.xlu0 %v291_v43 }
  0x43   : > { %v8898_v27 = vand.u32 4294901760, %v453_v21  ;;  %7870 = vmatprep.subr.mxu0 %v8857_v12  ;;  %v8903_v29 = vand.u32 4294901760, %v460_v23  ;;  %v8947_v48 = vand.u32 4294901760, %v8928_v40  ;;  %v8953_v50 = vsub.f32 %v840_v37, %v8932_v42  ;;  %v238_v23 = vld [vmem:[%s8818_s5 + $0x20] sm:$0xff] }
  0x44   : > { %v8900_v28 = vand.u32 4294901760, %v404_v22  ;;  %v8905_v30 = vand.u32 4294901760, %v414_v25  ;;  %v300_v51 = vsel %vm258_vm0, %v286_v44, 0.0  ;;  %v288_v52 = vmul.f32 %v247_v49, %v247_v49 }
  0x45   : > { %7863 = vmatprep.subr.mxu1 %v8898_v27  ;;  %v8959_v53 = vand.u32 4294901760, %v8940_v46  ;;  %v8962_v54 = vsub.f32 %v843_v39, %v8937_v45  ;;  %v294_v55 = vsel %vm258_vm0, %v284_v47, 0.0  ;;  %v918_v56 = vsub.f32 %v8928_v40, %v8947_v48  ;;  %301 = vadd.xlane.f32.xlu1 %v300_v51  ;;  %v239_v39 = vld [vmem:[%s8818_s5 + $0x28] sm:$0xff] }
  0x46   : > { %7860 = vmatprep.mubr.f32.mxu0 %v8900_v28  ;;  %7864 = vmatpush3.xpose.msra.mxu1 %v8898_v27  ;;  %v8973_v58 = vand.u32 4294901760, %v8953_v50  ;;  %v306_v60 = vsel %vm258_vm0, %v288_v52, 0.0  ;;  %v287_v61 = vmul.f32 %v246_v57, %v246_v57  ;;  %v290_v0 = vmul.f32 %v8976_v59, %v8976_v59 }
  0x47   : > { %7861 = vmatmul.mubr.f32.vlgmr.msra.gmra.mxu0 %v8905_v30  ;;  %7865 = vmatprep.subr.mxu1 %v8903_v29  ;;  %v967_v62 = vsub.f32 %v8940_v46, %v8959_v53  ;;  %v8984_v63 = vand.u32 4294901760, %v8962_v54  ;;  %v8990_v1 = vand.u32 4294901760, %v918_v56  ;;  %v289_v10 = vmul.f32 %v8993_v3, %v8993_v3 }
  0x48   : > { %7871 = vmatpush3.xpose.msra.mxu0 %v8857_v12  ;;  %7874 = vmatprep.mubr.f32.mxu0 %v8860_v13  ;;  %v928_v4 = vsub.f32 %v8953_v50, %v8973_v58  ;;  %v303_v5 = vsel %vm258_vm0, %v287_v61, 0.0  ;;  %v312_v24 = vsel %vm258_vm0, %v290_v0, 0.0  ;;  %v1351_v26 = vsel %vm258_vm0, %v238_v23, 0 }
  0x49   : > { %7872 = vmatprep.subr.mxu0 %v8863_v14  ;;  %295 = vadd.xlane.f32.xlu0 %v294_v55  ;;  %v9004_v21 = vand.u32 4294901760, %v967_v62  ;;  %v974_v22 = vsub.f32 %v8962_v54, %v8984_v63  ;;  %v309_v31 = vsel %vm258_vm0, %v289_v10, 0.0  ;;  %v251_v33 = vmul.f32 %v8843_v6, %v8843_v6 }
  0x4a   : > { %7866 = vmatpush3.xpose.msra.mxu1 %v8903_v29  ;;  %307 = vadd.xlane.f32.xlu1 %v306_v60  ;;  %v9014_v25 = vand.u32 4294901760, %v928_v4  ;;  %v250_v37 = vmul.f32 %v8835_v2, %v8835_v2  ;;  %v1360_v38 = vsel %vm258_vm0, %v247_v49, 0  ;;  %v9030_v41 = vand.u32 4294901760, %v1351_v26 }
  0x4b   : > { %7877 = vmatprep.subr.mxu1 %v8845_v7  ;;  %v9022_v35 = vand.u32 4294901760, %v974_v22  ;;  %v262_v6 = vsel %vm258_vm0, %v251_v33, 0.0  ;;  %v253_v43 = vmul.f32 %v8909_v32, %v8909_v32  ;;  %v9039_v2 = vand.u32 4294901760, %v1360_v38 }
  0x4c   : > { %7873 = vmatpush3.xpose.msra.mxu0 %v8863_v14  ;;  %v1354_v44 = vsel %vm258_vm0, %v239_v39, 0  ;;  %v259_v47 = vsel %vm258_vm0, %v250_v37, 0.0  ;;  %v1357_v49 = vsel %vm258_vm0, %v246_v57, 0  ;;  %v9048_v32 = vsub.f32 %v1351_v26, %v9030_v41  ;;  %v240_v26 = vld [vmem:[%s8818_s5 + $0x30] sm:$0xff] }
  0x4d   : > { %7884 = vmatprep.subr.mxu0 %v8872_v16  ;;  %7868 = vmatmul.mubr.f32.vlgmr.msra.gmra.mxu1 %v8853_v11  ;;  %v9051_v51 = vand.u32 4294901760, %v1354_v44  ;;  %v268_v52 = vsel %vm258_vm0, %v253_v43, 0.0  ;;  %v252_v55 = vmul.f32 %v8881_v19, %v8881_v19  ;;  %v9058_v56 = vand.u32 4294901760, %v1357_v49 }
  0x4e   : > { %7878 = vmatpush3.xpose.msra.mxu1 %v8845_v7  ;;  %7881 = vmatprep.mubr.f32.mxu1 %v8875_v17  ;;  %v9061_v57 = vsub.f32 %v1360_v38, %v9039_v2  ;;  %v255_v60 = vmul.f32 %v239_v39, %v239_v39  ;;  %v9066_v61 = vand.u32 4294901760, %v9048_v32  ;;  %v254_v0 = vmul.f32 %v238_v23, %v238_v23  ;;  %v241_v23 = vld [vmem:[%s8818_s5 + $0x38] sm:$0xff] }
  0x4f   : > { %7875 = vmatmul.mubr.f32.vlgmr.msra.gmra.mxu0 %v8868_v15  ;;  %7879 = vmatprep.subr.mxu1 %v8847_v8  ;;  %v9071_v19 = vsub.f32 %v1354_v44, %v9051_v51  ;;  %v265_v62 = vsel %vm258_vm0, %v252_v55, 0.0  ;;  %v257_v33 = vmul.f32 %v241_v23, %v241_v23  ;;  %v256_v39 = vmul.f32 %v240_v26, %v240_v26 }
  0x50   : > { %7885 = vmatpush3.xpose.msra.mxu0 %v8872_v16  ;;  %7888 = vmatprep.mubr.f32.mxu0 %v8849_v9  ;;  %v9077_v4 = vand.u32 4294901760, %v9061_v57  ;;  %v274_v10 = vsel %vm258_vm0, %v255_v60, 0.0  ;;  %v1432_v22 = vsub.f32 %v9048_v32, %v9066_v61  ;;  %v1865_v60 = vsel %vm258_vm0, %v240_v26, 0 }
  0x51   : > { %7886 = vmatprep.subr.mxu0 %v8878_v18  ;;  %304 = vadd.xlane.f32.xlu0 %v303_v5  ;;  %v9080_v5 = vsub.f32 %v1357_v49, %v9058_v56  ;;  %v280_v44 = vsel %vm258_vm0, %v257_v33, 0.0  ;;  %v1868_v26 = vsel %vm258_vm0, %v241_v23, 0  ;;  %vm2425_vm5 = vcmask 1042434  }
  0x52   : > { %7880 = vmatpush3.xpose.msra.mxu1 %v8847_v8  ;;  %313 = vadd.xlane.f32.xlu1 %v312_v24  ;;  %10247 = vst [vmem:[#allocation8_spill] sm:$0xff] %v9077_v4  ;;  %v9091_v24 = vand.u32 4294901760, %v9071_v19  ;;  %v1481_v37 = vsub.f32 %v9061_v57, %v9077_v4  ;;  %v9151_v33 = vand.u32 4294901760, %v1868_v26  ;;  %vm2427_vm6 = vcmask 1043459  }
  0x53   : > { %7891 = vmatprep.subr.mxu1 %v8845_v7  ;;  %10248 = vst [vmem:[#allocation9_spill] sm:$0xff] %v9080_v5  ;;  %v9100_v38 = vand.u32 4294901760, %v9080_v5  ;;  %vm2767_vm7 = vcmask 125952   ;;  %vm7436_vm8 = vcmask 3072  }
  0x54   : > { %7887 = vmatpush3.xpose.msra.mxu0 %v8878_v18  ;;  %v1442_v43 = vsub.f32 %v9071_v19, %v9091_v24 }
  0x55   : > { %7898 = vmatprep.subr.mxu0 %v8920_v36  ;;  %7882 = vmatmul.mubr.f32.vlgmr.msra.gmra.mxu1 %v8884_v20  ;;  %10249 = vst [vmem:[#allocation10_spill] sm:$0xff] %v9100_v38  ;;  %v1488_v49 = vsub.f32 %v9080_v5, %v9100_v38 }
  0x56   : > { %7892 = vmatpush3.xpose.msra.mxu1 %v8845_v7  ;;  %7895 = vmatprep.mubr.f32.mxu1 %v8849_v9  ;;  %v9122_v55 = vand.u32 4294901760, %v1442_v43 }
  0x57   : > { %7889 = vmatmul.mubr.f32.vlgmr.msra.gmra.mxu0 %v8853_v11  ;;  %7893 = vmatprep.subr.mxu1 %v8847_v8 }
  0x58   : > { %7899 = vmatpush3.xpose.msra.mxu0 %v8920_v36  ;;  %7902 = vmatprep.mubr.f32.mxu0 %v8990_v1 }
  0x59   : > { %7900 = vmatprep.subr.mxu0 %v8937_v45  ;;  %310 = vadd.xlane.f32.xlu0 %v309_v31  ;;  %v271_v31 = vsel %vm258_vm0, %v254_v0, 0.0  ;;  %v1874_v0 = vsel %vm258_vm0, %v8976_v59, 0  ;;  %v1871_v59 = vsel %vm258_vm0, %v8993_v3, 0 }
  0x5a   : > { %7894 = vmatpush3.xpose.msra.mxu1 %v8847_v8  ;;  %263 = vadd.xlane.f32.xlu1 %v262_v6  ;;  %v9104_v6 = vand.u32 4294901760, %v1432_v22  ;;  %v9139_v22 = vand.u32 4294901760, %v1874_v0  ;;  %v9155_v23 = vand.u32 4294901760, %v1871_v59 }
  0x5b   : > { %7905 = vmatprep.subr.mxu1 %v9004_v21 }
  0x5c   : > { %7901 = vmatpush3.xpose.msra.mxu0 %v8937_v45 }
  0x5d   : > { %7912 = vmatprep.subr.mxu0 %v8940_v46  ;;  %7896 = vmatmul.mubr.f32.vlgmr.msra.gmra.mxu1 %v8853_v11 }
  0x5e   : > { %7906 = vmatpush3.xpose.msra.mxu1 %v9004_v21  ;;  %7909 = vmatprep.mubr.f32.mxu1 %v8914_v34 }
  0x5f   : > { %7903 = vmatmul.mubr.f32.vlgmr.msra.gmra.mxu0 %v9014_v25  ;;  %7907 = vmatprep.subr.mxu1 %v9022_v35 }
  0x60   : > { %7913 = vmatpush3.xpose.msra.mxu0 %v8940_v46  ;;  %7916 = vmatprep.mubr.f32.mxu0 %v8928_v40 }
  0x61   : > { %7914 = vmatprep.subr.mxu0 %v8962_v54  ;;  %260 = vadd.xlane.f32.xlu0 %v259_v47  ;;  %v9113_v47 = vand.u32 4294901760, %v1481_v37  ;;  %v9158_v37 = vsub.f32 %v1874_v0, %v9139_v22 }
  0x62   : > { %7908 = vmatpush3.xpose.msra.mxu1 %v9022_v35  ;;  %269 = vadd.xlane.f32.xlu1 %v268_v52  ;;  %v277_v52 = vsel %vm258_vm0, %v256_v39, 0.0  ;;  %v9168_v39 = vsub.f32 %v1868_v26, %v9151_v33 }
  0x63   : > { %7919 = vmatprep.subr.mxu1 %v8920_v36  ;;  %v9173_v43 = vand.u32 4294901760, %v9158_v37 }
  0x64   : > { %7915 = vmatpush3.xpose.msra.mxu0 %v8962_v54 }
  0x65   : > { %7926 = vmatprep.subr.mxu0 %v8959_v53  ;;  %7910 = vmatmul.mubr.f32.vlgmr.msra.gmra.mxu1 %v8932_v42 }
  0x66   : > { %7920 = vmatpush3.xpose.msra.mxu1 %v8920_v36  ;;  %7923 = vmatprep.mubr.f32.mxu1 %v8947_v48 }
  0x67   : > { %7917 = vmatmul.mubr.f32.vlgmr.msra.gmra.mxu0 %v8953_v50  ;;  %7921 = vmatprep.subr.mxu1 %v8937_v45 }
  0x68   : > { %7927 = vmatpush3.xpose.msra.mxu0 %v8959_v53  ;;  %7930 = vmatprep.mubr.f32.mxu0 %v8914_v34 }
  0x69   : > { %7928 = vmatprep.subr.mxu0 %v8984_v63  ;;  %266 = vadd.xlane.f32.xlu0 %v265_v62  ;;  %v9127_v62 = vand.u32 4294901760, %v1488_v49 }
  0x6a   : > { %7922 = vmatpush3.xpose.msra.mxu1 %v8937_v45  ;;  %275 = vadd.xlane.f32.xlu1 %v274_v10  ;;  %v9133_v10 = vand.u32 4294901760, %v1865_v60 }
  0x6b   : > { %7933 = vmatprep.subr.mxu1 %v8920_v36 }
  0x6c   : > { %7929 = vmatpush3.xpose.msra.mxu0 %v8984_v63 }
  0x6d   : > { %7940 = vmatprep.subr.mxu0 %v9039_v2  ;;  %7924 = vmatmul.mubr.f32.vlgmr.msra.gmra.mxu1 %v8973_v58 }
  0x6e   : > { %272 = vadd.xlane.f32.xlu0 %v271_v31  ;;  %7934 = vmatpush3.xpose.msra.mxu1 %v8920_v36  ;;  %v9148_v31 = vsub.f32 %v1865_v60, %v9133_v10  ;;  %v1995_v60 = vsub.f32 %v9158_v37, %v9173_v43 }
  0x6f   : > { %7931 = vmatmul.mubr.f32.vlgmr.msra.gmra.mxu0 %v8932_v42  ;;  %7935 = vmatprep.subr.mxu1 %v8937_v45 }
  0x70   : > { %7941 = vmatpush3.xpose.msra.mxu0 %v9039_v2  ;;  %7937 = vmatprep.mubr.f32.mxu1 %v8914_v34  ;;  %v9163_v3 = vand.u32 4294901760, %v9148_v31 }
  0x71   : > { %7942 = vmatprep.subr.mxu0 %v9058_v56  ;;  %7944 = vmatprep.mubr.f32.mxu0 %v9104_v6 }
  0x72   : > { %281 = vadd.xlane.f32.xlu1 %v280_v44  ;;  %7936 = vmatpush3.xpose.msra.mxu1 %v8937_v45  ;;  %v9176_v44 = vsub.f32 %v1871_v59, %v9155_v23  ;;  %v1946_v49 = vsub.f32 %v9148_v31, %v9163_v3 }
  0x73   : > { %278 = vadd.xlane.f32.xlu0 %v277_v52  ;;  %7947 = vmatprep.subr.mxu1 %v9113_v47  ;;  %v9185_v52 = vand.u32 4294901760, %v9168_v39 }
  0x74   : > { %7943 = vmatpush3.xpose.msra.mxu0 %v9058_v56  ;;  %v9192_v0 = vand.u32 4294901760, %v9176_v44  ;;  %v9196_v26 = vand.u32 4294901760, %v1946_v49 }
  0x75   : > { %7954 = vmatprep.subr.mxu0 %v9061_v57  ;;  %7938 = vmatmul.mubr.f32.vlgmr.msra.gmra.mxu1 %v8932_v42  ;;  %v1956_v59 = vsub.f32 %v9168_v39, %v9185_v52 }
  0x76   : > { %7948 = vmatpush3.xpose.msra.mxu1 %v9113_v47  ;;  %7951 = vmatprep.mubr.f32.mxu1 %v9030_v41 }
  0x77   : > { %7945 = vmatmul.mubr.f32.vlgmr.msra.gmra.mxu0 %v9122_v55  ;;  %7949 = vmatprep.subr.mxu1 %v9127_v62  ;;  %v9212_v49 = vand.u32 4294901760, %v1956_v59 }
  0x78   : > { %7955 = vmatpush3.xpose.msra.mxu0 %v9061_v57  ;;  %7958 = vmatprep.mubr.f32.mxu0 %v9048_v32 }
  0x79   : > { %7956 = vmatprep.subr.mxu0 %v9080_v5 }
  0x7a   : > { %7950 = vmatpush3.xpose.msra.mxu1 %v9127_v62 }
  0x7b   : > { %7961 = vmatprep.subr.mxu1 %v9039_v2 }
  0x7c   : > { %7957 = vmatpush3.xpose.msra.mxu0 %v9080_v5 }
  0x7d   : > { %7968 = vmatprep.subr.mxu0 %v9077_v4  ;;  %7952 = vmatmul.mubr.f32.vlgmr.msra.gmra.mxu1 %v9051_v51 }
  0x7e   : > { %7962 = vmatpush3.xpose.msra.mxu1 %v9039_v2  ;;  %7965 = vmatprep.mubr.f32.mxu1 %v9066_v61 }
  0x7f   : > { %7959 = vmatmul.mubr.f32.vlgmr.msra.gmra.mxu0 %v9071_v19  ;;  %7963 = vmatprep.subr.mxu1 %v9058_v56 }
  0x80   : > { %7969 = vmatpush3.xpose.msra.mxu0 %v9077_v4  ;;  %7972 = vmatprep.mubr.f32.mxu0 %v9030_v41  ;;  %v2002_v4 = vsub.f32 %v9176_v44, %v9192_v0 }
  0x81   : > { %7970 = vmatprep.subr.mxu0 %v9100_v38 }
  0x82   : > { %7964 = vmatpush3.xpose.msra.mxu1 %v9058_v56  ;;  %v9216_v5 = vand.u32 4294901760, %v2002_v4 }
  0x83   : > { %7975 = vmatprep.subr.mxu1 %v9039_v2 }
  0x84   : > { %7971 = vmatpush3.xpose.msra.mxu0 %v9100_v38  ;;  %v9204_v38 = vand.u32 4294901760, %v1995_v60 }
  0x85   : > { %7982 = vmatprep.subr.mxu0 %v9139_v22  ;;  %7966 = vmatmul.mubr.f32.vlgmr.msra.gmra.mxu1 %v9091_v24 }
  0x86   : > { %7976 = vmatpush3.xpose.msra.mxu1 %v9039_v2  ;;  %7979 = vmatprep.mubr.f32.mxu1 %v9030_v41 }
  0x87   : > { %7973 = vmatmul.mubr.f32.vlgmr.msra.gmra.mxu0 %v9051_v51  ;;  %7977 = vmatprep.subr.mxu1 %v9058_v56 }
  0x88   : > { %7983 = vmatpush3.xpose.msra.mxu0 %v9139_v22  ;;  %7986 = vmatprep.mubr.f32.mxu0 %v9196_v26 }
  0x89   : > { %7984 = vmatprep.subr.mxu0 %v9155_v23 }
  0x8a   : > { %7978 = vmatpush3.xpose.msra.mxu1 %v9058_v56 }
  0x8b   : > { %7989 = vmatprep.subr.mxu1 %v9204_v38 }
  0x8c   : > { %7985 = vmatpush3.xpose.msra.mxu0 %v9155_v23 }
  0x8d   : > { %7996 = vmatprep.subr.mxu0 %v9158_v37  ;;  %7980 = vmatmul.mubr.f32.vlgmr.msra.gmra.mxu1 %v9051_v51 }
  0x8e   : > { %7990 = vmatpush3.xpose.msra.mxu1 %v9204_v38  ;;  %7993 = vmatprep.mubr.f32.mxu1 %v9133_v10 }
  0x8f   : > { %7987 = vmatmul.mubr.f32.vlgmr.msra.gmra.mxu0 %v9212_v49  ;;  %7991 = vmatprep.subr.mxu1 %v9216_v5 }
  0x90   : > { %7997 = vmatpush3.xpose.msra.mxu0 %v9158_v37  ;;  %8000 = vmatprep.mubr.f32.mxu0 %v9148_v31 }
  0x91   : > { %7998 = vmatprep.subr.mxu0 %v9176_v44 }
  0x92   : > { %7992 = vmatpush3.xpose.msra.mxu1 %v9216_v5 }
  0x93   : > { %8003 = vmatprep.subr.mxu1 %v9139_v22 }
  0x94   : > { %7999 = vmatpush3.xpose.msra.mxu0 %v9176_v44 }
  0x95   : > { %8010 = vmatprep.subr.mxu0 %v9173_v43  ;;  %7994 = vmatmul.mubr.f32.vlgmr.msra.gmra.mxu1 %v9151_v33 }
  0x96   : > { %8004 = vmatpush3.xpose.msra.mxu1 %v9139_v22  ;;  %8007 = vmatprep.mubr.f32.mxu1 %v9163_v3 }
  0x97   : > { %8001 = vmatmul.mubr.f32.vlgmr.msra.gmra.mxu0 %v9168_v39  ;;  %8005 = vmatprep.subr.mxu1 %v9155_v23 }
  0x98   : > { %8011 = vmatpush3.xpose.msra.mxu0 %v9173_v43  ;;  %8014 = vmatprep.mubr.f32.mxu0 %v9133_v10 }
  0x99   : > { %8012 = vmatprep.subr.mxu0 %v9192_v0 }
  0x9a   : > { %8006 = vmatpush3.xpose.msra.mxu1 %v9155_v23 }
  0x9b   : > { %8017 = vmatprep.subr.mxu1 %v9139_v22 }
  0x9c   : > { %8013 = vmatpush3.xpose.msra.mxu0 %v9192_v0 }
  0x9d   : > { %8024 = vmatprep.subr.mxu0 %v8853_v11  ;;  %8008 = vmatmul.mubr.f32.vlgmr.msra.gmra.mxu1 %v9185_v52 }
  0x9e   : > { %8018 = vmatpush3.xpose.msra.mxu1 %v9139_v22  ;;  %8021 = vmatprep.mubr.f32.mxu1 %v9133_v10 }
  0x9f   : > { %8015 = vmatmul.mubr.f32.vlgmr.msra.gmra.mxu0 %v9151_v33  ;;  %8019 = vmatprep.subr.mxu1 %v9155_v23 }
  0xa0   : > { %8025 = vmatpush3.xpose.msra.mxu0 %v8853_v11  ;;  %8028 = vmatprep.mubr.f32.mxu0 %v8900_v28 }
  0xa1   : > { %8026 = vmatprep.subr.mxu0 %v8849_v9 }
  0xa2   : > { %8020 = vmatpush3.xpose.msra.mxu1 %v9155_v23 }
  0xa3   : > { %8031 = vmatprep.subr.mxu1 %v8905_v30 }
  0xa4   : > { %8027 = vmatpush3.xpose.msra.mxu0 %v8849_v9 }
  0xa5   : > { %8038 = vmatprep.subr.mxu0 %v8868_v15  ;;  %8022 = vmatmul.mubr.f32.vlgmr.msra.gmra.mxu1 %v9151_v33 }
  0xa6   : > { %8032 = vmatpush3.xpose.msra.mxu1 %v8905_v30  ;;  %8035 = vmatprep.mubr.f32.mxu1 %v8849_v9 }
  0xa7   : > { %8029 = vmatmul.mubr.f32.vlgmr.msra.gmra.mxu0 %v8905_v30  ;;  %8033 = vmatprep.subr.mxu1 %v8900_v28 }
  0xa8   : > { %8039 = vmatpush3.xpose.msra.mxu0 %v8868_v15  ;;  %8042 = vmatprep.mubr.f32.mxu0 %v8860_v13 }
  0xa9   : > { %8040 = vmatprep.subr.mxu0 %v8860_v13 }
  0xaa   : > { %8034 = vmatpush3.xpose.msra.mxu1 %v8900_v28 }
  0xab   : > { %8045 = vmatprep.subr.mxu1 %v8853_v11 }
  0xac   : > { %8041 = vmatpush3.xpose.msra.mxu0 %v8860_v13 }
  0xad   : > { %8052 = vmatprep.subr.mxu0 %v8884_v20  ;;  %8036 = vmatmul.mubr.f32.vlgmr.msra.gmra.mxu1 %v8853_v11 }
  0xae   : > { %8046 = vmatpush3.xpose.msra.mxu1 %v8853_v11  ;;  %8049 = vmatprep.mubr.f32.mxu1 %v8875_v17 }
  0xaf   : > { %8043 = vmatmul.mubr.f32.vlgmr.msra.gmra.mxu0 %v8868_v15  ;;  %8047 = vmatprep.subr.mxu1 %v8849_v9 }
  0xb0   : > { %8053 = vmatpush3.xpose.msra.mxu0 %v8884_v20  ;;  %8056 = vmatprep.mubr.f32.mxu0 %v8849_v9 }
  0xb1   : > { %8054 = vmatprep.subr.mxu0 %v8875_v17 }
  0xb2   : > { %8048 = vmatpush3.xpose.msra.mxu1 %v8849_v9 }
  0xb3   : > { %8059 = vmatprep.subr.mxu1 %v8853_v11 }
  0xb4   : > { %8055 = vmatpush3.xpose.msra.mxu0 %v8875_v17 }
  0xb5   : > { %8066 = vmatprep.subr.mxu0 %v8932_v42  ;;  %8050 = vmatmul.mubr.f32.vlgmr.msra.gmra.mxu1 %v8884_v20 }
  0xb6   : > { %8060 = vmatpush3.xpose.msra.mxu1 %v8853_v11  ;;  %8063 = vmatprep.mubr.f32.mxu1 %v8849_v9 }
  0xb7   : > { %8057 = vmatmul.mubr.f32.vlgmr.msra.gmra.mxu0 %v8853_v11  ;;  %8061 = vmatprep.subr.mxu1 %v8849_v9 }
  0xb8   : > { %8067 = vmatpush3.xpose.msra.mxu0 %v8932_v42  ;;  %8070 = vmatprep.mubr.f32.mxu0 %v8990_v1 }
  0xb9   : > { %8068 = vmatprep.subr.mxu0 %v8914_v34 }
  0xba   : > { %8062 = vmatpush3.xpose.msra.mxu1 %v8849_v9  ;;  %v315_v9 = vlaneseq }
  0xbb   : > { %8073 = vmatprep.subr.mxu1 %v9014_v25 }
  0xbc   : > { %8069 = vmatpush3.xpose.msra.mxu0 %v8914_v34  ;;  %v9326_v13 = vshrl.u32 %v315_v9, 7 }
  0xbd   : > { %8080 = vmatprep.subr.mxu0 %v8953_v50  ;;  %8064 = vmatmul.mubr.f32.vlgmr.msra.gmra.mxu1 %v8853_v11  ;;  %v9322_v11 = vand.u32 127, %v315_v9 }
  0xbe   : > { %8074 = vmatpush3.xpose.msra.mxu1 %v9014_v25  ;;  %8077 = vmatprep.mubr.f32.mxu1 %v8914_v34 }
  0xbf   : > { %8071 = vmatmul.mubr.f32.vlgmr.msra.gmra.mxu0 %v9014_v25  ;;  %8075 = vmatprep.subr.mxu1 %v8990_v1  ;;  %v2390_v17 = vadd.s32 4294967288, %v9322_v11  ;;  %v9339_v28 = vsub.s32 %v9322_v11, %v9326_v13  ;;  %vm9735_vm3 = vcmp.eq.s32.totalorder %v9326_v13, %v9322_v11 }
  0xc0   : > { %8081 = vmatpush3.xpose.msra.mxu0 %v8953_v50  ;;  %8084 = vmatprep.mubr.f32.mxu0 %v8928_v40 }
  0xc1   : > { %8082 = vmatprep.subr.mxu0 %v8928_v40  ;;  %v9346_v30 = vsub.s32 %v2390_v17, %v9326_v13 }
  0xc2   : > { %8076 = vmatpush3.xpose.msra.mxu1 %v8990_v1 }
  0xc3   : > { %8087 = vmatprep.subr.mxu1 %v8932_v42 }
  0xc4   : > { %8083 = vmatpush3.xpose.msra.mxu0 %v8928_v40 }
  0xc5   : > { %8094 = vmatprep.subr.mxu0 %v8973_v58  ;;  %8078 = vmatmul.mubr.f32.vlgmr.msra.gmra.mxu1 %v8932_v42 }
  0xc6   : > { %8088 = vmatpush3.xpose.msra.mxu1 %v8932_v42  ;;  %8091 = vmatprep.mubr.f32.mxu1 %v8947_v48 }
  0xc7   : > { %8085 = vmatmul.mubr.f32.vlgmr.msra.gmra.mxu0 %v8953_v50  ;;  %8089 = vmatprep.subr.mxu1 %v8914_v34 }
  0xc8   : > { %8095 = vmatpush3.xpose.msra.mxu0 %v8973_v58  ;;  %8098 = vmatprep.mubr.f32.mxu0 %v8914_v34 }
  0xc9   : > { %8096 = vmatprep.subr.mxu0 %v8947_v48 }
  0xca   : > { %8090 = vmatpush3.xpose.msra.mxu1 %v8914_v34  ;;  %v9331_v15 = vpop.xlane.xlu1 %298 }
  0xcb   : > { %8101 = vmatprep.subr.mxu1 %v8932_v42  ;;  %v293_v20 = vpop.xlane.xlu0 %292 }
  0xcc   : > { %8097 = vmatpush3.xpose.msra.mxu0 %v8947_v48  ;;  %v2389_v40 = vrot.slane %v293_v20, %v9339_v28 }
  0xcd   : > { %8108 = vmatprep.subr.mxu0 %v9051_v51  ;;  %8092 = vmatmul.mubr.f32.vlgmr.msra.gmra.mxu1 %v8973_v58 }
  0xce   : > { %8102 = vmatpush3.xpose.msra.mxu1 %v8932_v42  ;;  %8105 = vmatprep.mubr.f32.mxu1 %v8914_v34 }
  0xcf   : > { %8099 = vmatmul.mubr.f32.vlgmr.msra.gmra.mxu0 %v8932_v42  ;;  %8103 = vmatprep.subr.mxu1 %v8914_v34 }
  0xd0   : > { %8109 = vmatpush3.xpose.msra.mxu0 %v9051_v51  ;;  %8112 = vmatprep.mubr.f32.mxu0 %v9104_v6 }
  0xd1   : > { %8110 = vmatprep.subr.mxu0 %v9030_v41 }
  0xd2   : > { %8104 = vmatpush3.xpose.msra.mxu1 %v8914_v34  ;;  %v2400_v34 = vrot.slane %v9331_v15, %v9339_v28  ;;  %v296_v50 = vpop.xlane.xlu0 %295 }
  0xd3   : > { %8115 = vmatprep.subr.mxu1 %v9122_v55  ;;  %v2394_v58 = vrot.slane %v296_v50, %v9346_v30 }
  0xd4   : > { %8111 = vmatpush3.xpose.msra.mxu0 %v9030_v41 }
  0xd5   : > { %8122 = vmatprep.subr.mxu0 %v9071_v19  ;;  %8106 = vmatmul.mubr.f32.vlgmr.msra.gmra.mxu1 %v8932_v42  ;;  %v302_v42 = vpop.xlane.xlu1 %301 }
  0xd6   : > { %8116 = vmatpush3.xpose.msra.mxu1 %v9122_v55  ;;  %8119 = vmatprep.mubr.f32.mxu1 %v9030_v41  ;;  %v2404_v48 = vrot.slane %v302_v42, %v9346_v30 }
  0xd7   : > { %8113 = vmatmul.mubr.f32.vlgmr.msra.gmra.mxu0 %v9122_v55  ;;  %8117 = vmatprep.subr.mxu1 %v9104_v6 }
  0xd8   : > { %8123 = vmatpush3.xpose.msra.mxu0 %v9071_v19  ;;  %8126 = vmatprep.mubr.f32.mxu0 %v9048_v32  ;;  %v9360_v1 = vsel %vm2395_vm1, %v2404_v48, %v2400_v34 }
  0xd9   : > { %8124 = vmatprep.subr.mxu0 %v9048_v32  ;;  %v9365_v25 = vadd.f32 %v9360_v1, %v302_v42  ;;  %v308_v4 = vpop.xlane.xlu1 %307 }
  0xda   : > { %8118 = vmatpush3.xpose.msra.mxu1 %v9104_v6  ;;  %v305_v55 = vpop.xlane.xlu0 %304 }
  0xdb   : > { %8129 = vmatprep.subr.mxu1 %v9051_v51  ;;  %v2409_v60 = vrot.slane %v305_v55, %v9339_v28 }
  0xdc   : > { %8125 = vmatpush3.xpose.msra.mxu0 %v9048_v32  ;;  %v9368_v32 = vsel %vm2395_vm1, %v2394_v58, %v2389_v40  ;;  %v9414_v58 = vadd.f32 %v9360_v1, %v9331_v15 }
  0xdd   : > { %8136 = vmatprep.subr.mxu0 %v9091_v24  ;;  %8120 = vmatmul.mubr.f32.vlgmr.msra.gmra.mxu1 %v9051_v51  ;;  %v9373_v6 = vadd.f32 %v9368_v32, %v296_v50  ;;  %v314_v59 = vpop.xlane.xlu1 %313  ;;  %v9410_v50 = vadd.f32 %v9368_v32, %v293_v20 }
  0xde   : > { %8130 = vmatpush3.xpose.msra.mxu1 %v9051_v51  ;;  %8133 = vmatprep.mubr.f32.mxu1 %v9066_v61  ;;  %v2422_v9 = vrot.slane %v314_v59, %v9346_v30 }
  0xdf   : > { %8127 = vmatmul.mubr.f32.vlgmr.msra.gmra.mxu0 %v9071_v19  ;;  %8131 = vmatprep.subr.mxu1 %v9030_v41  ;;  %v2413_v19 = vrot.slane %v308_v4, %v9346_v30 }
  0xe0   : > { %8137 = vmatpush3.xpose.msra.mxu0 %v9091_v24  ;;  %8140 = vmatprep.mubr.f32.mxu0 %v9030_v41 }
  0xe1   : > { %8138 = vmatprep.subr.mxu0 %v9066_v61  ;;  %v9387_v17 = vsel %vm2395_vm1, %v2413_v19, %v2409_v60 }
  0xe2   : > { %8132 = vmatpush3.xpose.msra.mxu1 %v9030_v41  ;;  %v311_v34 = vpop.xlane.xlu0 %310 }
  0xe3   : > { %8143 = vmatprep.subr.mxu1 %v9051_v51  ;;  %v2418_v40 = vrot.slane %v311_v34, %v9339_v28  ;;  %v9407_v48 = vpop.xlane.xlu1 %263 }
  0xe4   : > { %8139 = vmatpush3.xpose.msra.mxu0 %v9066_v61  ;;  %v9392_v61 = vadd.f32 %v9387_v17, %v305_v55  ;;  %v4795_v19 = vrot.slane %v9407_v48, %v9346_v30 }
  0xe5   : > { %8150 = vmatprep.subr.mxu0 %v9151_v33  ;;  %8134 = vmatmul.mubr.f32.vlgmr.msra.gmra.mxu1 %v9091_v24  ;;  %v9401_v24 = vsel %vm2395_vm1, %v2422_v9, %v2418_v40 }
  0xe6   : > { %8144 = vmatpush3.xpose.msra.mxu1 %v9051_v51  ;;  %10250 = vst [vmem:[#allocation11_spill] sm:$0xff] %v9392_v61  ;;  %8147 = vmatprep.mubr.f32.mxu1 %v9030_v41  ;;  %v9405_v42 = vadd.f32 %v9401_v24, %v311_v34 }
  0xe7   : > { %8141 = vmatmul.mubr.f32.vlgmr.msra.gmra.mxu0 %v9051_v51  ;;  %8145 = vmatprep.subr.mxu1 %v9030_v41 }
  0xe8   : > { %8151 = vmatpush3.xpose.msra.mxu0 %v9151_v33  ;;  %8154 = vmatprep.mubr.f32.mxu0 %v9196_v26  ;;  %10251 = vst [vmem:[#allocation12_spill] sm:$0xff] %v9405_v42 }
  0xe9   : > { %8152 = vmatprep.subr.mxu0 %v9133_v10 }
  0xea   : > { %8146 = vmatpush3.xpose.msra.mxu1 %v9030_v41  ;;  %v9420_v41 = vpop.xlane.xlu0 %260 }
  0xeb   : > { %8157 = vmatprep.subr.mxu1 %v9212_v49  ;;  %v4791_v55 = vrot.slane %v9420_v41, %v9339_v28  ;;  %v9429_v20 = vpop.xlane.xlu1 %269 }
  0xec   : > { %8153 = vmatpush3.xpose.msra.mxu0 %v9133_v10  ;;  %v4804_v9 = vrot.slane %v9429_v20, %v9346_v30 }
  0xed   : > { %8164 = vmatprep.subr.mxu0 %v9168_v39  ;;  %8148 = vmatmul.mubr.f32.vlgmr.msra.gmra.mxu1 %v9051_v51  ;;  %v4796_v15 = vsel %vm2395_vm1, %v4795_v19, %v4791_v55  ;;  %v9466_v55 = vadd.f32 %v9401_v24, %v314_v59 }
  0xee   : > { %8158 = vmatpush3.xpose.msra.mxu1 %v9212_v49  ;;  %v9434_v60 = vadd.f32 %v4796_v15, %v9420_v41  ;;  %8161 = vmatprep.mubr.f32.mxu1 %v9133_v10 }
  0xef   : > { %8155 = vmatmul.mubr.f32.vlgmr.msra.gmra.mxu0 %v9212_v49  ;;  %8159 = vmatprep.subr.mxu1 %v9196_v26  ;;  %v9445_v49 = vadd.f32 %v9387_v17, %v308_v4  ;;  %10252 = vst [vmem:[#allocation13_spill] sm:$0xff] %v9466_v55 }
  0xf0   : > { %8165 = vmatpush3.xpose.msra.mxu0 %v9168_v39  ;;  %8168 = vmatprep.mubr.f32.mxu0 %v9148_v31 }
  0xf1   : > { %8166 = vmatprep.subr.mxu0 %v9148_v31 }
  0xf2   : > { %8160 = vmatpush3.xpose.msra.mxu1 %v9196_v26  ;;  %v9442_v51 = vpop.xlane.xlu0 %266 }
  0xf3   : > { %8171 = vmatprep.subr.mxu1 %v9151_v33  ;;  %v4800_v34 = vrot.slane %v9442_v51, %v9339_v28  ;;  %v9451_v40 = vpop.xlane.xlu1 %275 }
  0xf4   : > { %8167 = vmatpush3.xpose.msra.mxu0 %v9148_v31  ;;  %v4813_v19 = vrot.slane %v9451_v40, %v9346_v30 }
  0xf5   : > { %8178 = vmatprep.subr.mxu0 %v9185_v52  ;;  %8162 = vmatmul.mubr.f32.vlgmr.msra.gmra.mxu1 %v9151_v33  ;;  %v4805_v26 = vsel %vm2395_vm1, %v4804_v9, %v4800_v34  ;;  %v9483_v34 = vadd.f32 %v4796_v15, %v9407_v48 }
  0xf6   : > { %8172 = vmatpush3.xpose.msra.mxu1 %v9151_v33  ;;  %v9461_v31 = vadd.f32 %v4805_v26, %v9442_v51  ;;  %8175 = vmatprep.mubr.f32.mxu1 %v9163_v3 }
  0xf7   : > { %8169 = vmatmul.mubr.f32.vlgmr.msra.gmra.mxu0 %v9168_v39  ;;  %v9463_v4 = vpop.xlane.xlu0 %272  ;;  %8173 = vmatprep.subr.mxu1 %v9133_v10 }
  0xf8   : > { %8179 = vmatpush3.xpose.msra.mxu0 %v9185_v52  ;;  %v4809_v42 = vrot.slane %v9463_v4, %v9339_v28  ;;  %8182 = vmatprep.mubr.f32.mxu0 %v9133_v10 }
  0xf9   : > { %8180 = vmatprep.subr.mxu0 %v9163_v3 }
  0xfa   : > { %v4814_v39 = vsel %vm2395_vm1, %v4813_v19, %v4809_v42  ;;  %8174 = vmatpush3.xpose.msra.mxu1 %v9133_v10 }
  0xfb   : > { %v9478_v59 = vadd.f32 %v4814_v39, %v9463_v4  ;;  %v9480_v9 = vpop.xlane.xlu1 %281  ;;  %8185 = vmatprep.subr.mxu1 %v9151_v33 }
  0xfc   : > { %8181 = vmatpush3.xpose.msra.mxu0 %v9163_v3  ;;  %v4822_v55 = vrot.slane %v9480_v9, %v9346_v30  ;;  %v9489_v61 = vpop.xlane.xlu0 %278 }
  0xfd   : > { %8192 = vmatprep.subr.mxu0 %v8845_v7  ;;  %v4818_v42 = vrot.slane %v9489_v61, %v9339_v28  ;;  %8176 = vmatmul.mubr.f32.vlgmr.msra.gmra.mxu1 %v9185_v52  ;;  %v9507_v52 = vadd.f32 %v4805_v26, %v9429_v20  ;;  %v9522_v28 = vadd.f32 %v4814_v39, %v9451_v40 }
  0xfe   : > { %8186 = vmatpush3.xpose.msra.mxu1 %v9151_v33  ;;  %8189 = vmatprep.mubr.f32.mxu1 %v9133_v10 }
  0xff   : > { %8183 = vmatmul.mubr.f32.vlgmr.msra.gmra.mxu0 %v9151_v33  ;;  %v9498_v3 = vsel %vm2395_vm1, %v4822_v55, %v4818_v42  ;;  %8187 = vmatprep.subr.mxu1 %v9133_v10 }
 0x100   : > { %8193 = vmatpush3.xpose.msra.mxu0 %v8845_v7  ;;  %8196 = vmatprep.mubr.f32.mxu0 %v8903_v29 }
 0x101   : > { %8194 = vmatprep.subr.mxu0 %v8847_v8 }
 0x102   : > { %8188 = vmatpush3.xpose.msra.mxu1 %v9133_v10 }
 0x103   : > { %8199 = vmatprep.subr.mxu1 %v8898_v27 }
 0x104   : > { %8195 = vmatpush3.xpose.msra.mxu0 %v8847_v8 }
 0x105   : > { %8206 = vmatprep.subr.mxu0 %v8857_v12  ;;  %8190 = vmatmul.mubr.f32.vlgmr.msra.gmra.mxu1 %v9151_v33 }
 0x106   : > { %8200 = vmatpush3.xpose.msra.mxu1 %v8898_v27  ;;  %8203 = vmatprep.mubr.f32.mxu1 %v8847_v8 }
 0x107   : > { %8197 = vmatmul.mubr.f32.vlgmr.msra.gmra.mxu0 %v8898_v27  ;;  %8201 = vmatprep.subr.mxu1 %v8903_v29  ;;  %v7862_v10 = vpop.f32.mrf.mxu0 }
 0x108   : > { %8207 = vmatpush3.xpose.msra.mxu0 %v8857_v12  ;;  %8210 = vmatprep.mubr.f32.mxu0 %v8863_v14 }
 0x109   : > { %8208 = vmatprep.subr.mxu0 %v8863_v14  ;;  %v407_v27 = vpop.f32.mrf.mxu0 }
 0x10a   : > { %8202 = vmatpush3.xpose.msra.mxu1 %v8903_v29 }
 0x10b   : > { %8213 = vmatprep.subr.mxu1 %v8845_v7 }
 0x10c   : > { %8209 = vmatpush3.xpose.msra.mxu0 %v8863_v14 }
 0x10d   : > { %8220 = vmatprep.subr.mxu0 %v8872_v16  ;;  %v7869_v33 = vpop.f32.mrf.mxu1  ;;  %8204 = vmatmul.mubr.f32.vlgmr.msra.gmra.mxu1 %v8845_v7 }
 0x10e   : > { %8214 = vmatpush3.xpose.msra.mxu1 %v8845_v7  ;;  %8217 = vmatprep.mubr.f32.mxu1 %v8878_v18  ;;  %v505_v30 = vadd.f32 %v7869_v33, %v7862_v10 }
 0x10f   : > { %8211 = vmatmul.mubr.f32.vlgmr.msra.gmra.mxu0 %v8857_v12  ;;  %8215 = vmatprep.subr.mxu1 %v8847_v8  ;;  %v498_v14 = vpop.f32.mrf.mxu1  ;;  %v7876_v29 = vpop.f32.mrf.mxu0 }
 0x110   : > { %8221 = vmatpush3.xpose.msra.mxu0 %v8872_v16  ;;  %8224 = vmatprep.mubr.f32.mxu0 %v8847_v8  ;;  %v499_v12 = vadd.f32 %v498_v14, %v407_v27  ;;  %v588_v26 = vadd.f32 %v7876_v29, %v505_v30  ;;  %v2460_v30 = vadd.f32 %v9368_v32, %v9407_v48 }
 0x111   : > { %8222 = vmatprep.subr.mxu0 %v8878_v18  ;;  %v580_v15 = vpop.f32.mrf.mxu0 }
 0x112   : > { %8216 = vmatpush3.xpose.msra.mxu1 %v8847_v8 }
 0x113   : > { %8227 = vmatprep.subr.mxu1 %v8845_v7 }
 0x114   : > { %8223 = vmatpush3.xpose.msra.mxu0 %v8878_v18  ;;  %v581_v18 = vadd.f32 %v580_v15, %v499_v12 }
 0x115   : > { %8234 = vmatprep.subr.mxu0 %v8920_v36  ;;  %v7883_v19 = vpop.f32.mrf.mxu1  ;;  %8218 = vmatmul.mubr.f32.vlgmr.msra.gmra.mxu1 %v8872_v16 }
 0x116   : > { %8228 = vmatpush3.xpose.msra.mxu1 %v8845_v7  ;;  %v671_v42 = vadd.f32 %v7883_v19, %v588_v26  ;;  %8231 = vmatprep.mubr.f32.mxu1 %v8847_v8  ;;  %v2459_v19 = vadd.f32 %v9368_v32, %v9420_v41 }
 0x117   : > { %8225 = vmatmul.mubr.f32.vlgmr.msra.gmra.mxu0 %v8845_v7  ;;  %v662_v55 = vpop.f32.mrf.mxu1  ;;  %v7890_v39 = vpop.f32.mrf.mxu0  ;;  %8229 = vmatprep.subr.mxu1 %v8847_v8 }
 0x118   : > { %8235 = vmatpush3.xpose.msra.mxu0 %v8920_v36  ;;  %8238 = vmatprep.mubr.f32.mxu0 %v9022_v35  ;;  %v663_v16 = vadd.f32 %v662_v55, %v581_v18  ;;  %v754_v27 = vadd.f32 %v7890_v39, %v671_v42 }
 0x119   : > { %8236 = vmatprep.subr.mxu0 %v8937_v45  ;;  %v747_v10 = vpop.f32.mrf.mxu0 }
 0x11a   : > { %8230 = vmatpush3.xpose.msra.mxu1 %v8847_v8  ;;  %v748_v14 = vadd.f32 %v747_v10, %v663_v16 }
 0x11b   : > { %8241 = vmatprep.subr.mxu1 %v9004_v21 }
 0x11c   : > { %8237 = vmatpush3.xpose.msra.mxu0 %v8937_v45 }
 0x11d   : > { %8248 = vmatprep.subr.mxu0 %v8940_v46  ;;  %v7897_v33 = vpop.f32.mrf.mxu1  ;;  %8232 = vmatmul.mubr.f32.vlgmr.msra.gmra.mxu1 %v8845_v7 }
 0x11e   : > { %v833_v29 = vadd.f32 %v7897_v33, %v754_v27  ;;  %8242 = vmatpush3.xpose.msra.mxu1 %v9004_v21  ;;  %8245 = vmatprep.mubr.f32.mxu1 %v8937_v45 }
 0x11f   : > { %8239 = vmatmul.mubr.f32.vlgmr.msra.gmra.mxu0 %v9004_v21  ;;  %v826_v8 = vpop.f32.mrf.mxu1  ;;  %8243 = vmatprep.subr.mxu1 %v9022_v35  ;;  %v7904_v7 = vpop.f32.mrf.mxu0 }
 0x120   : > { %8249 = vmatpush3.xpose.msra.mxu0 %v8940_v46  ;;  %v2468_v12 = vmul.f32 2.0, %v833_v29  ;;  %v827_v15 = vadd.f32 %v826_v8, %v748_v14  ;;  %8252 = vmatprep.mubr.f32.mxu0 %v8962_v54 }
 0x121   : > { %8250 = vmatprep.subr.mxu0 %v8962_v54  ;;  %v921_v32 = vpop.f32.mrf.mxu0 }
 0x122   : > { %v2476_v48 = vsub.f32 %v2460_v30, %v2468_v12  ;;  %v2467_v26 = vmul.f32 2.0, %v827_v15  ;;  %8244 = vmatpush3.xpose.msra.mxu1 %v9022_v35 }
 0x123   : > { %8255 = vmatprep.subr.mxu1 %v8920_v36 }
 0x124   : > { %8251 = vmatpush3.xpose.msra.mxu0 %v8962_v54  ;;  %v9566_v21 = vmax.f32 %v2476_v48, 0.0  ;;  %v2475_v55 = vsub.f32 %v2459_v19, %v2467_v26 }
 0x125   : > { %8262 = vmatprep.subr.mxu0 %v8959_v53  ;;  %v7911_v41 = vpop.f32.mrf.mxu1  ;;  %8246 = vmatmul.mubr.f32.vlgmr.msra.gmra.mxu1 %v8920_v36 }
 0x126   : > { %v9570_v39 = vmax.f32 %v2475_v55, 0.0  ;;  %8256 = vmatpush3.xpose.msra.mxu1 %v8920_v36  ;;  %v9575_v35 = vmul.f32 -100.0, %v9566_v21  ;;  %8259 = vmatprep.mubr.f32.mxu1 %v8984_v63  ;;  %v2462_v55 = vadd.f32 %v9360_v1, %v9429_v20 }
 0x127   : > { %8253 = vmatmul.mubr.f32.vlgmr.msra.gmra.mxu0 %v8940_v46  ;;  %8257 = vmatprep.subr.mxu1 %v8937_v45  ;;  %v1012_v42 = vpop.f32.mrf.mxu1  ;;  %v7918_v16 = vpop.f32.mrf.mxu0  ;;  %v1019_v46 = vadd.f32 %v7911_v41, %v7904_v7 }
 0x128   : > { %8263 = vmatpush3.xpose.msra.mxu0 %v8959_v53  ;;  %v2502_v54 = vsel %vm258_vm0, %v9575_v35, -inf  ;;  %v9583_v18 = vmul.f32 -100.0, %v9570_v39  ;;  %8266 = vmatprep.mubr.f32.mxu0 %v8937_v45  ;;  %v1013_v27 = vadd.f32 %v1012_v42, %v921_v32 }
 0x129   : > { %8264 = vmatprep.subr.mxu0 %v8984_v63  ;;  %2503 = vmax.xlane.f32.xlu1 %v2502_v54  ;;  %v1094_v33 = vpop.f32.mrf.mxu0  ;;  %v1102_v29 = vadd.f32 %v7918_v16, %v1019_v46  ;;  %v2461_v54 = vadd.f32 %v9360_v1, %v9442_v51 }
 0x12a   : > { %8258 = vmatpush3.xpose.msra.mxu1 %v8937_v45  ;;  %v2499_v10 = vsel %vm258_vm0, %v9583_v18, -inf }
 0x12b   : > { %2500 = vmax.xlane.f32.xlu0 %v2499_v10  ;;  %8269 = vmatprep.subr.mxu1 %v8920_v36  ;;  %v10255_v10 = vld [vmem:[#allocation8_spill] sm:$0xff] }
 0x12c   : > { %8265 = vmatpush3.xpose.msra.mxu0 %v8984_v63  ;;  %v1095_v63 = vadd.f32 %v1094_v33, %v1013_v27 }
 0x12d   : > { %8276 = vmatprep.subr.mxu0 %v9039_v2  ;;  %v7925_v14 = vpop.f32.mrf.mxu1  ;;  %8260 = vmatmul.mubr.f32.vlgmr.msra.gmra.mxu1 %v8959_v53 }
 0x12e   : > { %8270 = vmatpush3.xpose.msra.mxu1 %v8920_v36  ;;  %v1185_v12 = vadd.f32 %v7925_v14, %v1102_v29  ;;  %8273 = vmatprep.mubr.f32.mxu1 %v8937_v45  ;;  %v10257_v14 = vld [vmem:[#allocation10_spill] sm:$0xff] }
 0x12f   : > { %8267 = vmatmul.mubr.f32.vlgmr.msra.gmra.mxu0 %v8920_v36  ;;  %v1176_v30 = vpop.f32.mrf.mxu1  ;;  %v7932_v8 = vpop.f32.mrf.mxu0  ;;  %8271 = vmatprep.subr.mxu1 %v8937_v45 }
 0x130   : > { %8277 = vmatpush3.xpose.msra.mxu0 %v9039_v2  ;;  %8280 = vmatprep.mubr.f32.mxu0 %v9127_v62  ;;  %v1177_v53 = vadd.f32 %v1176_v30, %v1095_v63  ;;  %v1268_v19 = vadd.f32 %v7932_v8, %v1185_v12 }
 0x131   : > { %8278 = vmatprep.subr.mxu0 %v9058_v56  ;;  %v1261_v15 = vpop.f32.mrf.mxu0 }
 0x132   : > { %8272 = vmatpush3.xpose.msra.mxu1 %v8937_v45  ;;  %v1262_v48 = vadd.f32 %v1261_v15, %v1177_v53 }
 0x133   : > { %8283 = vmatprep.subr.mxu1 %v9113_v47 }
 0x134   : > { %8279 = vmatpush3.xpose.msra.mxu0 %v9058_v56 }
 0x135   : > { %8290 = vmatprep.subr.mxu0 %v9061_v57  ;;  %v7939_v7 = vpop.f32.mrf.mxu1  ;;  %8274 = vmatmul.mubr.f32.vlgmr.msra.gmra.mxu1 %v8920_v36  ;;  %v10253_v36 = vld [vmem:[#allocation9_spill] sm:$0xff] }
 0x136   : > { %v1347_v26 = vadd.f32 %v7939_v7, %v1268_v19  ;;  %8284 = vmatpush3.xpose.msra.mxu1 %v9113_v47  ;;  %8287 = vmatprep.mubr.f32.mxu1 %v9058_v56 }
 0x137   : > { %8281 = vmatmul.mubr.f32.vlgmr.msra.gmra.mxu0 %v9113_v47  ;;  %v1340_v45 = vpop.f32.mrf.mxu1  ;;  %8285 = vmatprep.subr.mxu1 %v9127_v62  ;;  %v7946_v42 = vpop.f32.mrf.mxu0 }
 0x138   : > { %8291 = vmatpush3.xpose.msra.mxu0 %v9061_v57  ;;  %v2470_v32 = vmul.f32 2.0, %v1347_v26  ;;  %v1341_v41 = vadd.f32 %v1340_v45, %v1262_v48  ;;  %8294 = vmatprep.mubr.f32.mxu0 %v10253_v36 }
 0x139   : > { %8292 = vmatprep.subr.mxu0 %v10253_v36  ;;  %v1435_v1 = vpop.f32.mrf.mxu0 }
 0x13a   : > { %v2478_v20 = vsub.f32 %v2462_v55, %v2470_v32  ;;  %v2469_v16 = vmul.f32 2.0, %v1341_v41  ;;  %8286 = vmatpush3.xpose.msra.mxu1 %v9127_v62 }
 0x13b   : > { %8297 = vmatprep.subr.mxu1 %v9039_v2 }
 0x13c   : > { %8293 = vmatpush3.xpose.msra.mxu0 %v10253_v36  ;;  %v9620_v47 = vmax.f32 %v2478_v20, 0.0  ;;  %v2477_v46 = vsub.f32 %v2461_v54, %v2469_v16  ;;  %v2464_v20 = vadd.f32 %v9387_v17, %v9451_v40 }
 0x13d   : > { %8304 = vmatprep.subr.mxu0 %v10255_v10  ;;  %v7953_v51 = vpop.f32.mrf.mxu1  ;;  %8288 = vmatmul.mubr.f32.vlgmr.msra.gmra.mxu1 %v9039_v2 }
 0x13e   : > { %10254 = vst [vmem:[#allocation9_spill] sm:$0xff] %v9620_v47  ;;  %v9624_v27 = vmax.f32 %v2477_v46, 0.0  ;;  %8298 = vmatpush3.xpose.msra.mxu1 %v9039_v2  ;;  %v9629_v62 = vmul.f32 -100.0, %v9620_v47  ;;  %8301 = vmatprep.mubr.f32.mxu1 %v10257_v14 }
 0x13f   : > { %8295 = vmatmul.mubr.f32.vlgmr.msra.gmra.mxu0 %v9061_v57  ;;  %8299 = vmatprep.subr.mxu1 %v9058_v56  ;;  %v1526_v30 = vpop.f32.mrf.mxu1  ;;  %v7960_v8 = vpop.f32.mrf.mxu0  ;;  %v1533_v57 = vadd.f32 %v7953_v51, %v7946_v42 }
 0x140   : > { %10256 = vst [vmem:[#allocation8_spill] sm:$0xff] %v9624_v27  ;;  %8305 = vmatpush3.xpose.msra.mxu0 %v10255_v10  ;;  %v2508_v33 = vsel %vm258_vm0, %v9629_v62, -inf  ;;  %v9637_v29 = vmul.f32 -100.0, %v9624_v27  ;;  %8308 = vmatprep.mubr.f32.mxu0 %v9058_v56  ;;  %v1527_v12 = vadd.f32 %v1526_v30, %v1435_v1 }
 0x141   : > { %8306 = vmatprep.subr.mxu0 %v10257_v14  ;;  %2509 = vmax.xlane.f32.xlu1 %v2508_v33  ;;  %v1608_v53 = vpop.f32.mrf.mxu0  ;;  %v1616_v19 = vadd.f32 %v7960_v8, %v1533_v57 }
 0x142   : > { %8300 = vmatpush3.xpose.msra.mxu1 %v9058_v56  ;;  %v2505_v63 = vsel %vm258_vm0, %v9637_v29, -inf  ;;  %v1609_v26 = vadd.f32 %v1608_v53, %v1527_v12 }
 0x143   : > { %2506 = vmax.xlane.f32.xlu0 %v2505_v63  ;;  %8311 = vmatprep.subr.mxu1 %v9039_v2 }
 0x144   : > { %8307 = vmatpush3.xpose.msra.mxu0 %v10257_v14 }
 0x145   : > { %8318 = vmatprep.subr.mxu0 %v9139_v22  ;;  %v7967_v15 = vpop.f32.mrf.mxu1  ;;  %8302 = vmatmul.mubr.f32.vlgmr.msra.gmra.mxu1 %v10255_v10  ;;  %v2463_v10 = vadd.f32 %v9387_v17, %v9463_v4 }
 0x146   : > { %8312 = vmatpush3.xpose.msra.mxu1 %v9039_v2  ;;  %v1699_v55 = vadd.f32 %v7967_v15, %v1616_v19  ;;  %8315 = vmatprep.mubr.f32.mxu1 %v9058_v56 }
 0x147   : > { %8309 = vmatmul.mubr.f32.vlgmr.msra.gmra.mxu0 %v9039_v2  ;;  %v1690_v7 = vpop.f32.mrf.mxu1  ;;  %v7974_v48 = vpop.f32.mrf.mxu0  ;;  %8313 = vmatprep.subr.mxu1 %v9058_v56 }
 0x148   : > { %8319 = vmatpush3.xpose.msra.mxu0 %v9139_v22  ;;  %8322 = vmatprep.mubr.f32.mxu0 %v9216_v5  ;;  %v1691_v45 = vadd.f32 %v1690_v7, %v1609_v26  ;;  %v1782_v41 = vadd.f32 %v7974_v48, %v1699_v55 }
 0x149   : > { %8320 = vmatprep.subr.mxu0 %v9155_v23  ;;  %v1775_v32 = vpop.f32.mrf.mxu0 }
 0x14a   : > { %8314 = vmatpush3.xpose.msra.mxu1 %v9058_v56  ;;  %v1776_v36 = vadd.f32 %v1775_v32, %v1691_v45 }
 0x14b   : > { %8325 = vmatprep.subr.mxu1 %v9204_v38 }
 0x14c   : > { %8321 = vmatpush3.xpose.msra.mxu0 %v9155_v23 }
 0x14d   : > { %8332 = vmatprep.subr.mxu0 %v9158_v37  ;;  %v7981_v54 = vpop.f32.mrf.mxu1  ;;  %8316 = vmatmul.mubr.f32.vlgmr.msra.gmra.mxu1 %v9039_v2 }
 0x14e   : > { %v1861_v42 = vadd.f32 %v7981_v54, %v1782_v41  ;;  %8326 = vmatpush3.xpose.msra.mxu1 %v9204_v38  ;;  %8329 = vmatprep.mubr.f32.mxu1 %v9155_v23  ;;  %v2466_v54 = vadd.f32 %v9401_v24, %v9480_v9 }
 0x14f   : > { %8323 = vmatmul.mubr.f32.vlgmr.msra.gmra.mxu0 %v9204_v38  ;;  %v1854_v56 = vpop.f32.mrf.mxu1  ;;  %8327 = vmatprep.subr.mxu1 %v9216_v5  ;;  %v7988_v2 = vpop.f32.mrf.mxu0 }
 0x150   : > { %8333 = vmatpush3.xpose.msra.mxu0 %v9158_v37  ;;  %v2472_v16 = vmul.f32 2.0, %v1861_v42  ;;  %v1855_v46 = vadd.f32 %v1854_v56, %v1776_v36  ;;  %8336 = vmatprep.mubr.f32.mxu0 %v9176_v44  ;;  %v2465_v56 = vadd.f32 %v9401_v24, %v9489_v61 }
 0x151   : > { %8334 = vmatprep.subr.mxu0 %v9176_v44  ;;  %v1949_v17 = vpop.f32.mrf.mxu0 }
 0x152   : > { %v2480_v40 = vsub.f32 %v2464_v20, %v2472_v16  ;;  %v2471_v1 = vmul.f32 2.0, %v1855_v46  ;;  %8328 = vmatpush3.xpose.msra.mxu1 %v9216_v5 }
 0x153   : > { %8339 = vmatprep.subr.mxu1 %v9139_v22 }
 0x154   : > { %8335 = vmatpush3.xpose.msra.mxu0 %v9176_v44  ;;  %v9674_v38 = vmax.f32 %v2480_v40, 0.0  ;;  %v2479_v51 = vsub.f32 %v2463_v10, %v2471_v1 }
 0x155   : > { %8346 = vmatprep.subr.mxu0 %v9173_v43  ;;  %v7995_v4 = vpop.f32.mrf.mxu1  ;;  %8330 = vmatmul.mubr.f32.vlgmr.msra.gmra.mxu1 %v9139_v22 }
 0x156   : > { %10258 = vst [vmem:[#allocation10_spill] sm:$0xff] %v9674_v38  ;;  %v9678_v33 = vmax.f32 %v2479_v51, 0.0  ;;  %8340 = vmatpush3.xpose.msra.mxu1 %v9139_v22  ;;  %v9683_v5 = vmul.f32 -100.0, %v9674_v38  ;;  %8343 = vmatprep.mubr.f32.mxu1 %v9192_v0 }
 0x157   : > { %8337 = vmatmul.mubr.f32.vlgmr.msra.gmra.mxu0 %v9158_v37  ;;  %8341 = vmatprep.subr.mxu1 %v9155_v23  ;;  %v2040_v30 = vpop.f32.mrf.mxu1  ;;  %v8002_v8 = vpop.f32.mrf.mxu0  ;;  %v2047_v37 = vadd.f32 %v7995_v4, %v7988_v2 }
 0x158   : > { %10259 = vst [vmem:[#allocation14_spill] sm:$0xff] %v9678_v33  ;;  %8347 = vmatpush3.xpose.msra.mxu0 %v9173_v43  ;;  %v2514_v44 = vsel %vm258_vm0, %v9683_v5, -inf  ;;  %v9691_v14 = vmul.f32 -100.0, %v9678_v33  ;;  %8350 = vmatprep.mubr.f32.mxu0 %v9155_v23  ;;  %v2041_v63 = vadd.f32 %v2040_v30, %v1949_v17 }
 0x159   : > { %8348 = vmatprep.subr.mxu0 %v9192_v0  ;;  %2515 = vmax.xlane.f32.xlu1 %v2514_v44  ;;  %v2122_v12 = vpop.f32.mrf.mxu0  ;;  %v2130_v15 = vadd.f32 %v8002_v8, %v2047_v37 }
 0x15a   : > { %8342 = vmatpush3.xpose.msra.mxu1 %v9155_v23  ;;  %v2511_v57 = vsel %vm258_vm0, %v9691_v14, -inf  ;;  %v2123_v48 = vadd.f32 %v2122_v12, %v2041_v63 }
 0x15b   : > { %2512 = vmax.xlane.f32.xlu0 %v2511_v57  ;;  %8353 = vmatprep.subr.mxu1 %v9139_v22 }
 0x15c   : > { %8349 = vmatpush3.xpose.msra.mxu0 %v9192_v0 }
 0x15d   : > { %v8009_v53 = vpop.f32.mrf.mxu1  ;;  %8344 = vmatmul.mubr.f32.vlgmr.msra.gmra.mxu1 %v9173_v43 }
 0x15e   : > { %8354 = vmatpush3.xpose.msra.mxu1 %v9139_v22  ;;  %8357 = vmatprep.mubr.f32.mxu1 %v9155_v23  ;;  %v2213_v0 = vadd.f32 %v8009_v53, %v2130_v15 }
 0x15f   : > { %8351 = vmatmul.mubr.f32.vlgmr.msra.gmra.mxu0 %v9139_v22  ;;  %v2204_v19 = vpop.f32.mrf.mxu1  ;;  %v8016_v7 = vpop.f32.mrf.mxu0  ;;  %8355 = vmatprep.subr.mxu1 %v9155_v23 }
 0x160   : > { %v2205_v26 = vadd.f32 %v2204_v19, %v2123_v48  ;;  %v2296_v45 = vadd.f32 %v8016_v7, %v2213_v0 }
 0x161   : > { %v2289_v55 = vpop.f32.mrf.mxu0 }
 0x162   : > { %8356 = vmatpush3.xpose.msra.mxu1 %v9155_v23  ;;  %v2290_v43 = vadd.f32 %v2289_v55, %v2205_v26 }
 0x165   : > { %v8023_v32 = vpop.f32.mrf.mxu1  ;;  %8358 = vmatmul.mubr.f32.vlgmr.msra.gmra.mxu1 %v9139_v22 }
 0x166   : > { %v2375_v41 = vadd.f32 %v8023_v32, %v2296_v45 }
 0x167   : > { %v2368_v36 = vpop.f32.mrf.mxu1  ;;  %v8030_v16 = vpop.f32.mrf.mxu0 }
 0x168   : > { %v2474_v42 = vmul.f32 2.0, %v2375_v41  ;;  %v2369_v20 = vadd.f32 %v2368_v36, %v2290_v43  ;;  %v317_v43 = vadd.s32 8, %v9326_v13 }
 0x169   : > { %v2845_v40 = vpop.f32.mrf.mxu0 }
 0x16a   : > { %v2482_v46 = vsub.f32 %v2466_v54, %v2474_v42  ;;  %v2473_v10 = vmul.f32 2.0, %v2369_v20  ;;  %vm9728_vm2 = vcmp.eq.s32.totalorder %v317_v43, %v9322_v11 }
 0x16c   : > { %v9711_v23 = vmax.f32 %v2482_v46, 0.0  ;;  %v2481_v2 = vsub.f32 %v2465_v56, %v2473_v10 }
 0x16d   : > { %v8037_v1 = vpop.f32.mrf.mxu1 }
 0x16e   : > { %10260 = vst [vmem:[#allocation15_spill] sm:$0xff] %v9711_v23  ;;  %v9713_v22 = vmax.f32 %v2481_v2, 0.0  ;;  %v9716_v51 = vmul.f32 -100.0, %v9711_v23  ;;  %v2943_v30 = vadd.f32 %v8037_v1, %v8030_v16 }
 0x16f   : > { %v2936_v24 = vpop.f32.mrf.mxu1  ;;  %v8044_v44 = vpop.f32.mrf.mxu0 }
 0x170   : > { %10261 = vst [vmem:[#allocation16_spill] sm:$0xff] %v9713_v22  ;;  %v2520_v17 = vsel %vm258_vm0, %v9716_v51, -inf  ;;  %v9721_v4 = vmul.f32 -100.0, %v9713_v22  ;;  %v2937_v37 = vadd.f32 %v2936_v24, %v2845_v40  ;;  %v3026_v12 = vadd.f32 %v8044_v44, %v2943_v30 }
 0x171   : > { %2521 = vmax.xlane.f32.xlu1 %v2520_v17  ;;  %v3018_v57 = vpop.f32.mrf.mxu0 }
 0x172   : > { %v2517_v8 = vsel %vm258_vm0, %v9721_v4, -inf  ;;  %v3019_v19 = vadd.f32 %v3018_v57, %v2937_v37 }
 0x173   : > { %2518 = vmax.xlane.f32.xlu0 %v2517_v8 }
 0x175   : > { %v8051_v63 = vpop.f32.mrf.mxu1 }
 0x176   : > { %v3109_v7 = vadd.f32 %v8051_v63, %v3026_v12 }
 0x177   : > { %v3100_v53 = vpop.f32.mrf.mxu1  ;;  %v8058_v15 = vpop.f32.mrf.mxu0 }
 0x178   : > { %v3101_v48 = vadd.f32 %v3100_v53, %v3019_v19  ;;  %v3192_v26 = vadd.f32 %v8058_v15, %v3109_v7 }
 0x179   : > { %v3185_v0 = vpop.f32.mrf.mxu0 }
 0x17a   : > { %v3186_v45 = vadd.f32 %v3185_v0, %v3101_v48 }
 0x17d   : > { %v8065_v55 = vpop.f32.mrf.mxu1 }
 0x17e   : > { %v3271_v32 = vadd.f32 %v8065_v55, %v3192_v26 }
 0x17f   : > { %v3264_v41 = vpop.f32.mrf.mxu1  ;;  %v8072_v42 = vpop.f32.mrf.mxu0 }
 0x180   : > { %v4861_v54 = vmul.f32 2.0, %v3271_v32  ;;  %v3265_v36 = vadd.f32 %v3264_v41, %v3186_v45 }
 0x181   : > { %v3347_v40 = vpop.f32.mrf.mxu0 }
 0x182   : > { %v4869_v20 = vsub.f32 %v9483_v34, %v4861_v54  ;;  %v4860_v56 = vmul.f32 2.0, %v3265_v36 }
 0x184   : > { %v4877_v46 = vmax.f32 %v4869_v20, 0.0  ;;  %v4868_v10 = vsub.f32 %v9434_v60, %v4860_v56 }
 0x185   : > { %v8079_v1 = vpop.f32.mrf.mxu1 }
 0x186   : > { %v9741_v34 = vsel %vm9728_vm2, 0.0, %v4877_v46  ;;  %v4876_v17 = vmax.f32 %v4868_v10, 0.0  ;;  %v3445_v8 = vadd.f32 %v8079_v1, %v8072_v42 }
 0x187   : > { %v9744_v24 = vmul.f32 -100.0, %v9741_v34  ;;  %v3438_v13 = vpop.f32.mrf.mxu1  ;;  %v8086_v30 = vpop.f32.mrf.mxu0 }
 0x188   : > { %v9748_v44 = vsel %vm9735_vm3, 0.0, %v4876_v17  ;;  %v3439_v57 = vadd.f32 %v3438_v13, %v3347_v40  ;;  %v3528_v53 = vadd.f32 %v8086_v30, %v3445_v8 }
 0x189   : > { %v4906_v60 = vmul.f32 1.442695, %v9744_v24  ;;  %v9752_v11 = vmul.f32 -100.0, %v9748_v44  ;;  %v3520_v63 = vpop.f32.mrf.mxu0 }
 0x18a   : > { %v3521_v7 = vadd.f32 %v3520_v63, %v3439_v57 }
 0x18b   : > { %8422 = vpow2.f32 %v4906_v60  ;;  %v4904_v37 = vmul.f32 1.442695, %v9752_v11 }
 0x18d   : > { %8424 = vpow2.f32 %v4904_v37  ;;  %v8093_v12 = vpop.f32.mrf.mxu1 }
 0x18e   : > { %v3611_v48 = vadd.f32 %v8093_v12, %v3528_v53 }
 0x18f   : > { %v3602_v15 = vpop.f32.mrf.mxu1  ;;  %v8100_v19 = vpop.f32.mrf.mxu0 }
 0x190   : > { %v3603_v0 = vadd.f32 %v3602_v15, %v3521_v7  ;;  %v3694_v55 = vadd.f32 %v8100_v19, %v3611_v48 }
 0x191   : > { %v3687_v26 = vpop.f32.mrf.mxu0 }
 0x192   : > { %v3688_v32 = vadd.f32 %v3687_v26, %v3603_v0 }
 0x195   : > { %v8107_v45 = vpop.f32.mrf.mxu1 }
 0x196   : > { %v3773_v43 = vadd.f32 %v8107_v45, %v3694_v55 }
 0x197   : > { %v3766_v41 = vpop.f32.mrf.mxu1  ;;  %v8114_v20 = vpop.f32.mrf.mxu0 }
 0x198   : > { %v8423_v54 = vpop.eup %8422  ;;  %v4863_v36 = vmul.f32 2.0, %v3773_v43  ;;  %v3767_v42 = vadd.f32 %v3766_v41, %v3688_v32 }
 0x199   : > { %v4923_v56 = vsel %vm258_vm0, %v8423_v54, 0.0  ;;  %v3849_v13 = vpop.f32.mrf.mxu0 }
 0x19a   : > { %v8425_v46 = vpop.eup %8424  ;;  %v4871_v10 = vsub.f32 %v9507_v52, %v4863_v36  ;;  %v4862_v40 = vmul.f32 2.0, %v3767_v42  ;;  %4924 = vadd.xlane.f32.xlu1 %v4923_v56 }
 0x19b   : > { %v4920_v1 = vsel %vm258_vm0, %v8425_v46, 0.0 }
 0x19c   : > { %v4879_v17 = vmax.f32 %v4871_v10, 0.0  ;;  %v4870_v60 = vsub.f32 %v9461_v31, %v4862_v40  ;;  %4921 = vadd.xlane.f32.xlu0 %v4920_v1 }
 0x19d   : > { %v8121_v30 = vpop.f32.mrf.mxu1 }
 0x19e   : > { %v9761_v8 = vsel %vm9728_vm2, 0.0, %v4879_v17  ;;  %v4878_v37 = vmax.f32 %v4870_v60, 0.0  ;;  %v3947_v15 = vadd.f32 %v8121_v30, %v8114_v20 }
 0x19f   : > { %v9764_v57 = vmul.f32 -100.0, %v9761_v8  ;;  %v3940_v31 = vpop.f32.mrf.mxu1  ;;  %v8128_v53 = vpop.f32.mrf.mxu0 }
 0x1a0   : > { %v9768_v52 = vsel %vm9735_vm3, 0.0, %v4878_v37  ;;  %v3941_v7 = vadd.f32 %v3940_v31, %v3849_v13  ;;  %v4030_v26 = vadd.f32 %v8128_v53, %v3947_v15 }
 0x1a1   : > { %v4910_v63 = vmul.f32 1.442695, %v9764_v57  ;;  %v9772_v12 = vmul.f32 -100.0, %v9768_v52  ;;  %v4022_v48 = vpop.f32.mrf.mxu0 }
 0x1a2   : > { %v4023_v32 = vadd.f32 %v4022_v48, %v3941_v7 }
 0x1a3   : > { %8426 = vpow2.f32 %v4910_v63  ;;  %v4908_v19 = vmul.f32 1.442695, %v9772_v12 }
 0x1a5   : > { %8428 = vpow2.f32 %v4908_v19  ;;  %v8135_v0 = vpop.f32.mrf.mxu1 }
 0x1a6   : > { %v4113_v43 = vadd.f32 %v8135_v0, %v4030_v26 }
 0x1a7   : > { %v4104_v55 = vpop.f32.mrf.mxu1  ;;  %v8142_v45 = vpop.f32.mrf.mxu0 }
 0x1a8   : > { %v4105_v41 = vadd.f32 %v4104_v55, %v4023_v32  ;;  %v4196_v36 = vadd.f32 %v8142_v45, %v4113_v43 }
 0x1a9   : > { %v4189_v54 = vpop.f32.mrf.mxu0 }
 0x1aa   : > { %v4190_v56 = vadd.f32 %v4189_v54, %v4105_v41 }
 0x1ad   : > { %v8149_v42 = vpop.f32.mrf.mxu1 }
 0x1ae   : > { %v4275_v46 = vadd.f32 %v8149_v42, %v4196_v36 }
 0x1af   : > { %v4268_v10 = vpop.f32.mrf.mxu1  ;;  %v8156_v17 = vpop.f32.mrf.mxu0 }
 0x1b0   : > { %v8427_v20 = vpop.eup %8426  ;;  %v4865_v40 = vmul.f32 2.0, %v4275_v46  ;;  %v4269_v1 = vadd.f32 %v4268_v10, %v4190_v56 }
 0x1b1   : > { %v4929_v60 = vsel %vm258_vm0, %v8427_v20, 0.0  ;;  %v4351_v0 = vpop.f32.mrf.mxu0 }
 0x1b2   : > { %v8429_v13 = vpop.eup %8428  ;;  %v4873_v30 = vsub.f32 %v9522_v28, %v4865_v40  ;;  %v4864_v37 = vmul.f32 2.0, %v4269_v1  ;;  %v9777_v63 = vpop.xlane.xlu1 %2503  ;;  %4930 = vadd.xlane.f32.xlu1 %v4929_v60 }
 0x1b3   : > { %v2524_v31 = vsub.f32 %v9575_v35, %v9777_v63  ;;  %v4926_v53 = vsel %vm258_vm0, %v8429_v13, 0.0 }
 0x1b4   : > { %v4881_v15 = vmax.f32 %v4873_v30, 0.0  ;;  %v4872_v19 = vsub.f32 %v9478_v59, %v4864_v37  ;;  %4927 = vadd.xlane.f32.xlu0 %v4926_v53  ;;  %v9783_v7 = vpop.xlane.xlu0 %2500 }
 0x1b5   : > { %v2533_v48 = vmul.f32 1.442695, %v2524_v31  ;;  %v2523_v28 = vsub.f32 %v9583_v18, %v9783_v7  ;;  %v8163_v26 = vpop.f32.mrf.mxu1 }
 0x1b6   : > { %v9789_v55 = vsel %vm9728_vm2, 0.0, %v4881_v15  ;;  %v4880_v45 = vmax.f32 %v4872_v19, 0.0  ;;  %v4449_v56 = vadd.f32 %v8163_v26, %v8156_v17 }
 0x1b7   : > { %v9792_v32 = vmul.f32 -100.0, %v9789_v55  ;;  %8430 = vpow2.f32 %v2533_v48  ;;  %v2531_v43 = vmul.f32 1.442695, %v2523_v28  ;;  %v4442_v36 = vpop.f32.mrf.mxu1  ;;  %v8170_v42 = vpop.f32.mrf.mxu0 }
 0x1b8   : > { %v9796_v59 = vsel %vm9735_vm3, 0.0, %v4880_v45  ;;  %v4443_v10 = vadd.f32 %v4442_v36, %v4351_v0  ;;  %v4532_v1 = vadd.f32 %v8170_v42, %v4449_v56  ;;  %v4859_v36 = vadd.f32 %v9498_v3, %v9480_v9 }
 0x1b9   : > { %v4914_v41 = vmul.f32 1.442695, %v9792_v32  ;;  %v9800_v54 = vmul.f32 -100.0, %v9796_v59  ;;  %8432 = vpow2.f32 %v2531_v43  ;;  %v4524_v20 = vpop.f32.mrf.mxu0 }
 0x1ba   : > { %v4525_v30 = vadd.f32 %v4524_v20, %v4443_v10 }
 0x1bb   : > { %8434 = vpow2.f32 %v4914_v41  ;;  %v4912_v46 = vmul.f32 1.442695, %v9800_v54 }
 0x1bd   : > { %8436 = vpow2.f32 %v4912_v46  ;;  %v8177_v40 = vpop.f32.mrf.mxu1 }
 0x1be   : > { %v4615_v37 = vadd.f32 %v8177_v40, %v4532_v1  ;;  %v4858_v40 = vadd.f32 %v9498_v3, %v9489_v61 }
 0x1bf   : > { %v4606_v60 = vpop.f32.mrf.mxu1  ;;  %v8184_v13 = vpop.f32.mrf.mxu0 }
 0x1c0   : > { %v4607_v31 = vadd.f32 %v4606_v60, %v4525_v30  ;;  %v4698_v19 = vadd.f32 %v8184_v13, %v4615_v37 }
 0x1c1   : > { %v4691_v53 = vpop.f32.mrf.mxu0 }
 0x1c2   : > { %v4692_v26 = vadd.f32 %v4691_v53, %v4607_v31 }
 0x1c4   : > { %v8431_v15 = vpop.eup %8430 }
 0x1c5   : > { %v8191_v48 = vpop.f32.mrf.mxu1  ;;  %v2550_v28 = vsel %vm258_vm0, %v8431_v15, 0.0 }
 0x1c6   : > { %v8433_v17 = vpop.eup %8432  ;;  %v4777_v45 = vadd.f32 %v8191_v48, %v4698_v19  ;;  %2551 = vadd.xlane.f32.xlu1 %v2550_v28 }
 0x1c7   : > { %v4770_v0 = vpop.f32.mrf.mxu1  ;;  %v2547_v43 = vsel %vm258_vm0, %v8433_v17, 0.0  ;;  %v8198_v46 = vpop.f32.mrf.mxu0 }
 0x1c8   : > { %v8435_v41 = vpop.eup %8434  ;;  %v4867_v42 = vmul.f32 2.0, %v4777_v45  ;;  %v4771_v56 = vadd.f32 %v4770_v0, %v4692_v26  ;;  %2548 = vadd.xlane.f32.xlu0 %v2547_v43 }
 0x1c9   : > { %v4935_v10 = vsel %vm258_vm0, %v8435_v41, 0.0  ;;  %v5209_v19 = vpop.f32.mrf.mxu0 }
 0x1ca   : > { %v8437_v20 = vpop.eup %8436  ;;  %v4875_v1 = vsub.f32 %v4859_v36, %v4867_v42  ;;  %v4866_v60 = vmul.f32 2.0, %v4771_v56  ;;  %v9810_v13 = vpop.xlane.xlu1 %2509  ;;  %4936 = vadd.xlane.f32.xlu1 %v4935_v10 }
 0x1cb   : > { %v2526_v30 = vsub.f32 %v9629_v62, %v9810_v13  ;;  %v4932_v9 = vsel %vm258_vm0, %v8437_v20, 0.0 }
 0x1cc   : > { %v4883_v37 = vmax.f32 %v4875_v1, 0.0  ;;  %v4874_v31 = vsub.f32 %v4858_v40, %v4866_v60  ;;  %4933 = vadd.xlane.f32.xlu0 %v4932_v9  ;;  %v9815_v53 = vpop.xlane.xlu0 %2506 }
 0x1cd   : > { %v2537_v15 = vmul.f32 1.442695, %v2526_v30  ;;  %v2525_v61 = vsub.f32 %v9637_v29, %v9815_v53  ;;  %v8205_v3 = vpop.f32.mrf.mxu1 }
 0x1ce   : > { %v9821_v48 = vsel %vm9728_vm2, 0.0, %v4883_v37  ;;  %v4882_v28 = vmax.f32 %v4874_v31, 0.0  ;;  %v5307_v42 = vadd.f32 %v8205_v3, %v8198_v46 }
 0x1cf   : > { %v9824_v17 = vmul.f32 -100.0, %v9821_v48  ;;  %8438 = vpow2.f32 %v2537_v15  ;;  %v2535_v26 = vmul.f32 1.442695, %v2525_v61  ;;  %v5300_v41 = vpop.f32.mrf.mxu1  ;;  %v8212_v36 = vpop.f32.mrf.mxu0 }
 0x1d0   : > { %v9828_v45 = vsel %vm9735_vm3, 0.0, %v4882_v28  ;;  %v5301_v10 = vadd.f32 %v5300_v41, %v5209_v19  ;;  %v5390_v1 = vadd.f32 %v8212_v36, %v5307_v42 }
 0x1d1   : > { %v4918_v0 = vmul.f32 1.442695, %v9824_v17  ;;  %v9832_v43 = vmul.f32 -100.0, %v9828_v45  ;;  %8440 = vpow2.f32 %v2535_v26  ;;  %v5382_v20 = vpop.f32.mrf.mxu0 }
 0x1d2   : > { %v5383_v9 = vadd.f32 %v5382_v20, %v5301_v10 }
 0x1d3   : > { %8442 = vpow2.f32 %v4918_v0  ;;  %v4916_v56 = vmul.f32 1.442695, %v9832_v43 }
 0x1d5   : > { %8444 = vpow2.f32 %v4916_v56  ;;  %v8219_v40 = vpop.f32.mrf.mxu1 }
 0x1d6   : > { %v5473_v37 = vadd.f32 %v8219_v40, %v5390_v1 }
 0x1d7   : > { %v5464_v60 = vpop.f32.mrf.mxu1  ;;  %v8226_v30 = vpop.f32.mrf.mxu0 }
 0x1d8   : > { %v5465_v31 = vadd.f32 %v5464_v60, %v5383_v9  ;;  %v5556_v28 = vadd.f32 %v8226_v30, %v5473_v37 }
 0x1d9   : > { %v5549_v15 = vpop.f32.mrf.mxu0 }
 0x1da   : > { %v5550_v3 = vadd.f32 %v5549_v15, %v5465_v31 }
 0x1dc   : > { %v8439_v61 = vpop.eup %8438 }
 0x1dd   : > { %v8233_v26 = vpop.f32.mrf.mxu1  ;;  %v2556_v23 = vsel %vm258_vm0, %v8439_v61, 0.0 }
 0x1de   : > { %v8441_v46 = vpop.eup %8440  ;;  %v5635_v0 = vadd.f32 %v8233_v26, %v5556_v28  ;;  %2557 = vadd.xlane.f32.xlu1 %v2556_v23 }
 0x1df   : > { %v5628_v19 = vpop.f32.mrf.mxu1  ;;  %v2553_v41 = vsel %vm258_vm0, %v8441_v46, 0.0  ;;  %v8240_v10 = vpop.f32.mrf.mxu0 }
 0x1e0   : > { %v8443_v56 = vpop.eup %8442  ;;  %v7153_v36 = vmul.f32 2.0, %v5635_v0  ;;  %v5629_v42 = vadd.f32 %v5628_v19, %v5550_v3  ;;  %2554 = vadd.xlane.f32.xlu0 %v2553_v41 }
 0x1e1   : > { %v4941_v20 = vsel %vm258_vm0, %v8443_v56, 0.0  ;;  %v5711_v28 = vpop.f32.mrf.mxu0 }
 0x1e2   : > { %v8445_v40 = vpop.eup %8444  ;;  %v7161_v1 = vsub.f32 %v9373_v6, %v7153_v36  ;;  %v7152_v60 = vmul.f32 2.0, %v5629_v42  ;;  %v9839_v30 = vpop.xlane.xlu1 %2515  ;;  %4942 = vadd.xlane.f32.xlu1 %v4941_v20 }
 0x1e3   : > { %v2528_v23 = vsub.f32 %v9683_v5, %v9839_v30  ;;  %v4938_v9 = vsel %vm258_vm0, %v8445_v40, 0.0 }
 0x1e4   : > { %v7169_v37 = vmax.f32 %v7161_v1, 0.0  ;;  %v7160_v31 = vsub.f32 %v9410_v50, %v7152_v60  ;;  %4939 = vadd.xlane.f32.xlu0 %v4938_v9  ;;  %v9845_v15 = vpop.xlane.xlu0 %2512 }
 0x1e5   : > { %v2541_v61 = vmul.f32 1.442695, %v2528_v23  ;;  %v2527_v6 = vsub.f32 %v9691_v14, %v9845_v15  ;;  %v8247_v26 = vpop.f32.mrf.mxu1 }
 0x1e6   : > { %v9851_v46 = vsel %vm9728_vm2, 0.0, %v7169_v37  ;;  %v7168_v3 = vmax.f32 %v7160_v31, 0.0  ;;  %v5809_v20 = vadd.f32 %v8247_v26, %v8240_v10 }
 0x1e7   : > { %10266 = vst [vmem:[#allocation17_spill] sm:$0xff] %v9851_v46  ;;  %v9854_v0 = vmul.f32 -100.0, %v9851_v46  ;;  %8446 = vpow2.f32 %v2541_v61  ;;  %v2539_v19 = vmul.f32 1.442695, %v2527_v6  ;;  %v5802_v36 = vpop.f32.mrf.mxu1  ;;  %v8254_v42 = vpop.f32.mrf.mxu0 }
 0x1e8   : > { %v9858_v50 = vsel %vm9735_vm3, 0.0, %v7168_v3  ;;  %v5803_v1 = vadd.f32 %v5802_v36, %v5711_v28  ;;  %v5892_v9 = vadd.f32 %v8254_v42, %v5809_v20 }
 0x1e9   : > { %10267 = vst [vmem:[#allocation18_spill] sm:$0xff] %v9858_v50  ;;  %v7194_v41 = vmul.f32 1.442695, %v9854_v0  ;;  %v9862_v56 = vmul.f32 -100.0, %v9858_v50  ;;  %8448 = vpow2.f32 %v2539_v19  ;;  %v5884_v60 = vpop.f32.mrf.mxu0 }
 0x1ea   : > { %v5885_v61 = vadd.f32 %v5884_v60, %v5803_v1 }
 0x1eb   : > { %8450 = vpow2.f32 %v7194_v41  ;;  %v7192_v40 = vmul.f32 1.442695, %v9862_v56 }
 0x1ed   : > { %8452 = vpow2.f32 %v7192_v40  ;;  %v8261_v23 = vpop.f32.mrf.mxu1 }
 0x1ee   : > { %v5975_v6 = vadd.f32 %v8261_v23, %v5892_v9 }
 0x1ef   : > { %v5966_v37 = vpop.f32.mrf.mxu1  ;;  %v8268_v31 = vpop.f32.mrf.mxu0 }
 0x1f0   : > { %v5967_v3 = vadd.f32 %v5966_v37, %v5885_v61  ;;  %v6058_v22 = vadd.f32 %v8268_v31, %v5975_v6 }
 0x1f1   : > { %v6051_v46 = vpop.f32.mrf.mxu0 }
 0x1f2   : > { %v6052_v26 = vadd.f32 %v6051_v46, %v5967_v3 }
 0x1f4   : > { %v8447_v50 = vpop.eup %8446 }
 0x1f5   : > { %v8275_v19 = vpop.f32.mrf.mxu1  ;;  %v2562_v38 = vsel %vm258_vm0, %v8447_v50, 0.0 }
 0x1f6   : > { %v8449_v10 = vpop.eup %8448  ;;  %v6137_v41 = vadd.f32 %v8275_v19, %v6058_v22  ;;  %2563 = vadd.xlane.f32.xlu1 %v2562_v38 }
 0x1f7   : > { %v6130_v28 = vpop.f32.mrf.mxu1  ;;  %v2559_v36 = vsel %vm258_vm0, %v8449_v10, 0.0  ;;  %v8282_v1 = vpop.f32.mrf.mxu0 }
 0x1f8   : > { %v8451_v40 = vpop.eup %8450  ;;  %v7155_v42 = vmul.f32 2.0, %v6137_v41  ;;  %v6131_v20 = vadd.f32 %v6130_v28, %v6052_v26  ;;  %2560 = vadd.xlane.f32.xlu0 %v2559_v36 }
 0x1f9   : > { %v7211_v60 = vsel %vm258_vm0, %v8451_v40, 0.0  ;;  %v6213_v3 = vpop.f32.mrf.mxu0 }
 0x1fa   : > { %v8453_v23 = vpop.eup %8452  ;;  %v7163_v9 = vsub.f32 %v9365_v25, %v7155_v42  ;;  %v7154_v37 = vmul.f32 2.0, %v6131_v20  ;;  %v9869_v31 = vpop.xlane.xlu1 %2521  ;;  %7212 = vadd.xlane.f32.xlu1 %v7211_v60 }
 0x1fb   : > { %v2530_v38 = vsub.f32 %v9716_v51, %v9869_v31  ;;  %v7208_v22 = vsel %vm258_vm0, %v8453_v23, 0.0 }
 0x1fc   : > { %v7171_v46 = vmax.f32 %v7163_v9, 0.0  ;;  %v7162_v50 = vsub.f32 %v9414_v58, %v7154_v37  ;;  %7209 = vadd.xlane.f32.xlu0 %v7208_v22  ;;  %v9875_v61 = vpop.xlane.xlu0 %2518 }
 0x1fd   : > { %v2545_v6 = vmul.f32 1.442695, %v2530_v38  ;;  %v2529_v25 = vsub.f32 %v9721_v4, %v9875_v61  ;;  %v8289_v19 = vpop.f32.mrf.mxu1 }
 0x1fe   : > { %v9881_v10 = vsel %vm9728_vm2, 0.0, %v7171_v46  ;;  %v7170_v26 = vmax.f32 %v7162_v50, 0.0  ;;  %v6311_v60 = vadd.f32 %v8289_v19, %v8282_v1 }
 0x1ff   : > { %10268 = vst [vmem:[#allocation19_spill] sm:$0xff] %v9881_v10  ;;  %v9884_v41 = vmul.f32 -100.0, %v9881_v10  ;;  %8454 = vpow2.f32 %v2545_v6  ;;  %v2543_v28 = vmul.f32 1.442695, %v2529_v25  ;;  %v6304_v42 = vpop.f32.mrf.mxu1  ;;  %v8296_v20 = vpop.f32.mrf.mxu0 }
 0x200   : > { %v9888_v58 = vsel %vm9735_vm3, 0.0, %v7170_v26  ;;  %v6305_v9 = vadd.f32 %v6304_v42, %v6213_v3  ;;  %v6394_v22 = vadd.f32 %v8296_v20, %v6311_v60 }
 0x201   : > { %10269 = vst [vmem:[#allocation20_spill] sm:$0xff] %v9888_v58  ;;  %v7198_v36 = vmul.f32 1.442695, %v9884_v41  ;;  %v9892_v40 = vmul.f32 -100.0, %v9888_v58  ;;  %8456 = vpow2.f32 %v2543_v28  ;;  %v6386_v37 = vpop.f32.mrf.mxu0 }
 0x202   : > { %v6387_v6 = vadd.f32 %v6386_v37, %v6305_v9 }
 0x203   : > { %8458 = vpow2.f32 %v7198_v36  ;;  %v7196_v23 = vmul.f32 1.442695, %v9892_v40 }
 0x205   : > { %8460 = vpow2.f32 %v7196_v23  ;;  %v8303_v38 = vpop.f32.mrf.mxu1 }
 0x206   : > { %v6477_v25 = vadd.f32 %v8303_v38, %v6394_v22 }
 0x207   : > { %v6468_v46 = vpop.f32.mrf.mxu1  ;;  %v8310_v50 = vpop.f32.mrf.mxu0 }
 0x208   : > { %v6469_v26 = vadd.f32 %v6468_v46, %v6387_v6  ;;  %v6560_v33 = vadd.f32 %v8310_v50, %v6477_v25 }
 0x209   : > { %v6553_v10 = vpop.f32.mrf.mxu0 }
 0x20a   : > { %v6554_v19 = vadd.f32 %v6553_v10, %v6469_v26 }
 0x20c   : > { %v8455_v58 = vpop.eup %8454 }
 0x20d   : > { %v8317_v28 = vpop.f32.mrf.mxu1  ;;  %v2568_v47 = vsel %vm258_vm0, %v8455_v58, 0.0 }
 0x20e   : > { %v8457_v1 = vpop.eup %8456  ;;  %v6639_v36 = vadd.f32 %v8317_v28, %v6560_v33  ;;  %2569 = vadd.xlane.f32.xlu1 %v2568_v47  ;;  %v10270_v33 = vld [vmem:[#allocation11_spill] sm:$0xff] }
 0x20f   : > { %v6632_v3 = vpop.f32.mrf.mxu1  ;;  %v2565_v42 = vsel %vm258_vm0, %v8457_v1, 0.0  ;;  %v8324_v9 = vpop.f32.mrf.mxu0 }
 0x210   : > { %v8459_v23 = vpop.eup %8458  ;;  %v7157_v20 = vmul.f32 2.0, %v6639_v36  ;;  %v6633_v60 = vadd.f32 %v6632_v3, %v6554_v19  ;;  %2566 = vadd.xlane.f32.xlu0 %v2565_v42 }
 0x211   : > { %v7217_v37 = vsel %vm258_vm0, %v8459_v23, 0.0  ;;  %v6715_v50 = vpop.f32.mrf.mxu0 }
 0x212   : > { %v8461_v38 = vpop.eup %8460  ;;  %v7165_v22 = vsub.f32 %v9445_v49, %v7157_v20  ;;  %v7156_v46 = vmul.f32 2.0, %v6633_v60  ;;  %7218 = vadd.xlane.f32.xlu1 %v7217_v37 }
 0x213   : > { %v7214_v58 = vsel %vm258_vm0, %v8461_v38, 0.0 }
 0x214   : > { %v7173_v10 = vmax.f32 %v7165_v22, 0.0  ;;  %v7164_v47 = vsub.f32 %v10270_v33, %v7156_v46  ;;  %7215 = vadd.xlane.f32.xlu0 %v7214_v58 }
 0x215   : > { %v8331_v6 = vpop.f32.mrf.mxu1 }
 0x216   : > { %v9903_v25 = vsel %vm9728_vm2, 0.0, %v7173_v10  ;;  %v7172_v26 = vmax.f32 %v7164_v47, 0.0  ;;  %v6813_v42 = vadd.f32 %v8331_v6, %v8324_v9 }
 0x217   : > { %10271 = vst [vmem:[#allocation11_spill] sm:$0xff] %v9903_v25  ;;  %v9906_v28 = vmul.f32 -100.0, %v9903_v25  ;;  %v6806_v36 = vpop.f32.mrf.mxu1  ;;  %v8338_v3 = vpop.f32.mrf.mxu0 }
 0x218   : > { %v9910_v49 = vsel %vm9735_vm3, 0.0, %v7172_v26  ;;  %v6807_v20 = vadd.f32 %v6806_v36, %v6715_v50  ;;  %v6896_v38 = vadd.f32 %v8338_v3, %v6813_v42  ;;  %v10275_v42 = vld [vmem:[#allocation13_spill] sm:$0xff] }
 0x219   : > { %10272 = vst [vmem:[#allocation21_spill] sm:$0xff] %v9906_v28  ;;  %10273 = vst [vmem:[#allocation22_spill] sm:$0xff] %v9910_v49  ;;  %v7202_v1 = vmul.f32 1.442695, %v9906_v28  ;;  %v9914_v19 = vmul.f32 -100.0, %v9910_v49  ;;  %v6888_v60 = vpop.f32.mrf.mxu0 }
 0x21a   : > { %v6889_v58 = vadd.f32 %v6888_v60, %v6807_v20 }
 0x21b   : > { %10274 = vst [vmem:[#allocation23_spill] sm:$0xff] %v9914_v19  ;;  %8462 = vpow2.f32 %v7202_v1  ;;  %v7200_v23 = vmul.f32 1.442695, %v9914_v19 }
 0x21d   : > { %8464 = vpow2.f32 %v7200_v23  ;;  %v8345_v37 = vpop.f32.mrf.mxu1 }
 0x21e   : > { %v6979_v10 = vadd.f32 %v8345_v37, %v6896_v38  ;;  %v10276_v38 = vld [vmem:[#allocation12_spill] sm:$0xff] }
 0x21f   : > { %v6970_v22 = vpop.f32.mrf.mxu1  ;;  %v8352_v46 = vpop.f32.mrf.mxu0 }
 0x220   : > { %v6971_v33 = vadd.f32 %v6970_v22, %v6889_v58  ;;  %v7062_v26 = vadd.f32 %v8352_v46, %v6979_v10 }
 0x221   : > { %v7055_v47 = vpop.f32.mrf.mxu0 }
 0x222   : > { %v7056_v27 = vadd.f32 %v7055_v47, %v6971_v33 }
 0x223   : > { %v4925_v9 = vpop.xlane.xlu1 %4924 }
 0x225   : > { %v8359_v25 = vpop.f32.mrf.mxu1  ;;  %v4922_v49 = vpop.xlane.xlu0 %4921 }
 0x226   : > { %v7141_v28 = vadd.f32 %v8359_v25, %v7062_v26  ;;  %8466 = vlog2.f32 %v4922_v49 }
 0x227   : > { %v7134_v6 = vpop.f32.mrf.mxu1  ;;  %8468 = vlog2.f32 %v4925_v9 }
 0x228   : > { %v8463_v1 = vpop.eup %8462  ;;  %v7159_v19 = vmul.f32 2.0, %v7141_v28  ;;  %v7135_v50 = vadd.f32 %v7134_v6, %v7056_v27 }
 0x229   : > { %v7223_v36 = vsel %vm258_vm0, %v8463_v1, 0.0 }
 0x22a   : > { %v8465_v3 = vpop.eup %8464  ;;  %v7167_v23 = vsub.f32 %v10275_v42, %v7159_v19  ;;  %v7158_v20 = vmul.f32 2.0, %v7135_v50  ;;  %7224 = vadd.xlane.f32.xlu1 %v7223_v36 }
 0x22b   : > { %v7220_v60 = vsel %vm258_vm0, %v8465_v3, 0.0 }
 0x22c   : > { %v7175_v37 = vmax.f32 %v7167_v23, 0.0  ;;  %v7166_v22 = vsub.f32 %v10276_v38, %v7158_v20  ;;  %7221 = vadd.xlane.f32.xlu0 %v7220_v60 }
 0x22e   : > { %v9923_v25 = vsel %vm9728_vm2, 0.0, %v7175_v37  ;;  %v7174_v28 = vmax.f32 %v7166_v22, 0.0 }
 0x22f   : > { %10277 = vst [vmem:[#allocation13_spill] sm:$0xff] %v9923_v25  ;;  %v9926_v27 = vmul.f32 -100.0, %v9923_v25 }
 0x230   : > { %v9930_v49 = vsel %vm9735_vm3, 0.0, %v7174_v28 }
 0x231   : > { %10278 = vst [vmem:[#allocation12_spill] sm:$0xff] %v9930_v49  ;;  %v7206_v19 = vmul.f32 1.442695, %v9926_v27  ;;  %v9934_v46 = vmul.f32 -100.0, %v9930_v49 }
 0x233   : > { %8470 = vpow2.f32 %v7206_v19  ;;  %v7204_v58 = vmul.f32 1.442695, %v9934_v46  ;;  %v8467_v10 = vpop.eup %8466 }
 0x234   : > { %v8469_v16 = vpop.eup %8468  ;;  %v4945_v33 = vmul.f32 0.6931472, %v8467_v10 }
 0x235   : > { %8472 = vpow2.f32 %v7204_v58  ;;  %v4947_v47 = vmul.f32 0.6931472, %v8469_v16 }
 0x236   : > { %v4960_v9 = vsub.f32 -2.7725885, %v4945_v33 }
 0x237   : > { %v4961_v2 = vsub.f32 -2.7725885, %v4947_v47 }
 0x238   : > { %v4968_v50 = vadd.f32 %v4960_v9, %v9752_v11 }
 0x239   : > { %v4969_v42 = vadd.f32 %v4961_v2, %v9744_v24 }
 0x23a   : > { %v4976_v20 = vsel %vm258_vm0, %v4968_v50, -inf }
 0x23b   : > { %v4931_v26 = vpop.xlane.xlu1 %4930  ;;  %v4977_v60 = vsel %vm258_vm0, %v4969_v42, -inf }
 0x23c   : > { %8474 = vlog2.f32 %v4931_v26  ;;  %v4978_v37 = vmax.f32 %v4976_v20, %v4977_v60 }
 0x23d   : > { %v4928_v6 = vpop.xlane.xlu0 %4927 }
 0x23e   : > { %8476 = vlog2.f32 %v4928_v6  ;;  %v4979_v19 = vrot.slane %v4978_v37, 4 }
 0x240   : > { %v8471_v1 = vpop.eup %8470  ;;  %v4980_v24 = vmax.f32 %v4978_v37, %v4979_v19 }
 0x241   : > { %v7229_v36 = vsel %vm258_vm0, %v8471_v1, 0.0 }
 0x242   : > { %v8473_v3 = vpop.eup %8472  ;;  %7230 = vadd.xlane.f32.xlu1 %v7229_v36  ;;  %v4981_v2 = vrot.slane %v4980_v24, 2 }
 0x243   : > { %v7226_v23 = vsel %vm258_vm0, %v8473_v3, 0.0 }
 0x244   : > { %7227 = vadd.xlane.f32.xlu0 %v7226_v23 }
 0x249   : > { %v8475_v38 = vpop.eup %8474 }
 0x24a   : > { %v4951_v22 = vmul.f32 0.6931472, %v8475_v38 }
 0x24b   : > { %v8477_v28 = vpop.eup %8476 }
 0x24c   : > { %v4963_v58 = vsub.f32 -2.7725885, %v4951_v22  ;;  %v4949_v11 = vmul.f32 0.6931472, %v8477_v28 }
 0x24e   : > { %v9944_v10 = vadd.f32 %v4963_v58, %v9764_v57  ;;  %v4962_v16 = vsub.f32 -2.7725885, %v4949_v11  ;;  %v4982_v57 = vmax.f32 %v4980_v24, %v4981_v2 }
 0x24f   : > { %v2552_v33 = vpop.xlane.xlu1 %2551 }
 0x250   : > { %v4970_v47 = vadd.f32 %v4962_v16, %v9772_v12  ;;  %v4986_v9 = vsel %vm258_vm0, %v9944_v10, -inf  ;;  %v4983_v60 = vrot.slane %v4982_v57, 1 }
 0x251   : > { %v2549_v26 = vpop.xlane.xlu0 %2548 }
 0x252   : > { %v4985_v6 = vsel %vm258_vm0, %v4970_v47, -inf  ;;  %v4984_v12 = vmax.f32 %v4982_v57, %v4983_v60 }
 0x253   : > { %v4987_v1 = vmax.f32 %v4985_v6, %v4986_v9  ;;  %v4937_v36 = vpop.xlane.xlu1 %4936 }
 0x254   : > { %8478 = vlog2.f32 %v4937_v36  ;;  %v5012_v11 = vsub.f32 %v4968_v50, %v4984_v12  ;;  %v5013_v36 = vsub.f32 %v4969_v42, %v4984_v12 }
 0x255   : > { %8480 = vlog2.f32 %v2549_v26  ;;  %v4934_v3 = vpop.xlane.xlu0 %4933  ;;  %v4988_v23 = vrot.slane %v4987_v1, 4 }
 0x256   : > { %8482 = vlog2.f32 %v4934_v3  ;;  %v5020_v49 = vmul.f32 1.442695, %v5012_v11  ;;  %v5022_v3 = vmul.f32 1.442695, %v5013_v36 }
 0x257   : > { %8484 = vlog2.f32 %v2552_v33  ;;  %v4989_v20 = vmax.f32 %v4987_v1, %v4988_v23 }
 0x259   : > { %v4990_v37 = vrot.slane %v4989_v20, 2 }
 0x25b   : > { %v4991_v28 = vmax.f32 %v4989_v20, %v4990_v37 }
 0x25d   : > { %v4992_v26 = vrot.slane %v4991_v28, 1 }
 0x25f   : > { %v4993_v20 = vmax.f32 %v4991_v28, %v4992_v26 }
 0x261   : > { %v8479_v38 = vpop.eup %8478  ;;  %v5015_v28 = vsub.f32 %v9944_v10, %v4993_v20 }
 0x262   : > { %v8481_v22 = vpop.eup %8480  ;;  %v4955_v19 = vmul.f32 0.6931472, %v8479_v38 }
 0x263   : > { %v8483_v58 = vpop.eup %8482  ;;  %v2572_v25 = vmul.f32 0.6931472, %v8481_v22  ;;  %v5014_v22 = vsub.f32 %v4970_v47, %v4993_v20 }
 0x264   : > { %v4965_v16 = vsub.f32 -2.7725885, %v4955_v19  ;;  %v4953_v9 = vmul.f32 0.6931472, %v8483_v58  ;;  %v8485_v6 = vpop.eup %8484 }
 0x265   : > { %v2574_v1 = vmul.f32 0.6931472, %v8485_v6  ;;  %v2587_v50 = vadd.f32 %v2572_v25, %v9783_v7 }
 0x266   : > { %v4973_v24 = vadd.f32 %v4965_v16, %v9792_v32  ;;  %v4964_v33 = vsub.f32 -2.7725885, %v4953_v9  ;;  %v5026_v16 = vmul.f32 1.442695, %v5015_v28 }
 0x267   : > { %v2558_v2 = vpop.xlane.xlu1 %2557  ;;  %v2588_v32 = vadd.f32 %v2574_v1, %v9777_v63  ;;  %v2595_v19 = vsub.f32 -2.7725885, %v2587_v50 }
 0x268   : > { %8486 = vlog2.f32 %v2558_v2  ;;  %v4972_v23 = vadd.f32 %v4964_v33, %v9800_v54  ;;  %v4995_v42 = vsel %vm258_vm0, %v4973_v24, -inf }
 0x269   : > { %v2555_v57 = vpop.xlane.xlu0 %2554  ;;  %v2596_v7 = vsub.f32 -2.7725885, %v2588_v32  ;;  %v9958_v58 = vadd.f32 %v2595_v19, %v9583_v18 }
 0x26a   : > { %8488 = vlog2.f32 %v2555_v57  ;;  %v4994_v60 = vsel %vm258_vm0, %v4972_v23, -inf }
 0x26b   : > { %8490 = vpow2.f32 %v5020_v49  ;;  %v4943_v37 = vpop.xlane.xlu1 %4942  ;;  %v4996_v12 = vmax.f32 %v4994_v60, %v4995_v42  ;;  %v5024_v49 = vmul.f32 1.442695, %v5014_v22  ;;  %v9961_v63 = vadd.f32 %v2596_v7, %v9575_v35 }
 0x26c   : > { %8492 = vlog2.f32 %v4943_v37  ;;  %v2611_v47 = vsel %vm258_vm0, %v9958_v58, -inf }
 0x26d   : > { %8494 = vpow2.f32 %v5022_v3  ;;  %v4940_v38 = vpop.xlane.xlu0 %4939  ;;  %v4997_v54 = vrot.slane %v4996_v12, 4  ;;  %v2612_v18 = vsel %vm258_vm0, %v9961_v63, -inf }
 0x26e   : > { %8496 = vlog2.f32 %v4940_v38  ;;  %v2613_v57 = vmax.f32 %v2611_v47, %v2612_v18 }
 0x26f   : > { %v4998_v25 = vmax.f32 %v4996_v12, %v4997_v54  ;;  %8498 = vpow2.f32 %v5024_v49 }
 0x270   : > { %8500 = vpow2.f32 %v5026_v16 }
 0x271   : > { %v4999_v11 = vrot.slane %v4998_v25, 2 }
 0x273   : > { %v5000_v9 = vmax.f32 %v4998_v25, %v4999_v11  ;;  %v2614_v25 = vrot.slane %v2613_v57, 4 }
 0x275   : > { %v8487_v6 = vpop.eup %8486  ;;  %v5001_v36 = vrot.slane %v5000_v9, 1 }
 0x276   : > { %v2578_v26 = vmul.f32 0.6931472, %v8487_v6 }
 0x277   : > { %v8489_v10 = vpop.eup %8488  ;;  %v5002_v2 = vmax.f32 %v5000_v9, %v5001_v36  ;;  %v2615_v36 = vmax.f32 %v2613_v57, %v2614_v25 }
 0x278   : > { %v8491_v33 = vpop.eup %8490  ;;  %v2590_v1 = vadd.f32 %v2578_v26, %v9810_v13  ;;  %v2576_v3 = vmul.f32 0.6931472, %v8489_v10 }
 0x279   : > { %v8493_v35 = vpop.eup %8492  ;;  %v5016_v50 = vsub.f32 %v4972_v23, %v5002_v2  ;;  %v5017_v42 = vsub.f32 %v4973_v24, %v5002_v2  ;;  %v5036_v7 = vsel %vm258_vm0, %v8491_v33, 0.0 }
 0x27a   : > { %v8495_v20 = vpop.eup %8494  ;;  %v2598_v60 = vsub.f32 -2.7725885, %v2590_v1  ;;  %v2589_v37 = vadd.f32 %v2576_v3, %v9815_v53  ;;  %v4959_v12 = vmul.f32 0.6931472, %v8493_v35  ;;  %v2616_v35 = vrot.slane %v2615_v36, 2 }
 0x27b   : > { %v8497_v32 = vpop.eup %8496  ;;  %v5028_v38 = vmul.f32 1.442695, %v5016_v50  ;;  %v5030_v22 = vmul.f32 1.442695, %v5017_v42  ;;  %v5037_v13 = vsel %vm258_vm0, %v8495_v20, 0.0 }
 0x27c   : > { %v2597_v19 = vsub.f32 -2.7725885, %v2589_v37  ;;  %v4967_v54 = vsub.f32 -2.7725885, %v4959_v12  ;;  %v4957_v28 = vmul.f32 0.6931472, %v8497_v32  ;;  %v9972_v49 = vadd.f32 %v2598_v60, %v9629_v62  ;;  %v8499_v62 = vpop.eup %8498 }
 0x27d   : > { %8502 = vpow2.f32 %v5028_v38  ;;  %v5038_v47 = vadd.f32 %v5037_v13, %v5036_v7  ;;  %v8501_v10 = vpop.eup %8500  ;;  %v5072_v60 = vmul.f32 %v8491_v33, %v9748_v44  ;;  %v5073_v32 = vmul.f32 %v8495_v20, %v9741_v34 }
 0x27e   : > { %v9975_v24 = vadd.f32 %v2597_v19, %v9637_v29  ;;  %v9978_v53 = vadd.f32 %v4967_v54, %v9824_v17  ;;  %v4966_v23 = vsub.f32 -2.7725885, %v4957_v28  ;;  %v2621_v29 = vsel %vm258_vm0, %v9972_v49, -inf }
 0x27f   : > { %v2564_v11 = vpop.xlane.xlu1 %2563  ;;  %v5039_v3 = vrot.slane %v5038_v47, 4  ;;  %v5046_v50 = vsel %vm258_vm0, %v8501_v10, 0.0  ;;  %v2617_v54 = vmax.f32 %v2615_v36, %v2616_v35  ;;  %v5081_v44 = vsel %vm258_vm0, %v5073_v32, 0.0 }
 0x280   : > { %8504 = vlog2.f32 %v2564_v11  ;;  %v2620_v16 = vsel %vm258_vm0, %v9975_v24, -inf  ;;  %v4974_v9 = vadd.f32 %v4966_v23, %v9832_v43  ;;  %v5004_v17 = vsel %vm258_vm0, %v9978_v53, -inf }
 0x281   : > { %8506 = vpow2.f32 %v5030_v22  ;;  %v2561_v6 = vpop.xlane.xlu0 %2560  ;;  %v2622_v18 = vmax.f32 %v2620_v16, %v2621_v29  ;;  %v5045_v43 = vsel %vm258_vm0, %v8499_v62, 0.0  ;;  %v5040_v19 = vadd.f32 %v5039_v3, %v5038_v47 }
 0x282   : > { %8508 = vlog2.f32 %v2561_v6  ;;  %v5003_v26 = vsel %vm258_vm0, %v4974_v9, -inf  ;;  %v5047_v12 = vadd.f32 %v5046_v50, %v5045_v43  ;;  %v5080_v23 = vsel %vm258_vm0, %v5072_v60, 0.0 }
 0x283   : > { %v5005_v2 = vmax.f32 %v5003_v26, %v5004_v17  ;;  %v2623_v42 = vrot.slane %v2622_v18, 4  ;;  %v7213_v38 = vpop.xlane.xlu1 %7212  ;;  %v5041_v20 = vrot.slane %v5040_v19, 2  ;;  %v2618_v29 = vrot.slane %v2617_v54, 1 }
 0x284   : > { %8510 = vlog2.f32 %v7213_v38  ;;  %v5048_v33 = vrot.slane %v5047_v12, 4  ;;  %v5075_v43 = vmul.f32 %v8501_v10, %v9761_v8 }
 0x285   : > { %v5006_v1 = vrot.slane %v5005_v2, 4  ;;  %v2624_v28 = vmax.f32 %v2622_v18, %v2623_v42  ;;  %v7210_v13 = vpop.xlane.xlu0 %7209  ;;  %v5074_v18 = vmul.f32 %v8499_v62, %v9768_v52  ;;  %v5042_v52 = vadd.f32 %v5041_v20, %v5040_v19 }
 0x286   : > { %8512 = vlog2.f32 %v7210_v13  ;;  %v5049_v50 = vadd.f32 %v5048_v33, %v5047_v12 }
 0x287   : > { %v5007_v57 = vmax.f32 %v5005_v2, %v5006_v1  ;;  %v2625_v47 = vrot.slane %v2624_v28, 2  ;;  %v5082_v2 = vadd.f32 %v5081_v44, %v5080_v23  ;;  %v5043_v19 = vrot.slane %v5042_v52, 1 }
 0x288   : > { %v5050_v8 = vrot.slane %v5049_v50, 2 }
 0x289   : > { %v5008_v37 = vrot.slane %v5007_v57, 2 }
 0x28a   : > { %v9992_v22 = vpop.eup %8502 }
 0x28b   : > { %v5009_v7 = vmax.f32 %v5007_v57, %v5008_v37  ;;  %v5054_v1 = vsel %vm258_vm0, %v9992_v22, 0.0  ;;  %v2626_v37 = vmax.f32 %v2624_v28, %v2625_v47  ;;  %v5044_v47 = vadd.f32 %v5043_v19, %v5042_v52 }
 0x28d   : > { %v8505_v25 = vpop.eup %8504  ;;  %v5010_v16 = vrot.slane %v5009_v7, 1 }
 0x28e   : > { %v9995_v11 = vpop.eup %8506  ;;  %v2582_v6 = vmul.f32 0.6931472, %v8505_v25 }
 0x28f   : > { %v8509_v34 = vpop.eup %8508  ;;  %v5011_v36 = vmax.f32 %v5009_v7, %v5010_v16  ;;  %v5055_v3 = vsel %vm258_vm0, %v9995_v11, 0.0 }
 0x290   : > { %v2592_v17 = vadd.f32 %v2582_v6, %v9839_v30  ;;  %v2580_v26 = vmul.f32 0.6931472, %v8509_v34  ;;  %v2619_v30 = vmax.f32 %v2617_v54, %v2618_v29  ;;  %v5056_v62 = vadd.f32 %v5055_v3, %v5054_v1 }
 0x291   : > { %v5018_v35 = vsub.f32 %v4974_v9, %v5011_v36  ;;  %v5019_v42 = vsub.f32 %v9978_v53, %v5011_v36  ;;  %v5089_v9 = vsel %vm258_vm0, %v5074_v18, 0.0  ;;  %v5083_v54 = vrot.slane %v5082_v2, 4  ;;  %v8511_v34 = vpop.eup %8510 }
 0x292   : > { %v2600_v57 = vsub.f32 -2.7725885, %v2592_v17  ;;  %v2591_v60 = vadd.f32 %v2580_v26, %v9845_v15  ;;  %v5090_v15 = vsel %vm258_vm0, %v5075_v43, 0.0  ;;  %v2647_v12 = vsub.f32 %v9958_v58, %v2619_v30 }
 0x293   : > { %v5032_v32 = vmul.f32 1.442695, %v5018_v35  ;;  %v5034_v38 = vmul.f32 1.442695, %v5019_v42  ;;  %v5057_v28 = vrot.slane %v5056_v62, 4  ;;  %v5091_v44 = vadd.f32 %v5090_v15, %v5089_v9  ;;  %v8513_v20 = vpop.eup %8512 }
 0x294   : > { %v10008_v7 = vadd.f32 %v2600_v57, %v9683_v5  ;;  %v2599_v13 = vsub.f32 -2.7725885, %v2591_v60  ;;  %v2627_v5 = vrot.slane %v2626_v37, 1  ;;  %v5051_v58 = vadd.f32 %v5050_v8, %v5049_v50 }
 0x295   : > { %8514 = vpow2.f32 %v5032_v32  ;;  %v2655_v36 = vmul.f32 1.442695, %v2647_v12  ;;  %v5058_v17 = vadd.f32 %v5057_v28, %v5056_v62  ;;  %v10021_v1 = vadd.f32 %v5083_v54, %v5082_v2 }
 0x296   : > { %8516 = vpow2.f32 %v5034_v38  ;;  %v10012_v53 = vadd.f32 %v2599_v13, %v9691_v14  ;;  %v2630_v25 = vsel %vm258_vm0, %v10008_v7, -inf  ;;  %v2648_v14 = vsub.f32 %v9961_v63, %v2619_v30 }
 0x297   : > { %v2570_v10 = vpop.xlane.xlu1 %2569  ;;  %v2628_v26 = vmax.f32 %v2626_v37, %v2627_v5  ;;  %v5092_v63 = vrot.slane %v5091_v44, 4  ;;  %v7235_v43 = vmul.f32 0.6931472, %v8511_v34  ;;  %v7233_v42 = vmul.f32 0.6931472, %v8513_v20 }
 0x298   : > { %8518 = vlog2.f32 %v2570_v10  ;;  %v2629_v23 = vsel %vm258_vm0, %v10012_v53, -inf  ;;  %v2657_v3 = vmul.f32 1.442695, %v2648_v14  ;;  %v5052_v57 = vrot.slane %v5051_v58, 1 }
 0x299   : > { %v2567_v16 = vpop.xlane.xlu0 %2566  ;;  %v2631_v6 = vmax.f32 %v2629_v23, %v2630_v25  ;;  %v5076_v50 = vmul.f32 %v9992_v22, %v9796_v59  ;;  %v5077_v30 = vmul.f32 %v9995_v11, %v9789_v55  ;;  %v2649_v37 = vsub.f32 %v9975_v24, %v2628_v26 }
 0x29a   : > { %8520 = vlog2.f32 %v2567_v16  ;;  %v5059_v2 = vrot.slane %v5058_v17, 2  ;;  %v5085_v32 = vrot.slane %v10021_v1, 2  ;;  %v2650_v52 = vsub.f32 %v9972_v49, %v2628_v26 }
 0x29b   : > { %v7219_v33 = vpop.xlane.xlu1 %7218  ;;  %v2632_v29 = vrot.slane %v2631_v6, 4  ;;  %v10030_v38 = vadd.f32 %v5092_v63, %v5091_v44  ;;  %v7249_v9 = vsub.f32 -2.7725885, %v7235_v43  ;;  %v7248_v59 = vsub.f32 -2.7725885, %v7233_v42 }
 0x29c   : > { %8522 = vlog2.f32 %v7219_v33  ;;  %v10032_v22 = vadd.f32 %v5052_v57, %v5051_v58  ;;  %v5098_v55 = vsel %vm258_vm0, %v5076_v50, 0.0  ;;  %v5099_v15 = vsel %vm258_vm0, %v5077_v30, 0.0 }
 0x29d   : > { %v7216_v18 = vpop.xlane.xlu0 %7215  ;;  %v2633_v35 = vmax.f32 %v2631_v6, %v2632_v29  ;;  %v2659_v49 = vmul.f32 1.442695, %v2649_v37  ;;  %v5060_v54 = vadd.f32 %v5059_v2, %v5058_v17  ;;  %v2661_v5 = vmul.f32 1.442695, %v2650_v52 }
 0x29e   : > { %8524 = vlog2.f32 %v7216_v18  ;;  %v10041_v6 = vadd.f32 %v7249_v9, %v9854_v0  ;;  %v10044_v44 = vadd.f32 %v7248_v59, %v9862_v56 }
 0x29f   : > { %v2634_v60 = vrot.slane %v2633_v35, 2  ;;  %8526 = vrcp.f32 %v5044_v47 }
 0x2a0   : > { %8528 = vpow2.f32 %v2655_v36  ;;  %v5061_v36 = vrot.slane %v5060_v54, 1 }
 0x2a1   : > { %8530 = vpow2.f32 %v2657_v3  ;;  %v2635_v62 = vmax.f32 %v2633_v35, %v2634_v60 }
 0x2a2   : > { %v8515_v13 = vpop.eup %8514  ;;  %8532 = vpow2.f32 %v2659_v49  ;;  %v5062_v30 = vadd.f32 %v5061_v36, %v5060_v54 }
 0x2a3   : > { %v8517_v11 = vpop.eup %8516  ;;  %v5063_v8 = vsel %vm258_vm0, %v8515_v13, 0.0  ;;  %v2636_v24 = vrot.slane %v2635_v62, 1  ;;  %v5078_v10 = vmul.f32 %v8515_v13, %v9828_v45  ;;  %v5100_v45 = vadd.f32 %v5099_v15, %v5098_v55 }
 0x2a4   : > { %v5064_v19 = vsel %vm258_vm0, %v8517_v11, 0.0  ;;  %v5079_v28 = vmul.f32 %v8517_v11, %v9821_v48  ;;  %8534 = vpow2.f32 %v2661_v5 }
 0x2a5   : > { %v8519_v12 = vpop.eup %8518  ;;  %v5065_v25 = vadd.f32 %v5064_v19, %v5063_v8  ;;  %v2637_v23 = vmax.f32 %v2635_v62, %v2636_v24  ;;  %v5107_v34 = vsel %vm258_vm0, %v5078_v10, 0.0  ;;  %v5086_v8 = vadd.f32 %v5085_v32, %v10021_v1 }
 0x2a6   : > { %v2586_v16 = vmul.f32 0.6931472, %v8519_v12  ;;  %v5108_v20 = vsel %vm258_vm0, %v5079_v28, 0.0  ;;  %v5094_v24 = vrot.slane %v10030_v38, 2 }
 0x2a7   : > { %v8521_v14 = vpop.eup %8520  ;;  %v2651_v33 = vsub.f32 %v10012_v53, %v2637_v23  ;;  %v2652_v58 = vsub.f32 %v10008_v7, %v2637_v23  ;;  %v5066_v0 = vrot.slane %v5065_v25, 4  ;;  %v5101_v53 = vrot.slane %v5100_v45, 4 }
 0x2a8   : > { %v2594_v48 = vadd.f32 %v2586_v16, %v9869_v31  ;;  %v2584_v47 = vmul.f32 0.6931472, %v8521_v14  ;;  %v5109_v63 = vadd.f32 %v5108_v20, %v5107_v34  ;;  %v7265_v31 = vsel %vm258_vm0, %v10041_v6, -inf }
 0x2a9   : > { %v8523_v29 = vpop.eup %8522  ;;  %v2663_v17 = vmul.f32 1.442695, %v2651_v33  ;;  %v2665_v56 = vmul.f32 1.442695, %v2652_v58  ;;  %v7264_v7 = vsel %vm258_vm0, %v10044_v44, -inf  ;;  %v5067_v42 = vadd.f32 %v5066_v0, %v5065_v25 }
 0x2aa   : > { %v2602_v26 = vsub.f32 -2.7725885, %v2594_v48  ;;  %v2593_v3 = vadd.f32 %v2584_v47, %v9875_v61  ;;  %v7239_v35 = vmul.f32 0.6931472, %v8523_v29  ;;  %v7266_v13 = vmax.f32 %v7264_v7, %v7265_v31 }
 0x2ab   : > { %v8525_v18 = vpop.eup %8524  ;;  %8536 = vpow2.f32 %v2663_v17  ;;  %v5068_v52 = vrot.slane %v5067_v42, 2  ;;  %v5102_v59 = vadd.f32 %v5101_v53, %v5100_v45  ;;  %v5110_v55 = vrot.slane %v5109_v63, 4 }
 0x2ac   : > { %v7237_v43 = vmul.f32 0.6931472, %v8525_v18  ;;  %v10056_v57 = vpop.eup %8526  ;;  %v10059_v50 = vadd.f32 %v2602_v26, %v9716_v51  ;;  %v2601_v60 = vsub.f32 -2.7725885, %v2593_v3  ;;  %8538 = vpow2.f32 %v2665_v56 }
 0x2ad   : > { %v10061_v61 = vpop.eup %8528  ;;  %v7251_v37 = vsub.f32 -2.7725885, %v7239_v35  ;;  %v5069_v51 = vadd.f32 %v5068_v52, %v5067_v42  ;;  %8540 = vrcp.f32 %v10032_v22  ;;  %v7267_v32 = vrot.slane %v7266_v13, 4 }
 0x2ae   : > { %v7250_v2 = vsub.f32 -2.7725885, %v7237_v43  ;;  %v10063_v62 = vpop.eup %8530  ;;  %v10066_v9 = vadd.f32 %v2601_v60, %v9721_v4  ;;  %v2671_v10 = vsel %vm258_vm0, %v10061_v61, 0.0  ;;  %v2639_v15 = vsel %vm258_vm0, %v10059_v50, -inf }
 0x2af   : > { %v10083_v12 = vadd.f32 %v7251_v37, %v9884_v41  ;;  %v5070_v49 = vrot.slane %v5069_v51, 1  ;;  %8542 = vrcp.f32 %v5062_v30  ;;  %v2672_v1 = vsel %vm258_vm0, %v10063_v62, 0.0  ;;  %v10089_v16 = vpop.eup %8532 }
 0x2b0   : > { %v10069_v11 = vadd.f32 %v7250_v2, %v9892_v40  ;;  %v2638_v4 = vsel %vm258_vm0, %v10066_v9, -inf  ;;  %v5103_v54 = vrot.slane %v5102_v59, 2  ;;  %v5111_v28 = vadd.f32 %v5110_v55, %v5109_v63 }
 0x2b1   : > { %v2640_v40 = vmax.f32 %v2638_v4, %v2639_v15  ;;  %v5071_v23 = vadd.f32 %v5070_v49, %v5069_v51  ;;  %v7274_v14 = vsel %vm258_vm0, %v10083_v12, -inf  ;;  %v5095_v45 = vadd.f32 %v5094_v24, %v10030_v38  ;;  %v10094_v34 = vpop.eup %8534 }
 0x2b2   : > { %v7273_v25 = vsel %vm258_vm0, %v10069_v11, -inf  ;;  %v2673_v33 = vadd.f32 %v2672_v1, %v2671_v10  ;;  %v5112_v48 = vrot.slane %v5111_v28, 2  ;;  %v7268_v20 = vmax.f32 %v7266_v13, %v7267_v32 }
 0x2b3   : > { %v7225_v19 = vpop.xlane.xlu1 %7224  ;;  %v2641_v5 = vrot.slane %v2640_v40, 4  ;;  %v7275_v58 = vmax.f32 %v7273_v25, %v7274_v14  ;;  %v5087_v47 = vrot.slane %v5086_v8, 1  ;;  %v5104_v36 = vadd.f32 %v5103_v54, %v5102_v59 }
 0x2b4   : > { %8544 = vlog2.f32 %v7225_v19  ;;  %v2680_v17 = vsel %vm258_vm0, %v10089_v16, 0.0  ;;  %v2681_v56 = vsel %vm258_vm0, %v10094_v34, 0.0  ;;  %v2674_v18 = vrot.slane %v2673_v33, 4 }
 0x2b5   : > { %v7222_v22 = vpop.xlane.xlu0 %7221  ;;  %v2642_v41 = vmax.f32 %v2640_v40, %v2641_v5  ;;  %v7276_v3 = vrot.slane %v7275_v58, 4  ;;  %v5096_v35 = vrot.slane %v5095_v45, 1  ;;  %v5113_v53 = vadd.f32 %v5112_v48, %v5111_v28 }
 0x2b6   : > { %8546 = vlog2.f32 %v7222_v22  ;;  %v7269_v63 = vrot.slane %v7268_v20, 2  ;;  %v5088_v7 = vadd.f32 %v5087_v47, %v5086_v8  ;;  %v5105_v43 = vrot.slane %v5104_v36, 1 }
 0x2b7   : > { %8548 = vrcp.f32 %v5071_v23  ;;  %v2643_v29 = vrot.slane %v2642_v41, 2  ;;  %v2682_v42 = vadd.f32 %v2681_v56, %v2680_v17  ;;  %v2675_v59 = vadd.f32 %v2674_v18, %v2673_v33 }
 0x2b8   : > { %v10096_v0 = vpop.eup %8536  ;;  %v5117_v52 = vmul.f32 %v10056_v57, %v5088_v7  ;;  %v7277_v55 = vmax.f32 %v7275_v58, %v7276_v3  ;;  %v5097_v51 = vadd.f32 %v5096_v35, %v5095_v45  ;;  %v5114_v8 = vrot.slane %v5113_v53, 1  ;;  %v10282_v7 = vld [vmem:[#allocation9_spill] sm:$0xff] }
 0x2b9   : > { %v2644_v26 = vmax.f32 %v2642_v41, %v2643_v29  ;;  %v10102_v38 = vpop.eup %8538  ;;  %v2689_v30 = vsel %vm258_vm0, %v10096_v0, 0.0  ;;  %v7270_v24 = vmax.f32 %v7268_v20, %v7269_v63  ;;  %v5106_v4 = vadd.f32 %v5105_v43, %v5104_v36  ;;  %v10279_v20 = vld [vmem:[#allocation21_spill] sm:$0xff]  ;;  %v10281_v63 = vld [vmem:[#allocation8_spill] sm:$0xff] }
 0x2ba   : > { %v8541_v60 = vpop.eup %8540  ;;  %v2690_v37 = vsel %vm258_vm0, %v10102_v38, 0.0  ;;  %v2683_v49 = vrot.slane %v2682_v42, 4  ;;  %v2707_v19 = vmul.f32 %v10061_v61, %v9570_v39  ;;  %v7278_v23 = vrot.slane %v7277_v55, 2 }
 0x2bb   : > { %v2645_v31 = vrot.slane %v2644_v26, 1  ;;  %v2691_v1 = vadd.f32 %v2690_v37, %v2689_v30  ;;  %v5119_v32 = vmul.f32 %v8541_v60, %v5097_v51  ;;  %v5115_v22 = vadd.f32 %v5114_v8, %v5113_v53  ;;  %v10284_v51 = vld [vmem:[#allocation10_spill] sm:$0xff] }
 0x2bc   : > { %v8543_v13 = vpop.eup %8542  ;;  %v2676_v41 = vrot.slane %v2675_v59, 2  ;;  %v7271_v14 = vrot.slane %v7270_v24, 1  ;;  %v2684_v61 = vadd.f32 %v2683_v49, %v2682_v42  ;;  %v7279_v17 = vmax.f32 %v7277_v55, %v7278_v23 }
 0x2bd   : > { %v2646_v2 = vmax.f32 %v2644_v26, %v2645_v31  ;;  %v5121_v5 = vmul.f32 %v8543_v13, %v5106_v4  ;;  %v2692_v58 = vrot.slane %v2691_v1, 4  ;;  %v5128_v39 = vsel %vm2424_vm4, %v5119_v32, %v5117_v52  ;;  %v10280_v26 = vld [vmem:[#allocation23_spill] sm:$0xff] }
 0x2be   : > { %v10122_v56 = vmax.f32 %v7270_v24, %v7271_v14  ;;  %v2677_v35 = vadd.f32 %v2676_v41, %v2675_v59  ;;  %v2709_v31 = vmul.f32 %v10089_v16, %v10281_v63  ;;  %v2710_v43 = vmul.f32 %v10094_v34, %v10282_v7  ;;  %v10283_v59 = vld [vmem:[#allocation14_spill] sm:$0xff] }
 0x2bf   : > { %v2653_v10 = vsub.f32 %v10066_v9, %v2646_v2  ;;  %v2654_v15 = vsub.f32 %v10059_v50, %v2646_v2  ;;  %v2708_v9 = vmul.f32 %v10063_v62, %v9566_v21  ;;  %v5129_v36 = vsel %vm2425_vm5, %v5121_v5, %v5128_v39  ;;  %v10286_v39 = vld [vmem:[#allocation15_spill] sm:$0xff] }
 0x2c0   : > { %v2715_v62 = vsel %vm258_vm0, %v2707_v19, 0.0  ;;  %v2693_v53 = vadd.f32 %v2692_v58, %v2691_v1  ;;  %v2685_v37 = vrot.slane %v2684_v61, 2  ;;  %v7280_v2 = vrot.slane %v7279_v17, 1 }
 0x2c1   : > { %v8545_v40 = vpop.eup %8544  ;;  %v2667_v54 = vmul.f32 1.442695, %v2653_v10  ;;  %v2669_v57 = vmul.f32 1.442695, %v2654_v15  ;;  %v2716_v42 = vsel %vm258_vm0, %v2708_v9, 0.0  ;;  %v2711_v55 = vmul.f32 %v10096_v0, %v10283_v59 }
 0x2c2   : > { %v7243_v28 = vmul.f32 0.6931472, %v8545_v40  ;;  %v2712_v16 = vmul.f32 %v10102_v38, %v10284_v51  ;;  %v7300_v34 = vsub.f32 %v10044_v44, %v10122_v56  ;;  %v2678_v8 = vrot.slane %v2677_v35, 1 }
 0x2c3   : > { %v8547_v25 = vpop.eup %8546  ;;  %8550 = vpow2.f32 %v2667_v54  ;;  %v2717_v24 = vadd.f32 %v2716_v42, %v2715_v62  ;;  %v2694_v4 = vrot.slane %v2693_v53, 2  ;;  %v2724_v40 = vsel %vm258_vm0, %v2709_v31, 0.0 }
 0x2c4   : > { %v8549_v50 = vpop.eup %8548  ;;  %v7253_v45 = vsub.f32 -2.7725885, %v7243_v28  ;;  %v7241_v33 = vmul.f32 0.6931472, %v8547_v25  ;;  %8552 = vpow2.f32 %v2669_v57  ;;  %v2725_v49 = vsel %vm258_vm0, %v2710_v43, 0.0 }
 0x2c5   : > { %v5123_v48 = vmul.f32 %v8549_v50, %v5115_v22  ;;  %v2686_v1 = vadd.f32 %v2685_v37, %v2684_v61  ;;  %v7281_v32 = vmax.f32 %v7279_v17, %v7280_v2  ;;  %v2733_v19 = vsel %vm258_vm0, %v2711_v55, 0.0  ;;  %v10285_v50 = vld [vmem:[#allocation16_spill] sm:$0xff] }
 0x2c6   : > { %v10117_v29 = vadd.f32 %v7253_v45, %v10279_v20  ;;  %v7252_v47 = vsub.f32 -2.7725885, %v7241_v33  ;;  %v2734_v38 = vsel %vm258_vm0, %v2712_v16, 0.0  ;;  %v2718_v54 = vrot.slane %v2717_v24, 4 }
 0x2c7   : > { %v5130_v21 = vsel %vm2427_vm6, %v5123_v48, %v5129_v36  ;;  %v2726_v44 = vadd.f32 %v2725_v49, %v2724_v40  ;;  %v7308_v28 = vmul.f32 1.442695, %v7300_v34  ;;  %v2679_v25 = vadd.f32 %v2678_v8, %v2677_v35 }
 0x2c8   : > { %v10125_v18 = vadd.f32 %v7252_v47, %v10280_v26  ;;  %v5132_v3 = vsel %vm2767_vm7, %v5130_v21, 0.0  ;;  %v7283_v60 = vsel %vm258_vm0, %v10117_v29, -inf  ;;  %v2695_v23 = vadd.f32 %v2694_v4, %v2693_v53 }
 0x2c9   : > { %5133 = vadd.xlane.f32.xlu1 %v5132_v3  ;;  %v2687_v9 = vrot.slane %v2686_v1, 1  ;;  %v2735_v45 = vadd.f32 %v2734_v38, %v2733_v19  ;;  %v7302_v33 = vsub.f32 %v10069_v11, %v7281_v32  ;;  %v7303_v20 = vsub.f32 %v10083_v12, %v7281_v32 }
 0x2ca   : > { %v7282_v30 = vsel %vm258_vm0, %v10125_v18, -inf  ;;  %v2727_v36 = vrot.slane %v2726_v44, 4  ;;  %v2696_v62 = vrot.slane %v2695_v23, 1  ;;  %v2719_v26 = vadd.f32 %v2718_v54, %v2717_v24 }
 0x2cb   : > { %v7284_v52 = vmax.f32 %v7282_v30, %v7283_v60  ;;  %v7231_v13 = vpop.xlane.xlu1 %7230  ;;  %v7301_v35 = vsub.f32 %v10041_v6, %v10122_v56  ;;  %v2688_v11 = vadd.f32 %v2687_v9, %v2686_v1  ;;  %v7312_v31 = vmul.f32 1.442695, %v7302_v33 }
 0x2cc   : > { %8554 = vlog2.f32 %v7231_v13  ;;  %v2736_v43 = vrot.slane %v2735_v45, 4  ;;  %v7314_v12 = vmul.f32 1.442695, %v7303_v20  ;;  %v2728_v60 = vadd.f32 %v2727_v36, %v2726_v44 }
 0x2cd   : > { %v7285_v10 = vrot.slane %v7284_v52, 4  ;;  %v7228_v15 = vpop.xlane.xlu0 %7227  ;;  %v7310_v59 = vmul.f32 1.442695, %v7301_v35 }
 0x2ce   : > { %8556 = vlog2.f32 %v7228_v15  ;;  %v2737_v34 = vadd.f32 %v2736_v43, %v2735_v45  ;;  %v2729_v15 = vrot.slane %v2728_v60, 2 }
 0x2cf   : > { %v7286_v0 = vmax.f32 %v7284_v52, %v7285_v10  ;;  %8558 = vrcp.f32 %v2679_v25  ;;  %v2697_v52 = vadd.f32 %v2696_v62, %v2695_v23 }
 0x2d0   : > { %v8551_v57 = vpop.eup %8550  ;;  %8560 = vpow2.f32 %v7308_v28  ;;  %v2738_v49 = vrot.slane %v2737_v34, 2  ;;  %v2730_v19 = vadd.f32 %v2729_v15, %v2728_v60 }
 0x2d1   : > { %v7287_v5 = vrot.slane %v7286_v0, 2  ;;  %v8553_v22 = vpop.eup %8552  ;;  %v2698_v41 = vsel %vm258_vm0, %v8551_v57, 0.0  ;;  %v2713_v14 = vmul.f32 %v8551_v57, %v10285_v50  ;;  %8562 = vrcp.f32 %v2688_v11 }
 0x2d2   : > { %v2699_v48 = vsel %vm258_vm0, %v8553_v22, 0.0  ;;  %v2714_v61 = vmul.f32 %v8553_v22, %v10286_v39  ;;  %8564 = vpow2.f32 %v7312_v31  ;;  %v2739_v28 = vadd.f32 %v2738_v49, %v2737_v34 }
 0x2d3   : > { %v7288_v58 = vmax.f32 %v7286_v0, %v7287_v5  ;;  %v2700_v47 = vadd.f32 %v2699_v48, %v2698_v41  ;;  %v2742_v17 = vsel %vm258_vm0, %v2713_v14, 0.0  ;;  %8566 = vpow2.f32 %v7314_v12 }
 0x2d4   : > { %v2743_v3 = vsel %vm258_vm0, %v2714_v61, 0.0  ;;  %8568 = vrcp.f32 %v2697_v52  ;;  %v2720_v0 = vrot.slane %v2719_v26, 2  ;;  %v2731_v22 = vrot.slane %v2730_v19, 1 }
 0x2d5   : > { %v7289_v21 = vrot.slane %v7288_v58, 1  ;;  %v2701_v53 = vrot.slane %v2700_v47, 4  ;;  %v2744_v63 = vadd.f32 %v2743_v3, %v2742_v17 }
 0x2d6   : > { %v2732_v39 = vadd.f32 %v2731_v22, %v2730_v19  ;;  %v10289_v19 = vld [vmem:[#allocation22_spill] sm:$0xff] }
 0x2d7   : > { %v7290_v7 = vmax.f32 %v7288_v58, %v7289_v21  ;;  %v2702_v42 = vadd.f32 %v2701_v53, %v2700_v47  ;;  %v2745_v13 = vrot.slane %v2744_v63, 4 }
 0x2d9   : > { %v8555_v30 = vpop.eup %8554  ;;  %v7304_v37 = vsub.f32 %v10125_v18, %v7290_v7  ;;  %v7305_v2 = vsub.f32 %v10117_v29, %v7290_v7  ;;  %v2703_v56 = vrot.slane %v2702_v42, 2  ;;  %v2746_v4 = vadd.f32 %v2745_v13, %v2744_v63 }
 0x2da   : > { %v7247_v6 = vmul.f32 0.6931472, %v8555_v30 }
 0x2db   : > { %v8557_v55 = vpop.eup %8556  ;;  %v7316_v51 = vmul.f32 1.442695, %v7304_v37  ;;  %v7318_v16 = vmul.f32 1.442695, %v7305_v2  ;;  %v2704_v10 = vadd.f32 %v2703_v56, %v2702_v42  ;;  %v2747_v44 = vrot.slane %v2746_v4, 2 }
 0x2dc   : > { %v7255_v8 = vsub.f32 -2.7725885, %v7247_v6  ;;  %v7245_v24 = vmul.f32 0.6931472, %v8557_v55  ;;  %v8559_v5 = vpop.eup %8558 }
 0x2dd   : > { %8570 = vpow2.f32 %v7316_v51  ;;  %v2705_v40 = vrot.slane %v2704_v10, 1  ;;  %v8561_v25 = vpop.eup %8560  ;;  %v2748_v41 = vadd.f32 %v2747_v44, %v2746_v4 }
 0x2de   : > { %v7263_v29 = vadd.f32 %v7255_v8, %v9926_v27  ;;  %v7254_v18 = vsub.f32 -2.7725885, %v7245_v24  ;;  %8572 = vpow2.f32 %v7318_v16  ;;  %v2721_v27 = vadd.f32 %v2720_v0, %v2719_v26  ;;  %v8563_v9 = vpop.eup %8562 }
 0x2df   : > { %8574 = vpow2.f32 %v7310_v59  ;;  %v2706_v32 = vadd.f32 %v2705_v40, %v2704_v10  ;;  %v8565_v14 = vpop.eup %8564  ;;  %v2749_v61 = vrot.slane %v2748_v41, 1  ;;  %v2754_v62 = vmul.f32 %v8563_v9, %v2732_v39 }
 0x2e0   : > { %v7262_v1 = vadd.f32 %v7254_v18, %v9934_v46  ;;  %v7292_v38 = vsel %vm258_vm0, %v7263_v29, -inf  ;;  %v2740_v46 = vrot.slane %v2739_v28, 1  ;;  %v2722_v45 = vrot.slane %v2721_v27, 1  ;;  %v8567_v33 = vpop.eup %8566 }
 0x2e1   : > { %8576 = vrcp.f32 %v2706_v32  ;;  %v8569_v48 = vpop.eup %8568  ;;  %v7333_v11 = vsel %vm258_vm0, %v8565_v14, 0.0  ;;  %v7334_v53 = vsel %vm258_vm0, %v8567_v33, 0.0  ;;  %v2750_v63 = vadd.f32 %v2749_v61, %v2748_v41 }
 0x2e2   : > { %v7291_v54 = vsel %vm258_vm0, %v7262_v1, -inf  ;;  %v2741_v36 = vadd.f32 %v2740_v46, %v2739_v28  ;;  %v2723_v21 = vadd.f32 %v2722_v45, %v2721_v27  ;;  %v7324_v60 = vsel %vm258_vm0, %v8561_v25, 0.0  ;;  %v10291_v28 = vld [vmem:[#allocation18_spill] sm:$0xff]  ;;  %v10292_v27 = vld [vmem:[#allocation17_spill] sm:$0xff] }
 0x2e3   : > { %v7293_v57 = vmax.f32 %v7291_v54, %v7292_v38  ;;  %v7335_v52 = vadd.f32 %v7334_v53, %v7333_v11  ;;  %v10290_v54 = vld [vmem:[#allocation11_spill] sm:$0xff] }
 0x2e4   : > { %v2756_v35 = vmul.f32 %v8569_v48, %v2741_v36  ;;  %v2752_v31 = vmul.f32 %v8559_v5, %v2723_v21  ;;  %v7360_v5 = vmul.f32 %v8561_v25, %v10291_v28  ;;  %v10294_v21 = vld [vmem:[#allocation13_spill] sm:$0xff] }
 0x2e5   : > { %v7294_v23 = vrot.slane %v7293_v57, 4  ;;  %v7336_v24 = vrot.slane %v7335_v52, 4 }
 0x2e6   : > { %v2763_v2 = vsel %vm2424_vm4, %v2754_v62, %v2752_v31 }
 0x2e7   : > { %v7295_v50 = vmax.f32 %v7293_v57, %v7294_v23  ;;  %v2764_v6 = vsel %vm2425_vm5, %v2756_v35, %v2763_v2  ;;  %v7337_v4 = vadd.f32 %v7336_v24, %v7335_v52 }
 0x2e9   : > { %v7296_v58 = vrot.slane %v7295_v50, 2  ;;  %v7338_v0 = vrot.slane %v7337_v4, 2 }
 0x2ea   : > { %v8571_v20 = vpop.eup %8570 }
 0x2eb   : > { %v7297_v47 = vmax.f32 %v7295_v50, %v7296_v58  ;;  %v8573_v17 = vpop.eup %8572  ;;  %v7342_v43 = vsel %vm258_vm0, %v8571_v20, 0.0  ;;  %v7364_v38 = vmul.f32 %v8571_v20, %v10289_v19  ;;  %v7339_v50 = vadd.f32 %v7338_v0, %v7337_v4  ;;  %v10293_v20 = vld [vmem:[#allocation12_spill] sm:$0xff] }
 0x2ec   : > { %v8575_v26 = vpop.eup %8574  ;;  %v7343_v12 = vsel %vm258_vm0, %v8573_v17, 0.0  ;;  %v7365_v44 = vmul.f32 %v8573_v17, %v10290_v54  ;;  %v7368_v58 = vsel %vm258_vm0, %v7360_v5, 0.0 }
 0x2ed   : > { %v7298_v3 = vrot.slane %v7297_v47, 1  ;;  %v7325_v30 = vsel %vm258_vm0, %v8575_v26, 0.0  ;;  %v7344_v56 = vadd.f32 %v7343_v12, %v7342_v43  ;;  %v7361_v23 = vmul.f32 %v8575_v26, %v10292_v27 }
 0x2ee   : > { %v8577_v7 = vpop.eup %8576  ;;  %v7326_v51 = vadd.f32 %v7325_v30, %v7324_v60  ;;  %v7386_v46 = vsel %vm258_vm0, %v7364_v38, 0.0  ;;  %v7340_v35 = vrot.slane %v7339_v50, 1 }
 0x2ef   : > { %v7299_v42 = vmax.f32 %v7297_v47, %v7298_v3  ;;  %v2758_v37 = vmul.f32 %v8577_v7, %v2750_v63  ;;  %v7345_v10 = vrot.slane %v7344_v56, 4  ;;  %v7369_v48 = vsel %vm258_vm0, %v7361_v23, 0.0 }
 0x2f0   : > { %v7327_v15 = vrot.slane %v7326_v51, 4  ;;  %v7370_v11 = vadd.f32 %v7369_v48, %v7368_v58  ;;  %v7341_v30 = vadd.f32 %v7340_v35, %v7339_v50 }
 0x2f1   : > { %v7306_v13 = vsub.f32 %v7262_v1, %v7299_v42  ;;  %v7307_v59 = vsub.f32 %v7263_v29, %v7299_v42  ;;  %v2765_v55 = vsel %vm2427_vm6, %v2758_v37, %v2764_v6  ;;  %v7346_v18 = vadd.f32 %v7345_v10, %v7344_v56  ;;  %v10287_v29 = vld [vmem:[#allocation20_spill] sm:$0xff]  ;;  %v10288_v1 = vld [vmem:[#allocation19_spill] sm:$0xff] }
 0x2f2   : > { %v2768_v8 = vsel %vm2767_vm7, %v2765_v55, 0.0  ;;  %v7328_v40 = vadd.f32 %v7327_v15, %v7326_v51  ;;  %v7362_v49 = vmul.f32 %v8565_v14, %v10287_v29  ;;  %v7363_v32 = vmul.f32 %v8567_v33, %v10288_v1 }
 0x2f3   : > { %v7320_v16 = vmul.f32 1.442695, %v7306_v13  ;;  %v7322_v34 = vmul.f32 1.442695, %v7307_v59  ;;  %2769 = vadd.xlane.f32.xlu0 %v2768_v8  ;;  %v7347_v57 = vrot.slane %v7346_v18, 2  ;;  %v7387_v14 = vsel %vm258_vm0, %v7365_v44, 0.0 }
 0x2f4   : > { %v7329_v22 = vrot.slane %v7328_v40, 2  ;;  %v7377_v41 = vsel %vm258_vm0, %v7362_v49, 0.0  ;;  %v7378_v9 = vsel %vm258_vm0, %v7363_v32, 0.0  ;;  %v7388_v26 = vadd.f32 %v7387_v14, %v7386_v46 }
 0x2f5   : > { %8578 = vpow2.f32 %v7320_v16  ;;  %v7348_v33 = vadd.f32 %v7347_v57, %v7346_v18  ;;  %v7379_v36 = vadd.f32 %v7378_v9, %v7377_v41  ;;  %v7371_v2 = vrot.slane %v7370_v11, 4 }
 0x2f6   : > { %8580 = vpow2.f32 %v7322_v34  ;;  %v7330_v61 = vadd.f32 %v7329_v22, %v7328_v40  ;;  %v7389_v60 = vrot.slane %v7388_v26, 4 }
 0x2f7   : > { %v7349_v63 = vrot.slane %v7348_v33, 1  ;;  %v7380_v12 = vrot.slane %v7379_v36, 4  ;;  %v7372_v16 = vadd.f32 %v7371_v2, %v7370_v11  ;;  %8582 = vrcp.f32 %v7341_v30 }
 0x2f8   : > { %v7331_v7 = vrot.slane %v7330_v61, 1  ;;  %v7390_v55 = vadd.f32 %v7389_v60, %v7388_v26 }
 0x2f9   : > { %v7350_v52 = vadd.f32 %v7349_v63, %v7348_v33  ;;  %v7381_v6 = vadd.f32 %v7380_v12, %v7379_v36  ;;  %v7373_v4 = vrot.slane %v7372_v16, 2 }
 0x2fa   : > { %v7332_v13 = vadd.f32 %v7331_v7, %v7330_v61  ;;  %v7391_v10 = vrot.slane %v7390_v55, 2 }
 0x2fb   : > { %8584 = vrcp.f32 %v7350_v52  ;;  %v7382_v8 = vrot.slane %v7381_v6, 2  ;;  %v7374_v49 = vadd.f32 %v7373_v4, %v7372_v16 }
 0x2fc   : > { %8586 = vrcp.f32 %v7332_v13  ;;  %v7392_v29 = vadd.f32 %v7391_v10, %v7390_v55 }
 0x2fd   : > { %v7383_v18 = vadd.f32 %v7382_v8, %v7381_v6  ;;  %v7375_v19 = vrot.slane %v7374_v49, 1 }
 0x2fe   : > { %v7393_v0 = vrot.slane %v7392_v29, 1 }
 0x2ff   : > { %v7384_v1 = vrot.slane %v7383_v18, 1  ;;  %v7376_v27 = vadd.f32 %v7375_v19, %v7374_v49 }
 0x300   : > { %v7394_v5 = vadd.f32 %v7393_v0, %v7392_v29 }
 0x301   : > { %v7385_v44 = vadd.f32 %v7384_v1, %v7383_v18 }
 0x302   : > { %v8579_v45 = vpop.eup %8578 }
 0x303   : > { %v8581_v39 = vpop.eup %8580  ;;  %v7351_v25 = vsel %vm258_vm0, %v8579_v45, 0.0  ;;  %v7366_v47 = vmul.f32 %v8579_v45, %v10293_v20 }
 0x304   : > { %v7352_v17 = vsel %vm258_vm0, %v8581_v39, 0.0  ;;  %v7367_v62 = vmul.f32 %v8581_v39, %v10294_v21  ;;  %v8583_v38 = vpop.eup %8582 }
 0x305   : > { %v7353_v3 = vadd.f32 %v7352_v17, %v7351_v25  ;;  %v7395_v53 = vsel %vm258_vm0, %v7366_v47, 0.0  ;;  %v7407_v23 = vmul.f32 %v8583_v38, %v7385_v44 }
 0x306   : > { %v7396_v31 = vsel %vm258_vm0, %v7367_v62, 0.0 }
 0x307   : > { %v7354_v43 = vrot.slane %v7353_v3, 4  ;;  %v7397_v42 = vadd.f32 %v7396_v31, %v7395_v53 }
 0x308   : > { %v8585_v54 = vpop.eup %8584 }
 0x309   : > { %v7355_v37 = vadd.f32 %v7354_v43, %v7353_v3  ;;  %v7398_v56 = vrot.slane %v7397_v42, 4  ;;  %v8587_v28 = vpop.eup %8586  ;;  %v7409_v22 = vmul.f32 %v8585_v54, %v7394_v5 }
 0x30a   : > { %v7405_v9 = vmul.f32 %v8587_v28, %v7376_v27 }
 0x30b   : > { %v7356_v59 = vrot.slane %v7355_v37, 2  ;;  %v7399_v24 = vadd.f32 %v7398_v56, %v7397_v42 }
 0x30c   : > { %v7416_v14 = vsel %vm2424_vm4, %v7407_v23, %v7405_v9 }
 0x30d   : > { %v7357_v51 = vadd.f32 %v7356_v59, %v7355_v37  ;;  %v7400_v40 = vrot.slane %v7399_v24, 2  ;;  %v7417_v45 = vsel %vm2425_vm5, %v7409_v22, %v7416_v14 }
 0x30f   : > { %v7358_v34 = vrot.slane %v7357_v51, 1  ;;  %v7401_v32 = vadd.f32 %v7400_v40, %v7399_v24 }
 0x311   : > { %v7359_v15 = vadd.f32 %v7358_v34, %v7357_v51  ;;  %v7402_v57 = vrot.slane %v7401_v32, 1 }
 0x313   : > { %8588 = vrcp.f32 %v7359_v15  ;;  %v7403_v41 = vadd.f32 %v7402_v57, %v7401_v32 }
 0x320   : > { %v8589_v50 = vpop.eup %8588 }
 0x321   : > { %v7411_v46 = vmul.f32 %v8589_v50, %v7403_v41 }
 0x323   : > { %v7418_v33 = vsel %vm2427_vm6, %v7411_v46, %v7417_v45 }
 0x324   : > { %v7420_v58 = vsel %vm2767_vm7, %v7418_v33, 0.0 }
 0x325   : > { %7421 = vadd.xlane.f32.xlu0 %v7420_v58 }
 0x352   : > { %v5134_v25 = vpop.xlane.xlu1 %5133 }
 0x353   : > { %v5135_v20 = vmul.f32 0.06250001, %v5134_v25 }
 0x37c   : > { %v2770_v48 = vpop.xlane.xlu0 %2769 }
 0x37d   : > { %v2771_v39 = vmul.f32 0.06250001, %v2770_v48 }
 0x37f   : > { %v7424_v61 = vmul.f32 2.0, %v2771_v39 }
 0x381   : > { %v7425_v36 = vsub.f32 %v7424_v61, %v5135_v20 }
 0x3ae   : > { %v7422_v47 = vpop.xlane.xlu0 %7421 }
 0x3af   : > { %v7423_v17 = vmul.f32 0.06250001, %v7422_v47 }
 0x3b1   : > { %v7426_v21 = vsub.f32 %v7425_v36, %v7423_v17 }
 0x3b3   : > { %v7427_v62 = vmul.f32 %v7426_v21, %v7426_v21 }
 0x3b5   : > { %v7428_v26 = vadd.f32 1e-06, %v7427_v62 }
 0x3b7   : > { %8590 = vrsqrt.f32 %v7428_v26  ;;  %vm7431_vm9 = vcmp.eq.f32.partialorder %v7428_v26, inf  ;;  %v7434_v11 = vand.u32 2147483648, %v7428_v26  ;;  %vm7433_vm10 = vcmp.eq.f32.partialorder %v7428_v26, 0.0 }
 0x3c4   : > { %v8591_v3 = vpop.eup %8590 }
 0x3c5   : > { %v7430_v35 = vmul.f32 %v8591_v3, %v7428_v26 }
 0x3c7   : > { %v7432_v53 = vsel %vm7431_vm9, %v7428_v26, %v7430_v35 }
 0x3c8   : > { %v7435_v63 = vsel %vm7433_vm10, %v7434_v11, %v7432_v53 }
 0x3c9   : > { %7437 = vst.msk [vmem:[%s233_s9] sm:$0xf] %vm7436_vm8, %v7435_v63 }
 0x3ca PF: > { %s18_s14 = sadd.s32 1, %s8702_s14   ;;  %s10295_s9 = smov %s8686_s10 }
 0x3cb   : > { %p15_p9 = scmp.ge.s32.totalorder %s18_s14, 4   ;;  %s10296_s10 = smov %s8690_s11 }
 0x3cc   : > { %s10297_s11 = smov %s8772_s21  ;;  %s10298_s12 = smov %s8698_s13 }
 0x3cd   : > { %s10299_s13 = smov %s10301_s16  ;;  %17 = sbr.rel (!%p15_p9) target bundleno = 6 (0x6), region = 81 }
 0x3d2   :  { %7463 = vsyncpa [#allocation3], 1 }
 0x3d3   :  { %7465 = vsyncpa [#allocation3 + $0x1], 1 }
 0x3d4   :  { %7466 = vsyncpa [#allocation5], 1 }
 0x3d5   :  { %7468 = vsyncpa [#allocation5 + $0x1], 1 }

</bundles_post_ra>
